<compile_context>
chip_gen: v7x
topology: tpu7x:2x2x1
jax: 0.10.0
libtpu: 0.0.40
codegen_flags: <defaults>
</compile_context>

<pallas_src>
import math

import jax
import jax.numpy as jnp
import numpy as np
from jax import lax
from jax.experimental import pallas as pl
from jax.experimental.pallas import tpu as pltpu


NEG_BIG = -1e30  # numerically equivalent to -inf after exp(); avoids inf arithmetic


# ----------------------------- helpers --------------------------------------

def _round_up(x, m):
    return ((x + m - 1) // m) * m


def _padded_head_dim(H, hd):
    """Smallest hd_p >= hd such that H*hd_p is a multiple of 128 (per-head zero
    padding keeps E lane-aligned without reordering heads); falls back to plain
    8-alignment if that would blow the embed dim up pathologically (odd H)."""
    if (H * hd) % 128 == 0:
        return hd
    g = 128 // math.gcd(H, 128)
    hd_p = _round_up(hd, g)
    if H * hd_p > 8 * max(H * hd, 128):
        hd_p = _round_up(hd, 8)
    return hd_p


def _hardware_info():
    """(vmem_capacity_bytes, tensorcores_per_chip) with conservative fallbacks."""
    vmem = 64 * 1024 * 1024          # conservative default (v7x per-TC VMEM)
    cores = 1
    try:
        info = pltpu.get_tpu_info()
        for name in ("vmem_capacity_bytes", "vmem_bytes", "vmem_size_bytes"):
            val = getattr(info, name, None)
            if isinstance(val, (int, np.integer)) and val > 0:
                vmem = int(val)
                break
        for name in ("num_cores", "core_count", "num_tensorcores"):
            val = getattr(info, name, None)
            if isinstance(val, (int, np.integer)) and val > 0:
                cores = int(val)
                break
    except Exception:
        pass
    try:
        kind = jax.devices()[0].device_kind.lower()
        if ("v7" in kind) or ("7x" in kind):
            cores = max(cores, 2)    # v7x: 2 TensorCores per chip
    except Exception:
        pass
    return vmem, cores


def _pick_block_b(B, T, C_p, E_p, w_itemsize, budget_bytes, num_cores):
    """Largest divisor of B whose estimated per-step VMEM footprint fits the
    budget.  Multi-TC chips (v7x): prefer a grid-step count that divides evenly
    across cores.  Single-TC chips (v5e/v6e): take the largest fit -- extra
    grid steps are pure serial overhead there."""
    def est(bblk):
        R = bblk * T
        f = 4
        x_io = 2 * (2 * bblk * T * C_p * f)        # x in + out, double-buffered
        w = 2 * 4 * C_p * E_p * w_itemsize         # Wq/Wk/Wv/Wo
        b = 2 * (3 * E_p + 3 * C_p) * f            # biases + gamma/beta
        qkv = 4 * R * E_p * f                      # q, k, v, merged attn
        lg = 2 * bblk * T * T * f                  # logits + probs (one head live)
        outs = 3 * R * C_p * f                     # out, y, normalized
        return w + b + int(1.5 * (x_io + qkv + lg + outs))

    divisors = [d for d in range(1, B + 1) if B % d == 0]
    fitting = [d for d in divisors if est(d) <= budget_bytes]
    if not fitting:
        # TODO(synk): switch to a key-tiled online-softmax once even bblk=1 overflows.
        return 1
    if num_cores > 1:
        balanced = [d for d in fitting if (B // d) % num_cores == 0]
        if balanced:
            return max(balanced)
        multi = [d for d in fitting if (B // d) >= num_cores]
        if multi:
            return max(multi)
    return max(fitting)


# ----------------------------- kernel ---------------------------------------

def _make_kernel(BBLK, T, C_p, E_p, H, hd, hd_p, C_true, eps, compute_dtype):
    scaling = hd ** -0.5             # true head dim (module semantics)
    R = BBLK * T
    cdt = compute_dtype
    f32 = jnp.float32

    def kernel(x_ref, wq_ref, bq_ref, wk_ref, bk_ref, wv_ref, bv_ref,
               wo_ref, bo_ref, gamma_ref, beta_ref, o_ref):
        x2 = x_ref[...].reshape(R, C_p)              # (R, C_p) f32, padded lanes = 0
        xm = x2.astype(cdt)                          # MXU operand dtype only

        # --- input projections on the flattened (R, C_p) slab (pre-transposed W) ---
        q = jnp.dot(xm, wq_ref[...], preferred_element_type=f32) + bq_ref[0]
        k = jnp.dot(xm, wk_ref[...], preferred_element_type=f32) + bk_ref[0]
        v = jnp.dot(xm, wv_ref[...], preferred_element_type=f32) + bv_ref[0]
        q = q * scaling                              # (R, E_p) f32

        q3 = q.reshape(BBLK, T, E_p)
        k3 = k.reshape(BBLK, T, E_p)
        v3 = v.reshape(BBLK, T, E_p)

        # additive strictly-causal mask, built once in f32 (one VPU add per logit)
        i_idx = lax.broadcasted_iota(jnp.int32, (T, T), 0)
        j_idx = lax.broadcasted_iota(jnp.int32, (T, T), 1)
        mask_add = jnp.where(j_idx < i_idx, 0.0, NEG_BIG).astype(f32)
        mask_add = jnp.broadcast_to(mask_add, (BBLK, T, T))   # hoisted broadcast

        # TODO(synk): fold heads into the einsum batch dim ('bihd,bjhd->bhij')
        # when Mosaic supports multi-batch-dim dot_general / the (b,t,h,d)->
        # (b,h,t,d) in-kernel relayout; small static unroll with aligned
        # hd_p-lane slices until then.
        head_outs = []
        for h in range(H):
            sl = slice(h * hd_p, (h + 1) * hd_p)
            qh = q3[:, :, sl].astype(cdt)            # (BBLK, T, hd_p)
            kh = k3[:, :, sl].astype(cdt)
            vh = v3[:, :, sl].astype(cdt)

            logits = jnp.einsum('bid,bjd->bij', qh, kh,
                                preferred_element_type=f32)        # (BBLK, T, T)
            logits = logits + mask_add

            # softmax over {scalar-bias key slot (logit 0, value 0)} U {j < i}
            m = jnp.maximum(jnp.max(logits, axis=-1, keepdims=True), 0.0)
            p = jnp.exp(logits - m)                  # masked entries underflow to 0
            denom = jnp.sum(p, axis=-1, keepdims=True) + jnp.exp(-m)  # + bias slot
            # exact divide: the approx EUP reciprocal was a correctness concern
            # and the VPU divide hides under MXU/pipeline slack at these shapes.
            attn_h = jnp.einsum('bij,bjd->bid', p.astype(cdt), vh,
                                preferred_element_type=f32) / denom
            head_outs.append(attn_h.reshape(R, hd_p))

        # merge heads (lane concat) -> ONE full-contraction output projection:
        # (R, E_p) @ (E_p, C_p) instead of H partially-filled K=hd matmuls.
        attn = jnp.concatenate(head_outs, axis=-1)   # (R, E_p)
        out = jnp.dot(attn.astype(cdt), wo_ref[...],
                      preferred_element_type=f32) + bo_ref[0]      # (R, C_p)

        # --- residual + LayerNorm over the TRUE channel count ---
        # padded lanes of out/x are zero and gamma/beta padding is zero, so the
        # padded output lanes come out exactly zero.
        y = out + x2
        inv_c = 1.0 / C_true
        mean = jnp.sum(y, axis=-1, keepdims=True) * inv_c
        lane = lax.broadcasted_iota(jnp.int32, (1, C_p), 1)
        lane_mask = (lane < C_true).astype(f32)      # (1, C_p)
        centered = y - mean
        var = jnp.sum((centered * lane_mask) ** 2, axis=-1, keepdims=True) * inv_c
        ynorm = centered * lax.rsqrt(var + eps)
        ynorm = ynorm * gamma_ref[0] + beta_ref[0]

        o_ref[...] = ynorm.reshape(BBLK, T, C_p)     # lane-dense (C_p-wide) store

    return kernel


def _call(kernel, args, B, bblk, T, C_p, E_p, vmem_limit, single_buffer_weights):
    if single_buffer_weights:
        def wspec(shape):
            # constant-index operands never change block across the grid:
            # single-buffer them to reclaim VMEM (review item).
            return pl.BlockSpec(shape, lambda b: (0, 0),
                                pipeline_mode=pl.Buffered(1))
    else:
        def wspec(shape):
            return pl.BlockSpec(shape, lambda b: (0, 0))

    return pl.pallas_call(
        kernel,
        out_shape=jax.ShapeDtypeStruct((B, T, C_p), jnp.float32),
        grid=(B // bblk,),
        in_specs=[
            pl.BlockSpec((bblk, T, C_p), lambda b: (b, 0, 0)),   # x, batch block
            wspec((C_p, E_p)), wspec((1, E_p)),                  # Wq^T, bq
            wspec((C_p, E_p)), wspec((1, E_p)),                  # Wk^T, bk
            wspec((C_p, E_p)), wspec((1, E_p)),                  # Wv^T, bv
            wspec((E_p, C_p)), wspec((1, C_p)),                  # Wo^T, bo
            wspec((1, C_p)), wspec((1, C_p)),                    # gamma, beta
        ],
        out_specs=pl.BlockSpec((bblk, T, C_p), lambda b: (b, 0, 0)),
        compiler_params=pltpu.CompilerParams(
            dimension_semantics=("parallel",),
            vmem_limit_bytes=vmem_limit,
        ),
    )(*args)


# ----------------------------- wrapper --------------------------------------

def self_attention_pallas(x_tbc, params, num_heads, eps=1e-5,
                          compute_dtype=jnp.bfloat16, block_b=None):
    """x_tbc: (T, B, C) float32, as consumed by the PyTorch module.

    compute_dtype: dtype of the MXU matmul *operands* (bf16 by default on all
    TPU generations -- the v5e/v6e/v7x MXUs are bf16-native); accumulation,
    softmax, masking and LayerNorm always run in f32.
    """
    T, B, C = x_tbc.shape
    E = params["wq"].shape[0]
    H = num_heads
    hd = E // H
    assert hd * H == E

    # lane-dense padding (biggest single measured lever when C / E < 128)
    C_p = _round_up(C, 128)
    hd_p = _padded_head_dim(H, hd)
    E_p = H * hd_p

    cdt = compute_dtype
    f32 = jnp.float32

    # ---- one-time wrapper-side weight prep (transpose + per-head pad + cast) ----
    def prep_in_proj(w, b):                           # w: (E, C), b: (E,)
        wt = w.T.reshape(C, H, hd)
        wt = jnp.pad(wt, ((0, C_p - C), (0, 0), (0, hd_p - hd)))
        bt = jnp.pad(b.reshape(H, hd), ((0, 0), (0, hd_p - hd)))
        return wt.reshape(C_p, E_p).astype(cdt), bt.reshape(1, E_p).astype(f32)

    wq_t, bq = prep_in_proj(params["wq"], params["bq"])
    wk_t, bk = prep_in_proj(params["wk"], params["bk"])
    wv_t, bv = prep_in_proj(params["wv"], params["bv"])

    wo_t = jnp.pad(params["wo"].T.reshape(H, hd, C),
                   ((0, 0), (0, hd_p - hd), (0, C_p - C)))
    wo_t = wo_t.reshape(E_p, C_p).astype(cdt)
    bo = jnp.pad(params["bo"], (0, C_p - C)).reshape(1, C_p).astype(f32)
    gamma = jnp.pad(params["gamma"], (0, C_p - C)).reshape(1, C_p).astype(f32)
    beta = jnp.pad(params["beta"], (0, C_p - C)).reshape(1, C_p).astype(f32)

    x = jnp.transpose(x_tbc, (1, 0, 2)).astype(f32)   # (B, T, C) kernel layout
    x = jnp.pad(x, ((0, 0), (0, 0), (0, C_p - C)))    # (B, T, C_p)

    # ---- generation-aware block / VMEM budgeting ----
    vmem_cap, num_cores = _hardware_info()
    vmem_limit = int(min(100 * 1024 * 1024, max(32 * 1024 * 1024, 0.75 * vmem_cap)))
    if block_b is not None:
        bblk = block_b
        assert B % bblk == 0, "block_b must divide the batch size"
    else:
        bblk = _pick_block_b(B, T, C_p, E_p, np.dtype(cdt).itemsize,
                             int(0.85 * vmem_limit), num_cores)

    kernel = _make_kernel(bblk, T, C_p, E_p, H, hd, hd_p, C, eps, cdt)
    args = (x, wq_t, bq, wk_t, bk, wv_t, bv, wo_t, bo, gamma, beta)

    try:
        out = _call(kernel, args, B, bblk, T, C_p, E_p, vmem_limit,
                    single_buffer_weights=True)
    except Exception:
        # pipeline_mode=pl.Buffered(1) not supported on this jax version:
        # fall back to default double buffering (correctness unaffected).
        out = _call(kernel, args, B, bblk, T, C_p, E_p, vmem_limit,
                    single_buffer_weights=False)

    return jnp.transpose(out[:, :, :C], (1, 0, 2))    # drop pad, back to (T, B, C)


# ----------------------------- reference ------------------------------------

def self_attention_ref(x_tbc, params, num_heads, eps=1e-5):
    """Pure-JAX reference following the PyTorch code path literally."""
    T, B, C = x_tbc.shape
    E = params["wq"].shape[0]
    H = num_heads
    hd = E // H

    q = x_tbc @ params["wq"].T + params["bq"]
    k = x_tbc @ params["wk"].T + params["bk"]
    v = x_tbc @ params["wv"].T + params["bv"]
    q = q * (hd ** -0.5)

    q = q.reshape(T, B * H, hd).transpose(1, 0, 2)    # (BH, T, hd)
    k = k.reshape(T, B * H, hd).transpose(1, 0, 2)
    v = v.reshape(T, B * H, hd).transpose(1, 0, 2)

    logits = jnp.einsum("bid,bjd->bij", q, k)
    keep = jnp.tril(jnp.ones((T, T), jnp.float32), k=-1)
    logits = logits * keep + jnp.triu(jnp.full((T, T), -jnp.inf, jnp.float32), k=0)
    logits = jnp.concatenate([jnp.zeros((B * H, T, 1), jnp.float32), logits], axis=-1)
    v = jnp.concatenate([jnp.zeros((B * H, 1, hd), jnp.float32), v], axis=1)

    probs = jax.nn.softmax(logits, axis=-1)
    attn = jnp.einsum("bij,bjd->bid", probs, v)
    attn = attn.transpose(1, 0, 2).reshape(T, B, E)

    out = attn @ params["wo"].T + params["bo"]
    y = out + x_tbc
    mean = jnp.mean(y, axis=-1, keepdims=True)
    var = jnp.mean((y - mean) ** 2, axis=-1, keepdims=True)
    return (y - mean) / jnp.sqrt(var + eps) * params["gamma"] + params["beta"]


def init_params(key, out_channels, embed_dim):
    """Deterministic synthetic init matching the module's __init__ shapes.
    (weight init per fairseq Linear(); dropout=0; LayerNorm affine default.)"""
    ks = jax.random.split(key, 4)
    std_in = math.sqrt(1.0 / out_channels)
    std_out = math.sqrt(1.0 / embed_dim)
    f32 = jnp.float32
    return {
        "wq": std_in * jax.random.normal(ks[0], (embed_dim, out_channels), f32),
        "bq": jnp.zeros((embed_dim,), f32),
        "wk": std_in * jax.random.normal(ks[1], (embed_dim, out_channels), f32),
        "bk": jnp.zeros((embed_dim,), f32),
        "wv": std_in * jax.random.normal(ks[2], (embed_dim, out_channels), f32),
        "bv": jnp.zeros((embed_dim,), f32),
        "wo": std_out * jax.random.normal(ks[3], (out_channels, embed_dim), f32),
        "bo": jnp.zeros((out_channels,), f32),
        "gamma": jnp.ones((out_channels,), f32),
        "beta": jnp.zeros((out_channels,), f32),
    }


if __name__ == "__main__":
    T, B = 8, 2                       # time, batch
    out_channels, embed_dim, num_heads = 16, 32, 4

    key = jax.random.PRNGKey(0)
    k_x, k_p = jax.random.split(key)
    x = jax.random.normal(k_x, (T, B, out_channels), jnp.float32)   # (T, B, C)
    params = init_params(k_p, out_channels, embed_dim)

    y_ref = jax.block_until_ready(self_attention_ref(x, params, num_heads))

    # f32 matmul-operand path.  Softmax normalization is now an exact divide;
    # the remaining tolerance covers MXU multi-pass / default matmul precision
    # differences between the Pallas kernel and the XLA reference.
    y_f32 = jax.block_until_ready(
        self_attention_pallas(x, params, num_heads, compute_dtype=jnp.float32))
    np.testing.assert_allclose(np.asarray(y_f32), np.asarray(y_ref),
                               atol=2e-2, rtol=2e-2)

    # bf16 matmul-operand path (the default; enabled on v5e/v6e/v7x alike).
    y_bf16 = jax.block_until_ready(self_attention_pallas(x, params, num_heads))
    y_bf16 = np.asarray(y_bf16)
    assert np.isfinite(y_bf16).all()
    assert float(np.max(np.abs(y_bf16 - np.asarray(y_ref)))) < 0.1

    print("KERNEL_OK")
</pallas_src>

<mosaic_0001>
module attributes {stable_mosaic.version = 11 : i64} {
  func.func @kernel(%arg0: i32, %arg1: memref<2x8x128xf32, #tpu.memory_space<vmem>>, %arg2: memref<128x128xf32, #tpu.memory_space<vmem>>, %arg3: memref<1x128xf32, #tpu.memory_space<vmem>>, %arg4: memref<128x128xf32, #tpu.memory_space<vmem>>, %arg5: memref<1x128xf32, #tpu.memory_space<vmem>>, %arg6: memref<128x128xf32, #tpu.memory_space<vmem>>, %arg7: memref<1x128xf32, #tpu.memory_space<vmem>>, %arg8: memref<128x128xf32, #tpu.memory_space<vmem>>, %arg9: memref<1x128xf32, #tpu.memory_space<vmem>>, %arg10: memref<1x128xf32, #tpu.memory_space<vmem>>, %arg11: memref<1x128xf32, #tpu.memory_space<vmem>>, %arg12: memref<2x8x128xf32, #tpu.memory_space<vmem>>) attributes {dimension_semantics = [#tpu.dimension_semantics<parallel>], iteration_bounds = array<i64: 1>, scalar_prefetch = 0 : i64, scratch_operands = 0 : i64, tpu.core_type = #tpu.core_type<tc>, window_params = [{transform_indices = @transform_0, window_bounds = array<i64: 2, 8, 128>}, {pipeline_mode = #tpu.pipeline_mode<synchronous>, transform_indices = @transform_1, window_bounds = array<i64: 128, 128>}, {pipeline_mode = #tpu.pipeline_mode<synchronous>, transform_indices = @transform_2, window_bounds = array<i64: 1, 128>}, {pipeline_mode = #tpu.pipeline_mode<synchronous>, transform_indices = @transform_3, window_bounds = array<i64: 128, 128>}, {pipeline_mode = #tpu.pipeline_mode<synchronous>, transform_indices = @transform_4, window_bounds = array<i64: 1, 128>}, {pipeline_mode = #tpu.pipeline_mode<synchronous>, transform_indices = @transform_5, window_bounds = array<i64: 128, 128>}, {pipeline_mode = #tpu.pipeline_mode<synchronous>, transform_indices = @transform_6, window_bounds = array<i64: 1, 128>}, {pipeline_mode = #tpu.pipeline_mode<synchronous>, transform_indices = @transform_7, window_bounds = array<i64: 128, 128>}, {pipeline_mode = #tpu.pipeline_mode<synchronous>, transform_indices = @transform_8, window_bounds = array<i64: 1, 128>}, {pipeline_mode = #tpu.pipeline_mode<synchronous>, transform_indices = @transform_9, window_bounds = array<i64: 1, 128>}, {pipeline_mode = #tpu.pipeline_mode<synchronous>, transform_indices = @transform_10, window_bounds = array<i64: 1, 128>}, {transform_indices = @transform_11, window_bounds = array<i64: 2, 8, 128>}]} {
    %c0 = arith.constant 0 : index
    %c0_0 = arith.constant 0 : index
    %c0_1 = arith.constant 0 : index
    %0 = vector.load %arg1[%c0, %c0_0, %c0_1] : memref<2x8x128xf32, #tpu.memory_space<vmem>>, vector<2x8x128xf32>
    %1 = vector.shape_cast %0 : vector<2x8x128xf32> to vector<16x128xf32>
    %c0_2 = arith.constant 0 : index
    %c0_3 = arith.constant 0 : index
    %2 = vector.load %arg2[%c0_2, %c0_3] : memref<128x128xf32, #tpu.memory_space<vmem>>, vector<128x128xf32>
    %cst = arith.constant dense<0.000000e+00> : vector<16x128xf32>
    %3 = tpu.matmul %1, %2, %cst {dimension_numbers = #tpu.dot_dimension_numbers<[1], [0], [0], [1], [0, 0, 1, 1], [], []>} : vector<16x128xf32>, vector<128x128xf32>, vector<16x128xf32> -> vector<16x128xf32>
    %c0_4 = arith.constant 0 : index
    %c0_5 = arith.constant 0 : index
    %4 = vector.load %arg3[%c0_4, %c0_5] : memref<1x128xf32, #tpu.memory_space<vmem>>, vector<1x128xf32>
    %5 = vector.shape_cast %4 : vector<1x128xf32> to vector<128xf32>
    %6 = vector.shape_cast %5 : vector<128xf32> to vector<1x128xf32>
    %7 = vector.broadcast %6 : vector<1x128xf32> to vector<16x128xf32>
    %8 = arith.addf %3, %7 : vector<16x128xf32>
    %c0_6 = arith.constant 0 : index
    %c0_7 = arith.constant 0 : index
    %9 = vector.load %arg4[%c0_6, %c0_7] : memref<128x128xf32, #tpu.memory_space<vmem>>, vector<128x128xf32>
    %cst_8 = arith.constant dense<0.000000e+00> : vector<16x128xf32>
    %10 = tpu.matmul %1, %9, %cst_8 {dimension_numbers = #tpu.dot_dimension_numbers<[1], [0], [0], [1], [0, 0, 1, 1], [], []>} : vector<16x128xf32>, vector<128x128xf32>, vector<16x128xf32> -> vector<16x128xf32>
    %c0_9 = arith.constant 0 : index
    %c0_10 = arith.constant 0 : index
    %11 = vector.load %arg5[%c0_9, %c0_10] : memref<1x128xf32, #tpu.memory_space<vmem>>, vector<1x128xf32>
    %12 = vector.shape_cast %11 : vector<1x128xf32> to vector<128xf32>
    %13 = vector.shape_cast %12 : vector<128xf32> to vector<1x128xf32>
    %14 = vector.broadcast %13 : vector<1x128xf32> to vector<16x128xf32>
    %15 = arith.addf %10, %14 : vector<16x128xf32>
    %c0_11 = arith.constant 0 : index
    %c0_12 = arith.constant 0 : index
    %16 = vector.load %arg6[%c0_11, %c0_12] : memref<128x128xf32, #tpu.memory_space<vmem>>, vector<128x128xf32>
    %cst_13 = arith.constant dense<0.000000e+00> : vector<16x128xf32>
    %17 = tpu.matmul %1, %16, %cst_13 {dimension_numbers = #tpu.dot_dimension_numbers<[1], [0], [0], [1], [0, 0, 1, 1], [], []>} : vector<16x128xf32>, vector<128x128xf32>, vector<16x128xf32> -> vector<16x128xf32>
    %c0_14 = arith.constant 0 : index
    %c0_15 = arith.constant 0 : index
    %18 = vector.load %arg7[%c0_14, %c0_15] : memref<1x128xf32, #tpu.memory_space<vmem>>, vector<1x128xf32>
    %19 = vector.shape_cast %18 : vector<1x128xf32> to vector<128xf32>
    %20 = vector.shape_cast %19 : vector<128xf32> to vector<1x128xf32>
    %21 = vector.broadcast %20 : vector<1x128xf32> to vector<16x128xf32>
    %22 = arith.addf %17, %21 : vector<16x128xf32>
    %cst_16 = arith.constant 0.353553385 : f32
    %23 = vector.broadcast %cst_16 : f32 to vector<16x128xf32>
    %24 = arith.mulf %8, %23 : vector<16x128xf32>
    %25 = vector.shape_cast %24 : vector<16x128xf32> to vector<2x8x128xf32>
    %26 = vector.shape_cast %15 : vector<16x128xf32> to vector<2x8x128xf32>
    %27 = vector.shape_cast %22 : vector<16x128xf32> to vector<2x8x128xf32>
    %28 = tpu.iota {dimensions = array<i32: 0>} : vector<8x8xi32>
    %29 = tpu.iota {dimensions = array<i32: 1>} : vector<8x8xi32>
    %30 = arith.cmpi slt, %29, %28 : vector<8x8xi32>
    %cst_17 = arith.constant 0.000000e+00 : f32
    %cst_18 = arith.constant -1.000000e+30 : f32
    %31 = vector.broadcast %cst_17 : f32 to vector<8x8xf32>
    %32 = vector.broadcast %cst_18 : f32 to vector<8x8xf32>
    %33 = arith.select %30, %31, %32 : vector<8x8xi1>, vector<8x8xf32>
    %34 = vector.shape_cast %33 : vector<8x8xf32> to vector<1x8x8xf32>
    %35 = vector.broadcast %34 : vector<1x8x8xf32> to vector<2x8x8xf32>
    %36 = vector.extract_strided_slice %25 {offsets = [0, 0, 0], sizes = [2, 8, 32], strides = [1, 1, 1]} : vector<2x8x128xf32> to vector<2x8x32xf32>
    %37 = vector.extract_strided_slice %26 {offsets = [0, 0, 0], sizes = [2, 8, 32], strides = [1, 1, 1]} : vector<2x8x128xf32> to vector<2x8x32xf32>
    %38 = vector.extract_strided_slice %27 {offsets = [0, 0, 0], sizes = [2, 8, 32], strides = [1, 1, 1]} : vector<2x8x128xf32> to vector<2x8x32xf32>
    "tpu.trace_start"() <{level = 10 : i32, message = "bid,bjd->bij"}> : () -> ()
    %cst_19 = arith.constant dense<0.000000e+00> : vector<2x8x8xf32>
    %39 = tpu.matmul %36, %37, %cst_19 {dimension_numbers = #tpu.dot_dimension_numbers<[2], [2], [1], [1], [0, 0, 0, 1, 1, 1], [0], [0]>} : vector<2x8x32xf32>, vector<2x8x32xf32>, vector<2x8x8xf32> -> vector<2x8x8xf32>
    "tpu.trace_stop"() : () -> ()
    %40 = arith.addf %39, %35 : vector<2x8x8xf32>
    %cst_20 = arith.constant dense<0xFF800000> : vector<2x8xf32>
    %41 = vector.multi_reduction <maximumf>, %40, %cst_20 [2] : vector<2x8x8xf32> to vector<2x8xf32>
    %42 = vector.shape_cast %41 : vector<2x8xf32> to vector<2x8x1xf32>
    %cst_21 = arith.constant 0.000000e+00 : f32
    %43 = vector.broadcast %cst_21 : f32 to vector<2x8x1xf32>
    %44 = arith.maximumf %42, %43 : vector<2x8x1xf32>
    %45 = vector.broadcast %44 : vector<2x8x1xf32> to vector<2x8x8xf32>
    %46 = arith.subf %40, %45 : vector<2x8x8xf32>
    %47 = math.exp %46 : vector<2x8x8xf32>
    %cst_22 = arith.constant dense<0.000000e+00> : vector<2x8xf32>
    %48 = vector.multi_reduction <add>, %47, %cst_22 [2] : vector<2x8x8xf32> to vector<2x8xf32>
    %49 = vector.shape_cast %48 : vector<2x8xf32> to vector<2x8x1xf32>
    %cst_23 = arith.constant 0.000000e+00 : f32
    %50 = vector.broadcast %cst_23 : f32 to vector<2x8x1xf32>
    %51 = arith.subf %50, %44 : vector<2x8x1xf32>
    %52 = math.exp %51 : vector<2x8x1xf32>
    %53 = arith.addf %49, %52 : vector<2x8x1xf32>
    "tpu.trace_start"() <{level = 10 : i32, message = "bij,bjd->bid"}> : () -> ()
    %cst_24 = arith.constant dense<0.000000e+00> : vector<2x8x32xf32>
    %54 = tpu.matmul %47, %38, %cst_24 {dimension_numbers = #tpu.dot_dimension_numbers<[2], [1], [1], [2], [0, 0, 0, 1, 1, 2], [0], [0]>} : vector<2x8x8xf32>, vector<2x8x32xf32>, vector<2x8x32xf32> -> vector<2x8x32xf32>
    "tpu.trace_stop"() : () -> ()
    %55 = vector.broadcast %53 : vector<2x8x1xf32> to vector<2x8x32xf32>
    %56 = arith.divf %54, %55 : vector<2x8x32xf32>
    %57 = vector.shape_cast %56 : vector<2x8x32xf32> to vector<16x32xf32>
    %58 = vector.extract_strided_slice %25 {offsets = [0, 0, 32], sizes = [2, 8, 32], strides = [1, 1, 1]} : vector<2x8x128xf32> to vector<2x8x32xf32>
    %59 = vector.extract_strided_slice %26 {offsets = [0, 0, 32], sizes = [2, 8, 32], strides = [1, 1, 1]} : vector<2x8x128xf32> to vector<2x8x32xf32>
    %60 = vector.extract_strided_slice %27 {offsets = [0, 0, 32], sizes = [2, 8, 32], strides = [1, 1, 1]} : vector<2x8x128xf32> to vector<2x8x32xf32>
    "tpu.trace_start"() <{level = 10 : i32, message = "bid,bjd->bij"}> : () -> ()
    %cst_25 = arith.constant dense<0.000000e+00> : vector<2x8x8xf32>
    %61 = tpu.matmul %58, %59, %cst_25 {dimension_numbers = #tpu.dot_dimension_numbers<[2], [2], [1], [1], [0, 0, 0, 1, 1, 1], [0], [0]>} : vector<2x8x32xf32>, vector<2x8x32xf32>, vector<2x8x8xf32> -> vector<2x8x8xf32>
    "tpu.trace_stop"() : () -> ()
    %62 = arith.addf %61, %35 : vector<2x8x8xf32>
    %cst_26 = arith.constant dense<0xFF800000> : vector<2x8xf32>
    %63 = vector.multi_reduction <maximumf>, %62, %cst_26 [2] : vector<2x8x8xf32> to vector<2x8xf32>
    %64 = vector.shape_cast %63 : vector<2x8xf32> to vector<2x8x1xf32>
    %cst_27 = arith.constant 0.000000e+00 : f32
    %65 = vector.broadcast %cst_27 : f32 to vector<2x8x1xf32>
    %66 = arith.maximumf %64, %65 : vector<2x8x1xf32>
    %67 = vector.broadcast %66 : vector<2x8x1xf32> to vector<2x8x8xf32>
    %68 = arith.subf %62, %67 : vector<2x8x8xf32>
    %69 = math.exp %68 : vector<2x8x8xf32>
    %cst_28 = arith.constant dense<0.000000e+00> : vector<2x8xf32>
    %70 = vector.multi_reduction <add>, %69, %cst_28 [2] : vector<2x8x8xf32> to vector<2x8xf32>
    %71 = vector.shape_cast %70 : vector<2x8xf32> to vector<2x8x1xf32>
    %cst_29 = arith.constant 0.000000e+00 : f32
    %72 = vector.broadcast %cst_29 : f32 to vector<2x8x1xf32>
    %73 = arith.subf %72, %66 : vector<2x8x1xf32>
    %74 = math.exp %73 : vector<2x8x1xf32>
    %75 = arith.addf %71, %74 : vector<2x8x1xf32>
    "tpu.trace_start"() <{level = 10 : i32, message = "bij,bjd->bid"}> : () -> ()
    %cst_30 = arith.constant dense<0.000000e+00> : vector<2x8x32xf32>
    %76 = tpu.matmul %69, %60, %cst_30 {dimension_numbers = #tpu.dot_dimension_numbers<[2], [1], [1], [2], [0, 0, 0, 1, 1, 2], [0], [0]>} : vector<2x8x8xf32>, vector<2x8x32xf32>, vector<2x8x32xf32> -> vector<2x8x32xf32>
    "tpu.trace_stop"() : () -> ()
    %77 = vector.broadcast %75 : vector<2x8x1xf32> to vector<2x8x32xf32>
    %78 = arith.divf %76, %77 : vector<2x8x32xf32>
    %79 = vector.shape_cast %78 : vector<2x8x32xf32> to vector<16x32xf32>
    %80 = vector.extract_strided_slice %25 {offsets = [0, 0, 64], sizes = [2, 8, 32], strides = [1, 1, 1]} : vector<2x8x128xf32> to vector<2x8x32xf32>
    %81 = vector.extract_strided_slice %26 {offsets = [0, 0, 64], sizes = [2, 8, 32], strides = [1, 1, 1]} : vector<2x8x128xf32> to vector<2x8x32xf32>
    %82 = vector.extract_strided_slice %27 {offsets = [0, 0, 64], sizes = [2, 8, 32], strides = [1, 1, 1]} : vector<2x8x128xf32> to vector<2x8x32xf32>
    "tpu.trace_start"() <{level = 10 : i32, message = "bid,bjd->bij"}> : () -> ()
    %cst_31 = arith.constant dense<0.000000e+00> : vector<2x8x8xf32>
    %83 = tpu.matmul %80, %81, %cst_31 {dimension_numbers = #tpu.dot_dimension_numbers<[2], [2], [1], [1], [0, 0, 0, 1, 1, 1], [0], [0]>} : vector<2x8x32xf32>, vector<2x8x32xf32>, vector<2x8x8xf32> -> vector<2x8x8xf32>
    "tpu.trace_stop"() : () -> ()
    %84 = arith.addf %83, %35 : vector<2x8x8xf32>
    %cst_32 = arith.constant dense<0xFF800000> : vector<2x8xf32>
    %85 = vector.multi_reduction <maximumf>, %84, %cst_32 [2] : vector<2x8x8xf32> to vector<2x8xf32>
    %86 = vector.shape_cast %85 : vector<2x8xf32> to vector<2x8x1xf32>
    %cst_33 = arith.constant 0.000000e+00 : f32
    %87 = vector.broadcast %cst_33 : f32 to vector<2x8x1xf32>
    %88 = arith.maximumf %86, %87 : vector<2x8x1xf32>
    %89 = vector.broadcast %88 : vector<2x8x1xf32> to vector<2x8x8xf32>
    %90 = arith.subf %84, %89 : vector<2x8x8xf32>
    %91 = math.exp %90 : vector<2x8x8xf32>
    %cst_34 = arith.constant dense<0.000000e+00> : vector<2x8xf32>
    %92 = vector.multi_reduction <add>, %91, %cst_34 [2] : vector<2x8x8xf32> to vector<2x8xf32>
    %93 = vector.shape_cast %92 : vector<2x8xf32> to vector<2x8x1xf32>
    %cst_35 = arith.constant 0.000000e+00 : f32
    %94 = vector.broadcast %cst_35 : f32 to vector<2x8x1xf32>
    %95 = arith.subf %94, %88 : vector<2x8x1xf32>
    %96 = math.exp %95 : vector<2x8x1xf32>
    %97 = arith.addf %93, %96 : vector<2x8x1xf32>
    "tpu.trace_start"() <{level = 10 : i32, message = "bij,bjd->bid"}> : () -> ()
    %cst_36 = arith.constant dense<0.000000e+00> : vector<2x8x32xf32>
    %98 = tpu.matmul %91, %82, %cst_36 {dimension_numbers = #tpu.dot_dimension_numbers<[2], [1], [1], [2], [0, 0, 0, 1, 1, 2], [0], [0]>} : vector<2x8x8xf32>, vector<2x8x32xf32>, vector<2x8x32xf32> -> vector<2x8x32xf32>
    "tpu.trace_stop"() : () -> ()
    %99 = vector.broadcast %97 : vector<2x8x1xf32> to vector<2x8x32xf32>
    %100 = arith.divf %98, %99 : vector<2x8x32xf32>
    %101 = vector.shape_cast %100 : vector<2x8x32xf32> to vector<16x32xf32>
    %102 = vector.extract_strided_slice %25 {offsets = [0, 0, 96], sizes = [2, 8, 32], strides = [1, 1, 1]} : vector<2x8x128xf32> to vector<2x8x32xf32>
    %103 = vector.extract_strided_slice %26 {offsets = [0, 0, 96], sizes = [2, 8, 32], strides = [1, 1, 1]} : vector<2x8x128xf32> to vector<2x8x32xf32>
    %104 = vector.extract_strided_slice %27 {offsets = [0, 0, 96], sizes = [2, 8, 32], strides = [1, 1, 1]} : vector<2x8x128xf32> to vector<2x8x32xf32>
    "tpu.trace_start"() <{level = 10 : i32, message = "bid,bjd->bij"}> : () -> ()
    %cst_37 = arith.constant dense<0.000000e+00> : vector<2x8x8xf32>
    %105 = tpu.matmul %102, %103, %cst_37 {dimension_numbers = #tpu.dot_dimension_numbers<[2], [2], [1], [1], [0, 0, 0, 1, 1, 1], [0], [0]>} : vector<2x8x32xf32>, vector<2x8x32xf32>, vector<2x8x8xf32> -> vector<2x8x8xf32>
    "tpu.trace_stop"() : () -> ()
    %106 = arith.addf %105, %35 : vector<2x8x8xf32>
    %cst_38 = arith.constant dense<0xFF800000> : vector<2x8xf32>
    %107 = vector.multi_reduction <maximumf>, %106, %cst_38 [2] : vector<2x8x8xf32> to vector<2x8xf32>
    %108 = vector.shape_cast %107 : vector<2x8xf32> to vector<2x8x1xf32>
    %cst_39 = arith.constant 0.000000e+00 : f32
    %109 = vector.broadcast %cst_39 : f32 to vector<2x8x1xf32>
    %110 = arith.maximumf %108, %109 : vector<2x8x1xf32>
    %111 = vector.broadcast %110 : vector<2x8x1xf32> to vector<2x8x8xf32>
    %112 = arith.subf %106, %111 : vector<2x8x8xf32>
    %113 = math.exp %112 : vector<2x8x8xf32>
    %cst_40 = arith.constant dense<0.000000e+00> : vector<2x8xf32>
    %114 = vector.multi_reduction <add>, %113, %cst_40 [2] : vector<2x8x8xf32> to vector<2x8xf32>
    %115 = vector.shape_cast %114 : vector<2x8xf32> to vector<2x8x1xf32>
    %cst_41 = arith.constant 0.000000e+00 : f32
    %116 = vector.broadcast %cst_41 : f32 to vector<2x8x1xf32>
    %117 = arith.subf %116, %110 : vector<2x8x1xf32>
    %118 = math.exp %117 : vector<2x8x1xf32>
    %119 = arith.addf %115, %118 : vector<2x8x1xf32>
    "tpu.trace_start"() <{level = 10 : i32, message = "bij,bjd->bid"}> : () -> ()
    %cst_42 = arith.constant dense<0.000000e+00> : vector<2x8x32xf32>
    %120 = tpu.matmul %113, %104, %cst_42 {dimension_numbers = #tpu.dot_dimension_numbers<[2], [1], [1], [2], [0, 0, 0, 1, 1, 2], [0], [0]>} : vector<2x8x8xf32>, vector<2x8x32xf32>, vector<2x8x32xf32> -> vector<2x8x32xf32>
    "tpu.trace_stop"() : () -> ()
    %121 = vector.broadcast %119 : vector<2x8x1xf32> to vector<2x8x32xf32>
    %122 = arith.divf %120, %121 : vector<2x8x32xf32>
    %123 = vector.shape_cast %122 : vector<2x8x32xf32> to vector<16x32xf32>
    %124 = tpu.concatenate %57, %79, %101, %123 in 1 : vector<16x32xf32>, vector<16x32xf32>, vector<16x32xf32>, vector<16x32xf32> -> vector<16x128xf32>
    %c0_43 = arith.constant 0 : index
    %c0_44 = arith.constant 0 : index
    %125 = vector.load %arg8[%c0_43, %c0_44] : memref<128x128xf32, #tpu.memory_space<vmem>>, vector<128x128xf32>
    %cst_45 = arith.constant dense<0.000000e+00> : vector<16x128xf32>
    %126 = tpu.matmul %124, %125, %cst_45 {dimension_numbers = #tpu.dot_dimension_numbers<[1], [0], [0], [1], [0, 0, 1, 1], [], []>} : vector<16x128xf32>, vector<128x128xf32>, vector<16x128xf32> -> vector<16x128xf32>
    %c0_46 = arith.constant 0 : index
    %c0_47 = arith.constant 0 : index
    %127 = vector.load %arg9[%c0_46, %c0_47] : memref<1x128xf32, #tpu.memory_space<vmem>>, vector<1x128xf32>
    %128 = vector.shape_cast %127 : vector<1x128xf32> to vector<128xf32>
    %129 = vector.shape_cast %128 : vector<128xf32> to vector<1x128xf32>
    %130 = vector.broadcast %129 : vector<1x128xf32> to vector<16x128xf32>
    %131 = arith.addf %126, %130 : vector<16x128xf32>
    %132 = arith.addf %131, %1 : vector<16x128xf32>
    %cst_48 = arith.constant dense<0.000000e+00> : vector<16xf32>
    %133 = vector.multi_reduction <add>, %132, %cst_48 [1] : vector<16x128xf32> to vector<16xf32>
    %134 = vector.shape_cast %133 : vector<16xf32> to vector<16x1xf32>
    %cst_49 = arith.constant 6.250000e-02 : f32
    %135 = vector.broadcast %cst_49 : f32 to vector<16x1xf32>
    %136 = arith.mulf %134, %135 : vector<16x1xf32>
    %137 = tpu.iota {dimensions = array<i32: 1>} : vector<1x128xi32>
    %c16_i32 = arith.constant 16 : i32
    %138 = vector.broadcast %c16_i32 : i32 to vector<1x128xi32>
    %139 = arith.cmpi slt, %137, %138 : vector<1x128xi32>
    %140 = arith.extui %139 : vector<1x128xi1> to vector<1x128xi32>
    %141 = arith.sitofp %140 : vector<1x128xi32> to vector<1x128xf32>
    %142 = vector.broadcast %136 : vector<16x1xf32> to vector<16x128xf32>
    %143 = arith.subf %132, %142 : vector<16x128xf32>
    %144 = vector.broadcast %141 : vector<1x128xf32> to vector<16x128xf32>
    %145 = arith.mulf %143, %144 : vector<16x128xf32>
    %146 = arith.mulf %145, %145 : vector<16x128xf32>
    %cst_50 = arith.constant dense<0.000000e+00> : vector<16xf32>
    %147 = vector.multi_reduction <add>, %146, %cst_50 [1] : vector<16x128xf32> to vector<16xf32>
    %148 = vector.shape_cast %147 : vector<16xf32> to vector<16x1xf32>
    %cst_51 = arith.constant 6.250000e-02 : f32
    %149 = vector.broadcast %cst_51 : f32 to vector<16x1xf32>
    %150 = arith.mulf %148, %149 : vector<16x1xf32>
    %cst_52 = arith.constant 9.99999974E-6 : f32
    %151 = vector.broadcast %cst_52 : f32 to vector<16x1xf32>
    %152 = arith.addf %150, %151 : vector<16x1xf32>
    %153 = math.rsqrt %152 : vector<16x1xf32>
    %154 = vector.broadcast %153 : vector<16x1xf32> to vector<16x128xf32>
    %155 = arith.mulf %143, %154 : vector<16x128xf32>
    %c0_53 = arith.constant 0 : index
    %c0_54 = arith.constant 0 : index
    %156 = vector.load %arg10[%c0_53, %c0_54] : memref<1x128xf32, #tpu.memory_space<vmem>>, vector<1x128xf32>
    %157 = vector.shape_cast %156 : vector<1x128xf32> to vector<128xf32>
    %158 = vector.shape_cast %157 : vector<128xf32> to vector<1x128xf32>
    %159 = vector.broadcast %158 : vector<1x128xf32> to vector<16x128xf32>
    %160 = arith.mulf %155, %159 : vector<16x128xf32>
    %c0_55 = arith.constant 0 : index
    %c0_56 = arith.constant 0 : index
    %161 = vector.load %arg11[%c0_55, %c0_56] : memref<1x128xf32, #tpu.memory_space<vmem>>, vector<1x128xf32>
    %162 = vector.shape_cast %161 : vector<1x128xf32> to vector<128xf32>
    %163 = vector.shape_cast %162 : vector<128xf32> to vector<1x128xf32>
    %164 = vector.broadcast %163 : vector<1x128xf32> to vector<16x128xf32>
    %165 = arith.addf %160, %164 : vector<16x128xf32>
    %166 = vector.shape_cast %165 : vector<16x128xf32> to vector<2x8x128xf32>
    %c0_57 = arith.constant 0 : index
    %c0_58 = arith.constant 0 : index
    %c0_59 = arith.constant 0 : index
    %167 = vector.load %arg12[%c0_57, %c0_58, %c0_59] : memref<2x8x128xf32, #tpu.memory_space<vmem>>, vector<2x8x128xf32>
    tpu.vector_store %arg12[%c0_57, %c0_58, %c0_59], %166 {strides = array<i32>} : memref<2x8x128xf32, #tpu.memory_space<vmem>>, vector<2x8x128xf32>,
    return
  }
  func.func @transform_0(%arg0: i32) -> (i32, i32, i32) {
    %c0_i32 = arith.constant 0 : i32
    %c0_i32_0 = arith.constant 0 : i32
    %c0_i32_1 = arith.constant 0 : i32
    return %arg0, %c0_i32, %c0_i32_0 : i32, i32, i32
  }
  func.func @transform_1(%arg0: i32) -> (i32, i32) {
    %c0_i32 = arith.constant 0 : i32
    %c0_i32_0 = arith.constant 0 : i32
    %c0_i32_1 = arith.constant 0 : i32
    return %c0_i32, %c0_i32_0 : i32, i32
  }
  func.func @transform_2(%arg0: i32) -> (i32, i32) {
    %c0_i32 = arith.constant 0 : i32
    %c0_i32_0 = arith.constant 0 : i32
    %c0_i32_1 = arith.constant 0 : i32
    return %c0_i32, %c0_i32_0 : i32, i32
  }
  func.func @transform_3(%arg0: i32) -> (i32, i32) {
    %c0_i32 = arith.constant 0 : i32
    %c0_i32_0 = arith.constant 0 : i32
    %c0_i32_1 = arith.constant 0 : i32
    return %c0_i32, %c0_i32_0 : i32, i32
  }
  func.func @transform_4(%arg0: i32) -> (i32, i32) {
    %c0_i32 = arith.constant 0 : i32
    %c0_i32_0 = arith.constant 0 : i32
    %c0_i32_1 = arith.constant 0 : i32
    return %c0_i32, %c0_i32_0 : i32, i32
  }
  func.func @transform_5(%arg0: i32) -> (i32, i32) {
    %c0_i32 = arith.constant 0 : i32
    %c0_i32_0 = arith.constant 0 : i32
    %c0_i32_1 = arith.constant 0 : i32
    return %c0_i32, %c0_i32_0 : i32, i32
  }
  func.func @transform_6(%arg0: i32) -> (i32, i32) {
    %c0_i32 = arith.constant 0 : i32
    %c0_i32_0 = arith.constant 0 : i32
    %c0_i32_1 = arith.constant 0 : i32
    return %c0_i32, %c0_i32_0 : i32, i32
  }
  func.func @transform_7(%arg0: i32) -> (i32, i32) {
    %c0_i32 = arith.constant 0 : i32
    %c0_i32_0 = arith.constant 0 : i32
    %c0_i32_1 = arith.constant 0 : i32
    return %c0_i32, %c0_i32_0 : i32, i32
  }
  func.func @transform_8(%arg0: i32) -> (i32, i32) {
    %c0_i32 = arith.constant 0 : i32
    %c0_i32_0 = arith.constant 0 : i32
    %c0_i32_1 = arith.constant 0 : i32
    return %c0_i32, %c0_i32_0 : i32, i32
  }
  func.func @transform_9(%arg0: i32) -> (i32, i32) {
    %c0_i32 = arith.constant 0 : i32
    %c0_i32_0 = arith.constant 0 : i32
    %c0_i32_1 = arith.constant 0 : i32
    return %c0_i32, %c0_i32_0 : i32, i32
  }
  func.func @transform_10(%arg0: i32) -> (i32, i32) {
    %c0_i32 = arith.constant 0 : i32
    %c0_i32_0 = arith.constant 0 : i32
    %c0_i32_1 = arith.constant 0 : i32
    return %c0_i32, %c0_i32_0 : i32, i32
  }
  func.func @transform_11(%arg0: i32) -> (i32, i32, i32) {
    %c0_i32 = arith.constant 0 : i32
    %c0_i32_0 = arith.constant 0 : i32
    %c0_i32_1 = arith.constant 0 : i32
    return %arg0, %c0_i32, %c0_i32_0 : i32, i32, i32
  }
}

module attributes {stable_mosaic.version = 11 : i64} {
  func.func @kernel(%arg0: i32, %arg1: memref<2x8x128xf32, #tpu.memory_space<vmem>>, %arg2: memref<128x128xf32, #tpu.memory_space<vmem>>, %arg3: memref<1x128xf32, #tpu.memory_space<vmem>>, %arg4: memref<128x128xf32, #tpu.memory_space<vmem>>, %arg5: memref<1x128xf32, #tpu.memory_space<vmem>>, %arg6: memref<128x128xf32, #tpu.memory_space<vmem>>, %arg7: memref<1x128xf32, #tpu.memory_space<vmem>>, %arg8: memref<128x128xf32, #tpu.memory_space<vmem>>, %arg9: memref<1x128xf32, #tpu.memory_space<vmem>>, %arg10: memref<1x128xf32, #tpu.memory_space<vmem>>, %arg11: memref<1x128xf32, #tpu.memory_space<vmem>>, %arg12: memref<2x8x128xf32, #tpu.memory_space<vmem>>) attributes {dimension_semantics = [#tpu.dimension_semantics<parallel>], iteration_bounds = array<i64: 1>, scalar_prefetch = 0 : i64, scratch_operands = 0 : i64, tpu.core_type = #tpu.core_type<tc>, window_params = [{transform_indices = @transform_0, window_bounds = array<i64: 2, 8, 128>}, {pipeline_mode = #tpu.pipeline_mode<synchronous>, transform_indices = @transform_1, window_bounds = array<i64: 128, 128>}, {pipeline_mode = #tpu.pipeline_mode<synchronous>, transform_indices = @transform_2, window_bounds = array<i64: 1, 128>}, {pipeline_mode = #tpu.pipeline_mode<synchronous>, transform_indices = @transform_3, window_bounds = array<i64: 128, 128>}, {pipeline_mode = #tpu.pipeline_mode<synchronous>, transform_indices = @transform_4, window_bounds = array<i64: 1, 128>}, {pipeline_mode = #tpu.pipeline_mode<synchronous>, transform_indices = @transform_5, window_bounds = array<i64: 128, 128>}, {pipeline_mode = #tpu.pipeline_mode<synchronous>, transform_indices = @transform_6, window_bounds = array<i64: 1, 128>}, {pipeline_mode = #tpu.pipeline_mode<synchronous>, transform_indices = @transform_7, window_bounds = array<i64: 128, 128>}, {pipeline_mode = #tpu.pipeline_mode<synchronous>, transform_indices = @transform_8, window_bounds = array<i64: 1, 128>}, {pipeline_mode = #tpu.pipeline_mode<synchronous>, transform_indices = @transform_9, window_bounds = array<i64: 1, 128>}, {pipeline_mode = #tpu.pipeline_mode<synchronous>, transform_indices = @transform_10, window_bounds = array<i64: 1, 128>}, {transform_indices = @transform_11, window_bounds = array<i64: 2, 8, 128>}]} {
    %c0 = arith.constant 0 : index
    %c0_0 = arith.constant 0 : index
    %c0_1 = arith.constant 0 : index
    %0 = vector.load %arg1[%c0, %c0_0, %c0_1] : memref<2x8x128xf32, #tpu.memory_space<vmem>>, vector<2x8x128xf32>
    %1 = vector.shape_cast %0 : vector<2x8x128xf32> to vector<16x128xf32>
    %c0_2 = arith.constant 0 : index
    %c0_3 = arith.constant 0 : index
    %2 = vector.load %arg2[%c0_2, %c0_3] : memref<128x128xf32, #tpu.memory_space<vmem>>, vector<128x128xf32>
    %cst = arith.constant dense<0.000000e+00> : vector<16x128xf32>
    %3 = tpu.matmul %1, %2, %cst {dimension_numbers = #tpu.dot_dimension_numbers<[1], [0], [0], [1], [0, 0, 1, 1], [], []>} : vector<16x128xf32>, vector<128x128xf32>, vector<16x128xf32> -> vector<16x128xf32>
    %c0_4 = arith.constant 0 : index
    %c0_5 = arith.constant 0 : index
    %4 = vector.load %arg3[%c0_4, %c0_5] : memref<1x128xf32, #tpu.memory_space<vmem>>, vector<1x128xf32>
    %5 = vector.shape_cast %4 : vector<1x128xf32> to vector<128xf32>
    %6 = vector.shape_cast %5 : vector<128xf32> to vector<1x128xf32>
    %7 = vector.broadcast %6 : vector<1x128xf32> to vector<16x128xf32>
    %8 = arith.addf %3, %7 : vector<16x128xf32>
    %c0_6 = arith.constant 0 : index
    %c0_7 = arith.constant 0 : index
    %9 = vector.load %arg4[%c0_6, %c0_7] : memref<128x128xf32, #tpu.memory_space<vmem>>, vector<128x128xf32>
    %cst_8 = arith.constant dense<0.000000e+00> : vector<16x128xf32>
    %10 = tpu.matmul %1, %9, %cst_8 {dimension_numbers = #tpu.dot_dimension_numbers<[1], [0], [0], [1], [0, 0, 1, 1], [], []>} : vector<16x128xf32>, vector<128x128xf32>, vector<16x128xf32> -> vector<16x128xf32>
    %c0_9 = arith.constant 0 : index
    %c0_10 = arith.constant 0 : index
    %11 = vector.load %arg5[%c0_9, %c0_10] : memref<1x128xf32, #tpu.memory_space<vmem>>, vector<1x128xf32>
    %12 = vector.shape_cast %11 : vector<1x128xf32> to vector<128xf32>
    %13 = vector.shape_cast %12 : vector<128xf32> to vector<1x128xf32>
    %14 = vector.broadcast %13 : vector<1x128xf32> to vector<16x128xf32>
    %15 = arith.addf %10, %14 : vector<16x128xf32>
    %c0_11 = arith.constant 0 : index
    %c0_12 = arith.constant 0 : index
    %16 = vector.load %arg6[%c0_11, %c0_12] : memref<128x128xf32, #tpu.memory_space<vmem>>, vector<128x128xf32>
    %cst_13 = arith.constant dense<0.000000e+00> : vector<16x128xf32>
    %17 = tpu.matmul %1, %16, %cst_13 {dimension_numbers = #tpu.dot_dimension_numbers<[1], [0], [0], [1], [0, 0, 1, 1], [], []>} : vector<16x128xf32>, vector<128x128xf32>, vector<16x128xf32> -> vector<16x128xf32>
    %c0_14 = arith.constant 0 : index
    %c0_15 = arith.constant 0 : index
    %18 = vector.load %arg7[%c0_14, %c0_15] : memref<1x128xf32, #tpu.memory_space<vmem>>, vector<1x128xf32>
    %19 = vector.shape_cast %18 : vector<1x128xf32> to vector<128xf32>
    %20 = vector.shape_cast %19 : vector<128xf32> to vector<1x128xf32>
    %21 = vector.broadcast %20 : vector<1x128xf32> to vector<16x128xf32>
    %22 = arith.addf %17, %21 : vector<16x128xf32>
    %cst_16 = arith.constant 0.353553385 : f32
    %23 = vector.broadcast %cst_16 : f32 to vector<16x128xf32>
    %24 = arith.mulf %8, %23 : vector<16x128xf32>
    %25 = vector.shape_cast %24 : vector<16x128xf32> to vector<2x8x128xf32>
    %26 = vector.shape_cast %15 : vector<16x128xf32> to vector<2x8x128xf32>
    %27 = vector.shape_cast %22 : vector<16x128xf32> to vector<2x8x128xf32>
    %28 = tpu.iota {dimensions = array<i32: 0>} : vector<8x8xi32>
    %29 = tpu.iota {dimensions = array<i32: 1>} : vector<8x8xi32>
    %30 = arith.cmpi slt, %29, %28 : vector<8x8xi32>
    %cst_17 = arith.constant 0.000000e+00 : f32
    %cst_18 = arith.constant -1.000000e+30 : f32
    %31 = vector.broadcast %cst_17 : f32 to vector<8x8xf32>
    %32 = vector.broadcast %cst_18 : f32 to vector<8x8xf32>
    %33 = arith.select %30, %31, %32 : vector<8x8xi1>, vector<8x8xf32>
    %34 = vector.shape_cast %33 : vector<8x8xf32> to vector<1x8x8xf32>
    %35 = vector.broadcast %34 : vector<1x8x8xf32> to vector<2x8x8xf32>
    %36 = vector.extract_strided_slice %25 {offsets = [0, 0, 0], sizes = [2, 8, 32], strides = [1, 1, 1]} : vector<2x8x128xf32> to vector<2x8x32xf32>
    %37 = vector.extract_strided_slice %26 {offsets = [0, 0, 0], sizes = [2, 8, 32], strides = [1, 1, 1]} : vector<2x8x128xf32> to vector<2x8x32xf32>
    %38 = vector.extract_strided_slice %27 {offsets = [0, 0, 0], sizes = [2, 8, 32], strides = [1, 1, 1]} : vector<2x8x128xf32> to vector<2x8x32xf32>
    "tpu.trace_start"() <{level = 10 : i32, message = "bid,bjd->bij"}> : () -> ()
    %cst_19 = arith.constant dense<0.000000e+00> : vector<2x8x8xf32>
    %39 = tpu.matmul %36, %37, %cst_19 {dimension_numbers = #tpu.dot_dimension_numbers<[2], [2], [1], [1], [0, 0, 0, 1, 1, 1], [0], [0]>} : vector<2x8x32xf32>, vector<2x8x32xf32>, vector<2x8x8xf32> -> vector<2x8x8xf32>
    "tpu.trace_stop"() : () -> ()
    %40 = arith.addf %39, %35 : vector<2x8x8xf32>
    %cst_20 = arith.constant dense<0xFF800000> : vector<2x8xf32>
    %41 = vector.multi_reduction <maximumf>, %40, %cst_20 [2] : vector<2x8x8xf32> to vector<2x8xf32>
    %42 = vector.shape_cast %41 : vector<2x8xf32> to vector<2x8x1xf32>
    %cst_21 = arith.constant 0.000000e+00 : f32
    %43 = vector.broadcast %cst_21 : f32 to vector<2x8x1xf32>
    %44 = arith.maximumf %42, %43 : vector<2x8x1xf32>
    %45 = vector.broadcast %44 : vector<2x8x1xf32> to vector<2x8x8xf32>
    %46 = arith.subf %40, %45 : vector<2x8x8xf32>
    %47 = math.exp %46 : vector<2x8x8xf32>
    %cst_22 = arith.constant dense<0.000000e+00> : vector<2x8xf32>
    %48 = vector.multi_reduction <add>, %47, %cst_22 [2] : vector<2x8x8xf32> to vector<2x8xf32>
    %49 = vector.shape_cast %48 : vector<2x8xf32> to vector<2x8x1xf32>
    %cst_23 = arith.constant 0.000000e+00 : f32
    %50 = vector.broadcast %cst_23 : f32 to vector<2x8x1xf32>
    %51 = arith.subf %50, %44 : vector<2x8x1xf32>
    %52 = math.exp %51 : vector<2x8x1xf32>
    %53 = arith.addf %49, %52 : vector<2x8x1xf32>
    "tpu.trace_start"() <{level = 10 : i32, message = "bij,bjd->bid"}> : () -> ()
    %cst_24 = arith.constant dense<0.000000e+00> : vector<2x8x32xf32>
    %54 = tpu.matmul %47, %38, %cst_24 {dimension_numbers = #tpu.dot_dimension_numbers<[2], [1], [1], [2], [0, 0, 0, 1, 1, 2], [0], [0]>} : vector<2x8x8xf32>, vector<2x8x32xf32>, vector<2x8x32xf32> -> vector<2x8x32xf32>
    "tpu.trace_stop"() : () -> ()
    %55 = vector.broadcast %53 : vector<2x8x1xf32> to vector<2x8x32xf32>
    %56 = arith.divf %54, %55 : vector<2x8x32xf32>
    %57 = vector.shape_cast %56 : vector<2x8x32xf32> to vector<16x32xf32>
    %58 = vector.extract_strided_slice %25 {offsets = [0, 0, 32], sizes = [2, 8, 32], strides = [1, 1, 1]} : vector<2x8x128xf32> to vector<2x8x32xf32>
    %59 = vector.extract_strided_slice %26 {offsets = [0, 0, 32], sizes = [2, 8, 32], strides = [1, 1, 1]} : vector<2x8x128xf32> to vector<2x8x32xf32>
    %60 = vector.extract_strided_slice %27 {offsets = [0, 0, 32], sizes = [2, 8, 32], strides = [1, 1, 1]} : vector<2x8x128xf32> to vector<2x8x32xf32>
    "tpu.trace_start"() <{level = 10 : i32, message = "bid,bjd->bij"}> : () -> ()
    %cst_25 = arith.constant dense<0.000000e+00> : vector<2x8x8xf32>
    %61 = tpu.matmul %58, %59, %cst_25 {dimension_numbers = #tpu.dot_dimension_numbers<[2], [2], [1], [1], [0, 0, 0, 1, 1, 1], [0], [0]>} : vector<2x8x32xf32>, vector<2x8x32xf32>, vector<2x8x8xf32> -> vector<2x8x8xf32>
    "tpu.trace_stop"() : () -> ()
    %62 = arith.addf %61, %35 : vector<2x8x8xf32>
    %cst_26 = arith.constant dense<0xFF800000> : vector<2x8xf32>
    %63 = vector.multi_reduction <maximumf>, %62, %cst_26 [2] : vector<2x8x8xf32> to vector<2x8xf32>
    %64 = vector.shape_cast %63 : vector<2x8xf32> to vector<2x8x1xf32>
    %cst_27 = arith.constant 0.000000e+00 : f32
    %65 = vector.broadcast %cst_27 : f32 to vector<2x8x1xf32>
    %66 = arith.maximumf %64, %65 : vector<2x8x1xf32>
    %67 = vector.broadcast %66 : vector<2x8x1xf32> to vector<2x8x8xf32>
    %68 = arith.subf %62, %67 : vector<2x8x8xf32>
    %69 = math.exp %68 : vector<2x8x8xf32>
    %cst_28 = arith.constant dense<0.000000e+00> : vector<2x8xf32>
    %70 = vector.multi_reduction <add>, %69, %cst_28 [2] : vector<2x8x8xf32> to vector<2x8xf32>
    %71 = vector.shape_cast %70 : vector<2x8xf32> to vector<2x8x1xf32>
    %cst_29 = arith.constant 0.000000e+00 : f32
    %72 = vector.broadcast %cst_29 : f32 to vector<2x8x1xf32>
    %73 = arith.subf %72, %66 : vector<2x8x1xf32>
    %74 = math.exp %73 : vector<2x8x1xf32>
    %75 = arith.addf %71, %74 : vector<2x8x1xf32>
    "tpu.trace_start"() <{level = 10 : i32, message = "bij,bjd->bid"}> : () -> ()
    %cst_30 = arith.constant dense<0.000000e+00> : vector<2x8x32xf32>
    %76 = tpu.matmul %69, %60, %cst_30 {dimension_numbers = #tpu.dot_dimension_numbers<[2], [1], [1], [2], [0, 0, 0, 1, 1, 2], [0], [0]>} : vector<2x8x8xf32>, vector<2x8x32xf32>, vector<2x8x32xf32> -> vector<2x8x32xf32>
    "tpu.trace_stop"() : () -> ()
    %77 = vector.broadcast %75 : vector<2x8x1xf32> to vector<2x8x32xf32>
    %78 = arith.divf %76, %77 : vector<2x8x32xf32>
    %79 = vector.shape_cast %78 : vector<2x8x32xf32> to vector<16x32xf32>
    %80 = vector.extract_strided_slice %25 {offsets = [0, 0, 64], sizes = [2, 8, 32], strides = [1, 1, 1]} : vector<2x8x128xf32> to vector<2x8x32xf32>
    %81 = vector.extract_strided_slice %26 {offsets = [0, 0, 64], sizes = [2, 8, 32], strides = [1, 1, 1]} : vector<2x8x128xf32> to vector<2x8x32xf32>
    %82 = vector.extract_strided_slice %27 {offsets = [0, 0, 64], sizes = [2, 8, 32], strides = [1, 1, 1]} : vector<2x8x128xf32> to vector<2x8x32xf32>
    "tpu.trace_start"() <{level = 10 : i32, message = "bid,bjd->bij"}> : () -> ()
    %cst_31 = arith.constant dense<0.000000e+00> : vector<2x8x8xf32>
    %83 = tpu.matmul %80, %81, %cst_31 {dimension_numbers = #tpu.dot_dimension_numbers<[2], [2], [1], [1], [0, 0, 0, 1, 1, 1], [0], [0]>} : vector<2x8x32xf32>, vector<2x8x32xf32>, vector<2x8x8xf32> -> vector<2x8x8xf32>
    "tpu.trace_stop"() : () -> ()
    %84 = arith.addf %83, %35 : vector<2x8x8xf32>
    %cst_32 = arith.constant dense<0xFF800000> : vector<2x8xf32>
    %85 = vector.multi_reduction <maximumf>, %84, %cst_32 [2] : vector<2x8x8xf32> to vector<2x8xf32>
    %86 = vector.shape_cast %85 : vector<2x8xf32> to vector<2x8x1xf32>
    %cst_33 = arith.constant 0.000000e+00 : f32
    %87 = vector.broadcast %cst_33 : f32 to vector<2x8x1xf32>
    %88 = arith.maximumf %86, %87 : vector<2x8x1xf32>
    %89 = vector.broadcast %88 : vector<2x8x1xf32> to vector<2x8x8xf32>
    %90 = arith.subf %84, %89 : vector<2x8x8xf32>
    %91 = math.exp %90 : vector<2x8x8xf32>
    %cst_34 = arith.constant dense<0.000000e+00> : vector<2x8xf32>
    %92 = vector.multi_reduction <add>, %91, %cst_34 [2] : vector<2x8x8xf32> to vector<2x8xf32>
    %93 = vector.shape_cast %92 : vector<2x8xf32> to vector<2x8x1xf32>
    %cst_35 = arith.constant 0.000000e+00 : f32
    %94 = vector.broadcast %cst_35 : f32 to vector<2x8x1xf32>
    %95 = arith.subf %94, %88 : vector<2x8x1xf32>
    %96 = math.exp %95 : vector<2x8x1xf32>
    %97 = arith.addf %93, %96 : vector<2x8x1xf32>
    "tpu.trace_start"() <{level = 10 : i32, message = "bij,bjd->bid"}> : () -> ()
    %cst_36 = arith.constant dense<0.000000e+00> : vector<2x8x32xf32>
    %98 = tpu.matmul %91, %82, %cst_36 {dimension_numbers = #tpu.dot_dimension_numbers<[2], [1], [1], [2], [0, 0, 0, 1, 1, 2], [0], [0]>} : vector<2x8x8xf32>, vector<2x8x32xf32>, vector<2x8x32xf32> -> vector<2x8x32xf32>
    "tpu.trace_stop"() : () -> ()
    %99 = vector.broadcast %97 : vector<2x8x1xf32> to vector<2x8x32xf32>
    %100 = arith.divf %98, %99 : vector<2x8x32xf32>
    %101 = vector.shape_cast %100 : vector<2x8x32xf32> to vector<16x32xf32>
    %102 = vector.extract_strided_slice %25 {offsets = [0, 0, 96], sizes = [2, 8, 32], strides = [1, 1, 1]} : vector<2x8x128xf32> to vector<2x8x32xf32>
    %103 = vector.extract_strided_slice %26 {offsets = [0, 0, 96], sizes = [2, 8, 32], strides = [1, 1, 1]} : vector<2x8x128xf32> to vector<2x8x32xf32>
    %104 = vector.extract_strided_slice %27 {offsets = [0, 0, 96], sizes = [2, 8, 32], strides = [1, 1, 1]} : vector<2x8x128xf32> to vector<2x8x32xf32>
    "tpu.trace_start"() <{level = 10 : i32, message = "bid,bjd->bij"}> : () -> ()
    %cst_37 = arith.constant dense<0.000000e+00> : vector<2x8x8xf32>
    %105 = tpu.matmul %102, %103, %cst_37 {dimension_numbers = #tpu.dot_dimension_numbers<[2], [2], [1], [1], [0, 0, 0, 1, 1, 1], [0], [0]>} : vector<2x8x32xf32>, vector<2x8x32xf32>, vector<2x8x8xf32> -> vector<2x8x8xf32>
    "tpu.trace_stop"() : () -> ()
    %106 = arith.addf %105, %35 : vector<2x8x8xf32>
    %cst_38 = arith.constant dense<0xFF800000> : vector<2x8xf32>
    %107 = vector.multi_reduction <maximumf>, %106, %cst_38 [2] : vector<2x8x8xf32> to vector<2x8xf32>
    %108 = vector.shape_cast %107 : vector<2x8xf32> to vector<2x8x1xf32>
    %cst_39 = arith.constant 0.000000e+00 : f32
    %109 = vector.broadcast %cst_39 : f32 to vector<2x8x1xf32>
    %110 = arith.maximumf %108, %109 : vector<2x8x1xf32>
    %111 = vector.broadcast %110 : vector<2x8x1xf32> to vector<2x8x8xf32>
    %112 = arith.subf %106, %111 : vector<2x8x8xf32>
    %113 = math.exp %112 : vector<2x8x8xf32>
    %cst_40 = arith.constant dense<0.000000e+00> : vector<2x8xf32>
    %114 = vector.multi_reduction <add>, %113, %cst_40 [2] : vector<2x8x8xf32> to vector<2x8xf32>
    %115 = vector.shape_cast %114 : vector<2x8xf32> to vector<2x8x1xf32>
    %cst_41 = arith.constant 0.000000e+00 : f32
    %116 = vector.broadcast %cst_41 : f32 to vector<2x8x1xf32>
    %117 = arith.subf %116, %110 : vector<2x8x1xf32>
    %118 = math.exp %117 : vector<2x8x1xf32>
    %119 = arith.addf %115, %118 : vector<2x8x1xf32>
    "tpu.trace_start"() <{level = 10 : i32, message = "bij,bjd->bid"}> : () -> ()
    %cst_42 = arith.constant dense<0.000000e+00> : vector<2x8x32xf32>
    %120 = tpu.matmul %113, %104, %cst_42 {dimension_numbers = #tpu.dot_dimension_numbers<[2], [1], [1], [2], [0, 0, 0, 1, 1, 2], [0], [0]>} : vector<2x8x8xf32>, vector<2x8x32xf32>, vector<2x8x32xf32> -> vector<2x8x32xf32>
    "tpu.trace_stop"() : () -> ()
    %121 = vector.broadcast %119 : vector<2x8x1xf32> to vector<2x8x32xf32>
    %122 = arith.divf %120, %121 : vector<2x8x32xf32>
    %123 = vector.shape_cast %122 : vector<2x8x32xf32> to vector<16x32xf32>
    %124 = tpu.concatenate %57, %79, %101, %123 in 1 : vector<16x32xf32>, vector<16x32xf32>, vector<16x32xf32>, vector<16x32xf32> -> vector<16x128xf32>
    %c0_43 = arith.constant 0 : index
    %c0_44 = arith.constant 0 : index
    %125 = vector.load %arg8[%c0_43, %c0_44] : memref<128x128xf32, #tpu.memory_space<vmem>>, vector<128x128xf32>
    %cst_45 = arith.constant dense<0.000000e+00> : vector<16x128xf32>
    %126 = tpu.matmul %124, %125, %cst_45 {dimension_numbers = #tpu.dot_dimension_numbers<[1], [0], [0], [1], [0, 0, 1, 1], [], []>} : vector<16x128xf32>, vector<128x128xf32>, vector<16x128xf32> -> vector<16x128xf32>
    %c0_46 = arith.constant 0 : index
    %c0_47 = arith.constant 0 : index
    %127 = vector.load %arg9[%c0_46, %c0_47] : memref<1x128xf32, #tpu.memory_space<vmem>>, vector<1x128xf32>
    %128 = vector.shape_cast %127 : vector<1x128xf32> to vector<128xf32>
    %129 = vector.shape_cast %128 : vector<128xf32> to vector<1x128xf32>
    %130 = vector.broadcast %129 : vector<1x128xf32> to vector<16x128xf32>
    %131 = arith.addf %126, %130 : vector<16x128xf32>
    %132 = arith.addf %131, %1 : vector<16x128xf32>
    %cst_48 = arith.constant dense<0.000000e+00> : vector<16xf32>
    %133 = vector.multi_reduction <add>, %132, %cst_48 [1] : vector<16x128xf32> to vector<16xf32>
    %134 = vector.shape_cast %133 : vector<16xf32> to vector<16x1xf32>
    %cst_49 = arith.constant 6.250000e-02 : f32
    %135 = vector.broadcast %cst_49 : f32 to vector<16x1xf32>
    %136 = arith.mulf %134, %135 : vector<16x1xf32>
    %137 = tpu.iota {dimensions = array<i32: 1>} : vector<1x128xi32>
    %c16_i32 = arith.constant 16 : i32
    %138 = vector.broadcast %c16_i32 : i32 to vector<1x128xi32>
    %139 = arith.cmpi slt, %137, %138 : vector<1x128xi32>
    %140 = arith.extui %139 : vector<1x128xi1> to vector<1x128xi32>
    %141 = arith.sitofp %140 : vector<1x128xi32> to vector<1x128xf32>
    %142 = vector.broadcast %136 : vector<16x1xf32> to vector<16x128xf32>
    %143 = arith.subf %132, %142 : vector<16x128xf32>
    %144 = vector.broadcast %141 : vector<1x128xf32> to vector<16x128xf32>
    %145 = arith.mulf %143, %144 : vector<16x128xf32>
    %146 = arith.mulf %145, %145 : vector<16x128xf32>
    %cst_50 = arith.constant dense<0.000000e+00> : vector<16xf32>
    %147 = vector.multi_reduction <add>, %146, %cst_50 [1] : vector<16x128xf32> to vector<16xf32>
    %148 = vector.shape_cast %147 : vector<16xf32> to vector<16x1xf32>
    %cst_51 = arith.constant 6.250000e-02 : f32
    %149 = vector.broadcast %cst_51 : f32 to vector<16x1xf32>
    %150 = arith.mulf %148, %149 : vector<16x1xf32>
    %cst_52 = arith.constant 9.99999974E-6 : f32
    %151 = vector.broadcast %cst_52 : f32 to vector<16x1xf32>
    %152 = arith.addf %150, %151 : vector<16x1xf32>
    %153 = math.rsqrt %152 : vector<16x1xf32>
    %154 = vector.broadcast %153 : vector<16x1xf32> to vector<16x128xf32>
    %155 = arith.mulf %143, %154 : vector<16x128xf32>
    %c0_53 = arith.constant 0 : index
    %c0_54 = arith.constant 0 : index
    %156 = vector.load %arg10[%c0_53, %c0_54] : memref<1x128xf32, #tpu.memory_space<vmem>>, vector<1x128xf32>
    %157 = vector.shape_cast %156 : vector<1x128xf32> to vector<128xf32>
    %158 = vector.shape_cast %157 : vector<128xf32> to vector<1x128xf32>
    %159 = vector.broadcast %158 : vector<1x128xf32> to vector<16x128xf32>
    %160 = arith.mulf %155, %159 : vector<16x128xf32>
    %c0_55 = arith.constant 0 : index
    %c0_56 = arith.constant 0 : index
    %161 = vector.load %arg11[%c0_55, %c0_56] : memref<1x128xf32, #tpu.memory_space<vmem>>, vector<1x128xf32>
    %162 = vector.shape_cast %161 : vector<1x128xf32> to vector<128xf32>
    %163 = vector.shape_cast %162 : vector<128xf32> to vector<1x128xf32>
    %164 = vector.broadcast %163 : vector<1x128xf32> to vector<16x128xf32>
    %165 = arith.addf %160, %164 : vector<16x128xf32>
    %166 = vector.shape_cast %165 : vector<16x128xf32> to vector<2x8x128xf32>
    %c0_57 = arith.constant 0 : index
    %c0_58 = arith.constant 0 : index
    %c0_59 = arith.constant 0 : index
    %167 = vector.load %arg12[%c0_57, %c0_58, %c0_59] : memref<2x8x128xf32, #tpu.memory_space<vmem>>, vector<2x8x128xf32>
    tpu.vector_store %arg12[%c0_57, %c0_58, %c0_59], %166 {strides = array<i32>} : memref<2x8x128xf32, #tpu.memory_space<vmem>>, vector<2x8x128xf32>,
    return
  }
  func.func @transform_0(%arg0: i32) -> (i32, i32, i32) {
    %c0_i32 = arith.constant 0 : i32
    %c0_i32_0 = arith.constant 0 : i32
    %c0_i32_1 = arith.constant 0 : i32
    return %arg0, %c0_i32, %c0_i32_0 : i32, i32, i32
  }
  func.func @transform_1(%arg0: i32) -> (i32, i32) {
    %c0_i32 = arith.constant 0 : i32
    %c0_i32_0 = arith.constant 0 : i32
    %c0_i32_1 = arith.constant 0 : i32
    return %c0_i32, %c0_i32_0 : i32, i32
  }
  func.func @transform_2(%arg0: i32) -> (i32, i32) {
    %c0_i32 = arith.constant 0 : i32
    %c0_i32_0 = arith.constant 0 : i32
    %c0_i32_1 = arith.constant 0 : i32
    return %c0_i32, %c0_i32_0 : i32, i32
  }
  func.func @transform_3(%arg0: i32) -> (i32, i32) {
    %c0_i32 = arith.constant 0 : i32
    %c0_i32_0 = arith.constant 0 : i32
    %c0_i32_1 = arith.constant 0 : i32
    return %c0_i32, %c0_i32_0 : i32, i32
  }
  func.func @transform_4(%arg0: i32) -> (i32, i32) {
    %c0_i32 = arith.constant 0 : i32
    %c0_i32_0 = arith.constant 0 : i32
    %c0_i32_1 = arith.constant 0 : i32
    return %c0_i32, %c0_i32_0 : i32, i32
  }
  func.func @transform_5(%arg0: i32) -> (i32, i32) {
    %c0_i32 = arith.constant 0 : i32
    %c0_i32_0 = arith.constant 0 : i32
    %c0_i32_1 = arith.constant 0 : i32
    return %c0_i32, %c0_i32_0 : i32, i32
  }
  func.func @transform_6(%arg0: i32) -> (i32, i32) {
    %c0_i32 = arith.constant 0 : i32
    %c0_i32_0 = arith.constant 0 : i32
    %c0_i32_1 = arith.constant 0 : i32
    return %c0_i32, %c0_i32_0 : i32, i32
  }
  func.func @transform_7(%arg0: i32) -> (i32, i32) {
    %c0_i32 = arith.constant 0 : i32
    %c0_i32_0 = arith.constant 0 : i32
    %c0_i32_1 = arith.constant 0 : i32
    return %c0_i32, %c0_i32_0 : i32, i32
  }
  func.func @transform_8(%arg0: i32) -> (i32, i32) {
    %c0_i32 = arith.constant 0 : i32
    %c0_i32_0 = arith.constant 0 : i32
    %c0_i32_1 = arith.constant 0 : i32
    return %c0_i32, %c0_i32_0 : i32, i32
  }
  func.func @transform_9(%arg0: i32) -> (i32, i32) {
    %c0_i32 = arith.constant 0 : i32
    %c0_i32_0 = arith.constant 0 : i32
    %c0_i32_1 = arith.constant 0 : i32
    return %c0_i32, %c0_i32_0 : i32, i32
  }
  func.func @transform_10(%arg0: i32) -> (i32, i32) {
    %c0_i32 = arith.constant 0 : i32
    %c0_i32_0 = arith.constant 0 : i32
    %c0_i32_1 = arith.constant 0 : i32
    return %c0_i32, %c0_i32_0 : i32, i32
  }
  func.func @transform_11(%arg0: i32) -> (i32, i32, i32) {
    %c0_i32 = arith.constant 0 : i32
    %c0_i32_0 = arith.constant 0 : i32
    %c0_i32_1 = arith.constant 0 : i32
    return %arg0, %c0_i32, %c0_i32_0 : i32, i32, i32
  }
}

</mosaic_0001>

<bundles_post_ra>
// kernel: tpu_custom_call.1
= control target key start
LH: loop header
LB: loop body
LE: loop exit
PB: predicated region body
PF: predicated region fallthrough
CT: control target
= control target key end

     0   :  { %16 = vsyncpa [#allocation3], 0  ;;  %s3127_s0 = inlined_call_operand.hbm [shape: f32[2,8,128], index: 0, kind: input, shape index: {}]   ;;  %s3128_s1 = inlined_call_operand.hbm [shape: f32[128,128], index: 1, kind: input, shape index: {}]   ;;  %s3129_s2 = inlined_call_operand.vmem [shape: f32[1,128], index: 2, kind: input, shape index: {}]   ;;  %s3130_s3 = inlined_call_operand.hbm [shape: f32[128,128], index: 3, kind: input, shape index: {}]   ;;  %s3131_s4 = inlined_call_operand.vmem [shape: f32[1,128], index: 4, kind: input, shape index: {}]   ;;  %s3132_s5 = inlined_call_operand.hbm [shape: f32[128,128], index: 5, kind: input, shape index: {}]   ;;  %s3133_s6 = inlined_call_operand.vmem [shape: f32[1,128], index: 6, kind: input, shape index: {}]   ;;  %s3134_s7 = inlined_call_operand.hbm [shape: f32[128,128], index: 7, kind: input, shape index: {}]   ;;  %s3135_s8 = inlined_call_operand.vmem [shape: f32[1,128], index: 8, kind: input, shape index: {}]   ;;  %s3136_s9 = inlined_call_operand.vmem [shape: f32[1,128], index: 9, kind: input, shape index: {}]   ;;  %s3137_s10 = inlined_call_operand.vmem [shape: f32[1,128], index: 10, kind: input, shape index: {}]   ;;  %s3138_s11 = inlined_call_operand.hbm [shape: f32[2,8,128], index: 11, kind: output, shape index: {}]  }
   0x1   :  { %17 = vsyncpa [#allocation6], 0 }
   0x2   :  { %18 = vsyncpa [#allocation9], 0 }
   0x3   :  { %19 = vsyncpa [#allocation4], 0  ;;  %s2667_s17 = smov [#allocation5]   ;;  %s2668_s19 = smov [#allocation8]  }
   0x4   :  { %s37_s18 = sshll.u32 %s2667_s17, 4  ;;  %s65_s20 = sshll.u32 %s2668_s19, 4  ;;  %s38_s18 = int_to_ptr.vmem [resolvable:$true] %s37_s18  ;;  %s2741_s20 = int_to_ptr.vmem [resolvable:$true] %s65_s20 }
   0x5   :  { %s2527_s23 = scalar_lea.hbm %s3128_s1, 2048 }
   0x6   :  { %p2528_p0 = scmp.ne.s32.totalorder %s3128_s1, %s2527_s23  ;;  %p2531_p1 = scmp.lt.u32.totalorder %s2527_s23, %s3128_s1 }
   0x8   :  { %p2533_p2 = pnand %p2531_p1, %p2528_p0 }
   0xa   :  { %2536 = shalt.err (!%p2533_p2)
}
   0xb   :  { %s2537_s28 = scalar_lea.vmem %s38_s18, 2048  ;;  %p2542_p4 = scmp.lt.s32.totalorder %s38_s18, %s38_s18 }
   0xc   :  { %p2538_p3 = scmp.ne.s32.totalorder %s38_s18, %s2537_s28  ;;  %p2543_p5 = scmp.lt.s32.totalorder %s2537_s28, %s2537_s28 }
   0xe   :  { %p2544_p6 = por %p2543_p5, %p2542_p4 }
  0x10   :  { %p2545_p7 = pnand %p2544_p6, %p2538_p3 }
  0x12   :  { %2548 = shalt.err (!%p2545_p7)
}
  0x13   :  { %s2669_s29 = smov 128   ;;  %s2670_s30 = smov 8  }
  0x14   :  { %43 = dma.hbm_to_vmem [thread:$0]  %s3128_s1, 2048, %s38_s18, [#allocation6], %s2669_s29, %s2669_s29, %s2670_s30  }
  0x15   :  { %s2549_s16 = scalar_lea.hbm %s3132_s5, 2048 }
  0x16   :  { %p2550_p8 = scmp.ne.s32.totalorder %s3132_s5, %s2549_s16  ;;  %p2553_p9 = scmp.lt.u32.totalorder %s2549_s16, %s3132_s5 }
  0x18   :  { %p2555_p10 = pnand %p2553_p9, %p2550_p8 }
  0x1a   :  { %2558 = shalt.err (!%p2555_p10)
}
  0x1b   :  { %s2559_s23 = scalar_lea.vmem %s2741_s20, 2048  ;;  %p2564_p12 = scmp.lt.s32.totalorder %s2741_s20, %s2741_s20 }
  0x1c   :  { %p2560_p11 = scmp.ne.s32.totalorder %s2741_s20, %s2559_s23  ;;  %p2565_p13 = scmp.lt.s32.totalorder %s2559_s23, %s2559_s23 }
  0x1e   :  { %p2566_p0 = por %p2565_p13, %p2564_p12 }
  0x20   :  { %p2567_p1 = pnand %p2566_p0, %p2560_p11 }
  0x22   :  { %2570 = shalt.err (!%p2567_p1)
}
  0x23   :  { %71 = dma.hbm_to_vmem [thread:$0]  %s3132_s5, 2048, %s2741_s20, [#allocation9], %s2669_s29, %s2669_s29, %s2670_s30  }
  0x24   :  { %s2671_s24 = smov [#allocation2]   ;;  %s2672_s26 = smov [#allocation7]  }
  0x25   :  { %s25_s25 = sshll.u32 %s2671_s24, 4  ;;  %s51_s27 = sshll.u32 %s2672_s26, 4  ;;  %s26_s25 = int_to_ptr.vmem [resolvable:$true] %s25_s25  ;;  %s2778_s27 = int_to_ptr.vmem [resolvable:$true] %s51_s27 }
  0x26   :  { %s2571_s13 = scalar_lea.hbm %s3127_s0, 256 }
  0x27   :  { %p2572_p2 = scmp.ne.s32.totalorder %s3127_s0, %s2571_s13  ;;  %p2575_p3 = scmp.lt.u32.totalorder %s2571_s13, %s3127_s0 }
  0x29   :  { %p2577_p4 = pnand %p2575_p3, %p2572_p2 }
  0x2b   :  { %2580 = shalt.err (!%p2577_p4)
}
  0x2c   :  { %s2581_s5 = scalar_lea.vmem %s26_s25, 256  ;;  %p2586_p6 = scmp.lt.s32.totalorder %s26_s25, %s26_s25 }
  0x2d   :  { %p2582_p5 = scmp.ne.s32.totalorder %s26_s25, %s2581_s5  ;;  %p2587_p7 = scmp.lt.s32.totalorder %s2581_s5, %s2581_s5 }
  0x2f   :  { %p2588_p8 = por %p2587_p7, %p2586_p6 }
  0x31   :  { %p2589_p9 = pnand %p2588_p8, %p2582_p5 }
  0x33   :  { %2592 = shalt.err (!%p2589_p9)
}
  0x34   :  { %31 = dma.hbm_to_vmem [thread:$0]  %s3127_s0, 256, %s26_s25, [#allocation3], %s2669_s29, %s2669_s29, %s2670_s30  }
  0x35   :  { %s2593_s23 = scalar_lea.hbm %s3130_s3, 2048 }
  0x36   :  { %p2594_p10 = scmp.ne.s32.totalorder %s3130_s3, %s2593_s23  ;;  %p2597_p11 = scmp.lt.u32.totalorder %s2593_s23, %s3130_s3 }
  0x38   :  { %p2599_p12 = pnand %p2597_p11, %p2594_p10 }
  0x3a   :  { %2602 = shalt.err (!%p2599_p12)
}
  0x3b   :  { %s2603_s28 = scalar_lea.vmem %s2778_s27, 2048  ;;  %p2608_p0 = scmp.lt.s32.totalorder %s2778_s27, %s2778_s27 }
  0x3c   :  { %p2604_p13 = scmp.ne.s32.totalorder %s2778_s27, %s2603_s28  ;;  %p2609_p1 = scmp.lt.s32.totalorder %s2603_s28, %s2603_s28 }
  0x3e   :  { %p2610_p2 = por %p2609_p1, %p2608_p0 }
  0x40   :  { %p2611_p3 = pnand %p2610_p2, %p2604_p13 }
  0x42   :  { %2614 = shalt.err (!%p2611_p3)
}
  0x43   :  { %57 = dma.hbm_to_vmem [thread:$0]  %s3130_s3, 2048, %s2778_s27, [#allocation6], %s2669_s29, %s2669_s29, %s2670_s30  }
  0x44   :  { %s2673_s12 = smov [#allocation10]   ;;  %s2615_s16 = scalar_lea.hbm %s3134_s7, 2048 }
  0x45   :  { %s79_s13 = sshll.u32 %s2673_s12, 4  ;;  %p2616_p4 = scmp.ne.s32.totalorder %s3134_s7, %s2615_s16  ;;  %s80_s13 = int_to_ptr.vmem [resolvable:$true] %s79_s13 }
  0x46   :  { %p2619_p5 = scmp.lt.u32.totalorder %s2615_s16, %s3134_s7 }
  0x48   :  { %p2621_p6 = pnand %p2619_p5, %p2616_p4 }
  0x4a   :  { %2624 = shalt.err (!%p2621_p6)
}
  0x4b   :  { %s2625_s21 = scalar_lea.vmem %s80_s13, 2048  ;;  %p2630_p8 = scmp.lt.s32.totalorder %s80_s13, %s80_s13 }
  0x4c   :  { %p2626_p7 = scmp.ne.s32.totalorder %s80_s13, %s2625_s21  ;;  %p2631_p9 = scmp.lt.s32.totalorder %s2625_s21, %s2625_s21 }
  0x4e   :  { %p2632_p10 = por %p2631_p9, %p2630_p8 }
  0x50   :  { %p2633_p11 = pnand %p2632_p10, %p2626_p7 }
  0x52   :  { %2636 = shalt.err (!%p2633_p11)
}
  0x53   :  { %85 = dma.hbm_to_vmem [thread:$0]  %s3134_s7, 2048, %s80_s13, [#allocation9], %s2669_s29, %s2669_s29, %s2670_s30  }
  0x54   :  { %2659 = dma.done.wait [#allocation3], 256  }
  0x55   :  { %2660 = vsyncadd [#allocation3], 4294967040 }
  0x56   :  { %2661 = dma.done.wait [#allocation6], 4096  }
  0x57   :  { %2662 = vsyncadd [#allocation6], 4294963200 }
  0x58   :  { %2663 = dma.done.wait [#allocation9], 4096  }
  0x59   :  { %2664 = vsyncadd [#allocation9], 4294963200  ;;  %v109_v0 = vld [vmem:[#allocation5] sm:$0xff]  ;;  %v110_v1 = vld [vmem:[#allocation5 + $0x8] sm:$0xff]  ;;  %v2674_v50 = vmov 0.0   ;;  %vm2675_vm0 = vmmov 0  }
  0x5a   :  { %v207_v2 = vld [vmem:[#allocation7] sm:$0xff]  ;;  %v2318_v3 = vpack.c.bf16 %v110_v1, %v109_v0  ;;  %v208_v4 = vld [vmem:[#allocation7 + $0x8] sm:$0xff]  ;;  %v111_v5 = vld [vmem:[#allocation5 + $0x10] sm:$0xff]  ;;  %vm411_vm1 = vcmask 261120   ;;  %vm564_vm3 = vcmask 64512   ;;  %s2679_s24 = smov 32  }
  0x5b   :  { %v112_v6 = vld [vmem:[#allocation5 + $0x18] sm:$0xff]  ;;  %v2350_v7 = vpack.c.bf16 %v208_v4, %v207_v2  ;;  %v209_v9 = vld [vmem:[#allocation7 + $0x10] sm:$0xff]  ;;  %v113_v11 = vld [vmem:[#allocation5 + $0x20] sm:$0xff]  ;;  %vm1791_vm4 = vcmask 523264   ;;  %vm1794_vm5 = vcmask 785408   ;;  %s2680_s13 = smov [#allocation11]  }
  0x5c   :  { %v2322_v8 = vpack.c.bf16 %v112_v6, %v111_v5  ;;  %v210_v10 = vld [vmem:[#allocation7 + $0x18] sm:$0xff]  ;;  %2319 = vmatprep.subr.bf16.mxu0 %v2318_v3  ;;  %v114_v13 = vld [vmem:[#allocation5 + $0x28] sm:$0xff]  ;;  %v211_v14 = vld [vmem:[#allocation7 + $0x20] sm:$0xff]  ;;  %s1949_s14 = sshll.u32 %s2680_s13, 4  ;;  %s1950_s14 = int_to_ptr.vmem [resolvable:$true] %s1949_s14 }
  0x5d   :  { %v2354_v12 = vpack.c.bf16 %v210_v10, %v209_v9  ;;  %v212_v15 = vld [vmem:[#allocation7 + $0x28] sm:$0xff]  ;;  %2351 = vmatprep.subr.bf16.mxu1 %v2350_v7  ;;  %2321 = vmatpush3.bf16.msra.mxu0 %v2318_v3  ;;  %v2326_v16 = vpack.c.bf16 %v114_v13, %v113_v11  ;;  %v115_v18 = vld [vmem:[#allocation5 + $0x30] sm:$0xff]  ;;  %v116_v19 = vld [vmem:[#allocation5 + $0x38] sm:$0xff]  ;;  %s2637_s15 = scalar_lea.vmem %s1950_s14, 256  ;;  %p2642_p13 = scmp.lt.s32.totalorder %s1950_s14, %s1950_s14 }
  0x5e   :  { %2353 = vmatpush3.bf16.msra.mxu1 %v2350_v7  ;;  %2323 = vmatprep.subr.bf16.mxu0 %v2322_v8  ;;  %v2358_v17 = vpack.c.bf16 %v212_v15, %v211_v14  ;;  %v213_v20 = vld [vmem:[#allocation7 + $0x30] sm:$0xff]  ;;  %v214_v21 = vld [vmem:[#allocation7 + $0x38] sm:$0xff]  ;;  %v2330_v22 = vpack.c.bf16 %v116_v19, %v115_v18  ;;  %v117_v24 = vld [vmem:[#allocation5 + $0x40] sm:$0xff]  ;;  %p2638_p12 = scmp.ne.s32.totalorder %s1950_s14, %s2637_s15  ;;  %p2643_p0 = scmp.lt.s32.totalorder %s2637_s15, %s2637_s15 }
  0x5f   :  { %2355 = vmatprep.subr.bf16.mxu1 %v2354_v12  ;;  %v2362_v23 = vpack.c.bf16 %v214_v21, %v213_v20  ;;  %v118_v25 = vld [vmem:[#allocation5 + $0x48] sm:$0xff]  ;;  %v2830_v26 = vld [vmem:[#allocation2] sm:$0xff]  ;;  %v215_v27 = vld [vmem:[#allocation7 + $0x40] sm:$0xff] }
  0x60   :  { %v216_v28 = vld [vmem:[#allocation7 + $0x48] sm:$0xff]  ;;  %2130 = vmatprep.mubr.f32.mxu0 %v2830_v26  ;;  %2165 = vmatprep.mubr.f32.mxu1 %v2830_v26  ;;  %v2334_v29 = vpack.c.bf16 %v118_v25, %v117_v24  ;;  %v119_v31 = vld [vmem:[#allocation5 + $0x50] sm:$0xff]  ;;  %v120_v32 = vld [vmem:[#allocation5 + $0x58] sm:$0xff]  ;;  %p2644_p1 = por %p2643_p0, %p2642_p13 }
  0x61   :  { %2325 = vmatpush3.bf16.msra.mxu0 %v2322_v8  ;;  %v2366_v30 = vpack.c.bf16 %v216_v28, %v215_v27  ;;  %v217_v33 = vld [vmem:[#allocation7 + $0x50] sm:$0xff]  ;;  %v218_v34 = vld [vmem:[#allocation7 + $0x58] sm:$0xff]  ;;  %v2338_v35 = vpack.c.bf16 %v120_v32, %v119_v31  ;;  %v121_v37 = vld [vmem:[#allocation5 + $0x60] sm:$0xff]  ;;  %v2677_v27 = vmov -1e+30  }
  0x62   :  { %2357 = vmatpush3.bf16.msra.mxu1 %v2354_v12  ;;  %2327 = vmatprep.subr.bf16.mxu0 %v2326_v16  ;;  %v2370_v36 = vpack.c.bf16 %v218_v34, %v217_v33  ;;  %v122_v38 = vld [vmem:[#allocation5 + $0x68] sm:$0xff]  ;;  %v219_v39 = vld [vmem:[#allocation7 + $0x60] sm:$0xff]  ;;  %v123_v43 = vld [vmem:[#allocation5 + $0x70] sm:$0xff]  ;;  %p2645_p2 = pnand %p2644_p1, %p2638_p12 }
  0x63   :  { %2359 = vmatprep.subr.bf16.mxu1 %v2358_v17  ;;  %v220_v40 = vld [vmem:[#allocation7 + $0x68] sm:$0xff]  ;;  %v2342_v41 = vpack.c.bf16 %v122_v38, %v121_v37  ;;  %v124_v44 = vld [vmem:[#allocation5 + $0x78] sm:$0xff]  ;;  %v221_v45 = vld [vmem:[#allocation7 + $0x70] sm:$0xff] }
  0x64   :  { %v2374_v42 = vpack.c.bf16 %v220_v40, %v219_v39  ;;  %v222_v46 = vld [vmem:[#allocation7 + $0x78] sm:$0xff]  ;;  %v2346_v47 = vpack.c.bf16 %v124_v44, %v123_v43  ;;  %v1963_v51 = vld [vmem:[%s3129_s2] ss:$0 sm:$0xff]  ;;  %v305_v52 = vld [vmem:[#allocation8] sm:$0xff]  ;;  %s2676_s2 = smov 96  }
  0x65   :  { %2329 = vmatpush3.bf16.msra.mxu0 %v2326_v16  ;;  %v2378_v48 = vpack.c.bf16 %v222_v46, %v221_v45  ;;  %v2834_v49 = vld [vmem:[#allocation2 + $0x8] sm:$0xff]  ;;  %v306_v53 = vld [vmem:[#allocation8 + $0x8] sm:$0xff]  ;;  %v307_v54 = vld [vmem:[#allocation8 + $0x10] sm:$0xff] }
  0x66   :  { %2361 = vmatpush3.bf16.msra.mxu1 %v2358_v17  ;;  %2331 = vmatprep.subr.bf16.mxu0 %v2330_v22  ;;  %v1964_v56 = vld [vmem:[%s3131_s4] ss:$0 sm:$0xff]  ;;  %v2382_v57 = vpack.c.bf16 %v306_v53, %v305_v52  ;;  %v308_v58 = vld [vmem:[#allocation8 + $0x18] sm:$0xff]  ;;  %v309_v62 = vld [vmem:[#allocation8 + $0x20] sm:$0xff] }
  0x67   :  { %2363 = vmatprep.subr.bf16.mxu1 %v2362_v23  ;;  %v2386_v61 = vpack.c.bf16 %v308_v58, %v307_v54  ;;  %v310_v63 = vld [vmem:[#allocation8 + $0x28] sm:$0xff]  ;;  %v311_v5 = vld [vmem:[#allocation8 + $0x30] sm:$0xff]  ;;  %v312_v6 = vld [vmem:[#allocation8 + $0x38] sm:$0xff] }
  0x68   :  { %v2390_v4 = vpack.c.bf16 %v310_v63, %v309_v62  ;;  %v2394_v9 = vpack.c.bf16 %v312_v6, %v311_v5  ;;  %v313_v10 = vld [vmem:[#allocation8 + $0x40] sm:$0xff]  ;;  %v314_v11 = vld [vmem:[#allocation8 + $0x48] sm:$0xff]  ;;  %v315_v14 = vld [vmem:[#allocation8 + $0x50] sm:$0xff] }
  0x69   :  { %2333 = vmatpush3.bf16.msra.mxu0 %v2330_v22  ;;  %v2398_v13 = vpack.c.bf16 %v314_v11, %v313_v10  ;;  %v316_v15 = vld [vmem:[#allocation8 + $0x58] sm:$0xff]  ;;  %v317_v17 = vld [vmem:[#allocation8 + $0x60] sm:$0xff]  ;;  %v318_v18 = vld [vmem:[#allocation8 + $0x68] sm:$0xff] }
  0x6a   :  { %2365 = vmatpush3.bf16.msra.mxu1 %v2362_v23  ;;  %2335 = vmatprep.subr.bf16.mxu0 %v2334_v29  ;;  %v2402_v16 = vpack.c.bf16 %v316_v15, %v315_v14  ;;  %v2406_v19 = vpack.c.bf16 %v318_v18, %v317_v17  ;;  %v319_v20 = vld [vmem:[#allocation8 + $0x70] sm:$0xff]  ;;  %v320_v21 = vld [vmem:[#allocation8 + $0x78] sm:$0xff]  ;;  %v405_v23 = vlaneseq }
  0x6b   :  { %2367 = vmatprep.subr.bf16.mxu1 %v2366_v30  ;;  %v2410_v22 = vpack.c.bf16 %v320_v21, %v319_v20  ;;  %v1965_v38 = vld [vmem:[%s3133_s6] ss:$0 sm:$0xff]  ;;  %s2678_s6 = smov 64  }
  0x6c   :  { %v406_v24 = vshrl.u32 %v405_v23, 7  ;;  %v2877_v25 = vand.u32 127, %v405_v23 }
  0x6d   :  { %2337 = vmatpush3.bf16.msra.mxu0 %v2334_v29 }
  0x6e   :  { %2369 = vmatpush3.bf16.msra.mxu1 %v2366_v30  ;;  %2339 = vmatprep.subr.bf16.mxu0 %v2338_v35  ;;  %vm409_vm2 = vcmp.lt.s32.totalorder %v2877_v25, %v406_v24  ;;  %vm1903_vm6 = vcmp.lt.s32.totalorder %v2877_v25, 16 }
  0x6f   :  { %2371 = vmatprep.subr.bf16.mxu1 %v2370_v36  ;;  %v2880_v28 = vsel %vm409_vm2, 0.0, %v2677_v27 }
  0x71   :  { %2341 = vmatpush3.bf16.msra.mxu0 %v2338_v35 }
  0x72   :  { %2373 = vmatpush3.bf16.msra.mxu1 %v2370_v36  ;;  %2343 = vmatprep.subr.bf16.mxu0 %v2342_v41 }
  0x73   :  { %2375 = vmatprep.subr.bf16.mxu1 %v2374_v42 }
  0x75   :  { %2345 = vmatpush3.bf16.msra.mxu0 %v2342_v41 }
  0x76   :  { %2377 = vmatpush3.bf16.msra.mxu1 %v2374_v42  ;;  %2347 = vmatprep.subr.bf16.mxu0 %v2346_v47 }
  0x77   :  { %2379 = vmatprep.subr.bf16.mxu1 %v2378_v48 }
  0x79   :  { %2349 = vmatpush3.bf16.msra.mxu0 %v2346_v47 }
  0x7a   :  { %2381 = vmatpush3.bf16.msra.mxu1 %v2378_v48  ;;  %2383 = vmatprep.subr.bf16.mxu0 %v2382_v57 }
  0x7b   :  { %2203 = vmatprep.subr.mxu1 %v2674_v50 }
  0x7c   :  { %2131 = vmatmul.mubr.f32.vlgmr.msra.gmra.mrb[0].mxu0 %v2834_v49 }
  0x7d   :  { %2166 = vmatmul.mubr.f32.vlgmr.msra.gmra.mrb[0].mxu1 %v2834_v49  ;;  %2200 = vmatprep.mubr.f32.mxu0 %v2830_v26 }
  0x7e   :  { %2205 = vmatprep.mubr.msk.f32.mxu1 %vm2675_vm0, %v2674_v50  ;;  %2385 = vmatpush3.bf16.msra.mxu0 %v2382_v57 }
  0x7f   :  { %2387 = vmatprep.subr.bf16.mxu0 %v2386_v61 }
  0x82   :  { %2389 = vmatpush3.bf16.msra.mxu0 %v2386_v61 }
  0x83   :  { %2391 = vmatprep.subr.bf16.mxu0 %v2390_v4 }
  0x86   :  { %2393 = vmatpush3.bf16.msra.mxu0 %v2390_v4 }
  0x87   :  { %2395 = vmatprep.subr.bf16.mxu0 %v2394_v9 }
  0x8a   :  { %2397 = vmatpush3.bf16.msra.mxu0 %v2394_v9 }
  0x8b   :  { %2399 = vmatprep.subr.bf16.mxu0 %v2398_v13 }
  0x8e   :  { %2401 = vmatpush3.bf16.msra.mxu0 %v2398_v13 }
  0x8f   :  { %2403 = vmatprep.subr.bf16.mxu0 %v2402_v16 }
  0x92   :  { %2405 = vmatpush3.bf16.msra.mxu0 %v2402_v16 }
  0x93   :  { %2407 = vmatprep.subr.bf16.mxu0 %v2406_v19 }
  0x96   :  { %2409 = vmatpush3.bf16.msra.mxu0 %v2406_v19 }
  0x97   :  { %2411 = vmatprep.subr.bf16.mxu0 %v2410_v22 }
  0x9a   :  { %2413 = vmatpush3.bf16.msra.mxu0 %v2410_v22 }
  0x9d   :  { %2201 = vmatmul.mubr.f32.vlgmr.msra.gmra.mrb[2].mxu0 %v2834_v49 }
 0x14f   :  { %v2132_v55 = vpop.f32.mrb[0].mxu0 }
 0x150   :  { %v2167_v59 = vpop.f32.mrb[0].mxu1  ;;  %v198_v60 = vpop.f32.mrb[1].mxu0  ;;  %v204_v7 = vadd.f32 %v2132_v55, %v1963_v51 }
 0x151   :  { %v199_v0 = vadd.f32 %v1963_v51, %v198_v60  ;;  %v296_v1 = vpop.f32.mrb[1].mxu1  ;;  %v2857_v8 = vadd.f32 %v2167_v59, %v1964_v56 }
 0x152   :  { %v2848_v2 = vadd.f32 %v1964_v56, %v296_v1  ;;  %v2865_v12 = vmul.f32 0.35355338, %v204_v7 }
 0x153   :  { %v2850_v3 = vmul.f32 0.35355338, %v199_v0 }
 0x154   :  { %745 = vrot.lane.b32.xlu1 %v2848_v2, %s2676_s2  ;;  %2204 = vmatpush3.xpose.msk.msra.mxu1 %vm411_vm1, %v2848_v2 }
 0x155   :  { %2208 = vmatprep.subr.mxu1 %v2674_v50 }
 0x157   :  { %2206 = vmatmul.mubr.msk.f32.vlgmr.msra.gmra.mrb[2].mxu1 %vm411_vm1, %v2850_v3 }
 0x158   :  { %743 = vrot.lane.b32.xlu1 %v2850_v3, %s2676_s2  ;;  %2209 = vmatpush3.xpose.msk.msra.mxu1 %vm411_vm1, %v2857_v8 }
 0x159   :  { %2210 = vmatprep.mubr.msk.f32.mxu1 %vm2675_vm0, %v2674_v50  ;;  %2213 = vmatprep.subr.mxu1 %v2674_v50 }
 0x15b   :  { %2211 = vmatmul.mubr.msk.f32.vlgmr.msra.gmra.mrb[4].mxu1 %vm411_vm1, %v2865_v12 }
 0x15c   :  { %821 = vrot.lane.b32.xlu1 %v2865_v12, %s2676_s2  ;;  %2215 = vmatprep.mubr.msk.f32.mxu1 %vm2675_vm0, %v2674_v50 }
 0x170   :  { %v2202_v37 = vpop.f32.mrb[2].mxu0 }
 0x171   :  { %v2891_v39 = vadd.f32 %v2202_v37, %v1965_v38  ;;  %v394_v40 = vpop.f32.mrb[3].mxu0 }
 0x172   :  { %v2893_v41 = vadd.f32 %v1965_v38, %v394_v40 }
 0x174   :  { %928 = vrot.lane.b32.xlu1 %v2893_v41, %s2676_s2  ;;  %2214 = vmatpush3.msra.mxu1 %v2893_v41 }
 0x175   :  { %2218 = vmatprep.subr.mxu1 %v2674_v50 }
 0x1c6   :  { %v746_v52 = vpop.permute.xlu1 %745 }
 0x1ca   :  { %v744_v55 = vpop.permute.xlu1 %743 }
 0x1ce   :  { %v822_v56 = vpop.permute.xlu1 %821 }
 0x1e6   :  { %v929_v58 = vpop.permute.xlu1 %928 }
 0x22a   :  { %v484_v29 = vpop.f32.mrb[2].mxu1 }
 0x22b   :  { %v485_v30 = vadd.f32 %v484_v29, %v2880_v28  ;;  %v2207_v31 = vpop.f32.mrb[3].mxu1 }
 0x22d   :  { %v565_v32 = vsel %vm564_vm3, %v485_v30, -inf }
 0x22e   :  { %566 = vmax.xlane.f32.xlu0 %v565_v32  ;;  %v560_v33 = vpop.f32.mrb[4].mxu1 }
 0x22f   :  { %v561_v34 = vadd.f32 %v560_v33, %v2880_v28  ;;  %v2212_v35 = vpop.f32.mrb[5].mxu1 }
 0x231   :  { %v568_v36 = vsel %vm564_vm3, %v561_v34, -inf }
 0x232   :  { %569 = vmax.xlane.f32.xlu0 %v568_v36 }
 0x248   :  { %823 = vrot.lane.b32.xlu0 %v2857_v8, %s2676_s2 }
 0x2bb   :  { %v2899_v42 = vpop.xlane.xlu0 %566 }
 0x2bc   :  { %v571_v43 = vmax.f32 %v2899_v42, 0.0 }
 0x2be   :  { %v573_v44 = vsub.f32 %v485_v30, %v571_v43 }
 0x2bf   :  { %v2904_v45 = vpop.xlane.xlu0 %569 }
 0x2c0   :  { %v575_v46 = vmul.f32 1.442695, %v573_v44  ;;  %v572_v47 = vmax.f32 %v2904_v45, 0.0 }
 0x2c2   :  { %2475 = vpow2.f32 %v575_v46  ;;  %v574_v48 = vsub.f32 %v561_v34, %v572_v47 }
 0x2c3   :  { %v824_v57 = vpop.permute.xlu0 %823 }
 0x2c4   :  { %v577_v51 = vmul.f32 1.442695, %v574_v48 }
 0x2c6   :  { %2477 = vpow2.f32 %v577_v51 }
 0x2cc   :  { %v2909_v53 = vpop.eup %2475 }
 0x2cd   :  { %2216 = vmatmul.mubr.msk.f32.vlgmr.msra.gmra.mrb[6].mxu1 %vm564_vm3, %v2909_v53 }
 0x2ce   :  { %2219 = vmatpush3.msra.mxu1 %v2891_v39  ;;  %2220 = vmatprep.mubr.msk.f32.mxu1 %vm2675_vm0, %v2674_v50 }
 0x2cf   :  { %2223 = vmatprep.subr.mxu1 %v2674_v50 }
 0x2d0   :  { %v2917_v54 = vpop.eup %2477 }
 0x2d1   :  { %2221 = vmatmul.mubr.msk.f32.vlgmr.msra.gmra.mrb[8].mxu1 %vm564_vm3, %v2917_v54 }
 0x2d2   :  { %2225 = vmatprep.mubr.msk.f32.mxu1 %vm2675_vm0, %v2674_v50 }
 0x2d5   :  { %2224 = vmatpush3.xpose.msk.msra.mxu1 %vm411_vm1, %v746_v52 }
 0x2d6   :  { %2228 = vmatprep.subr.mxu1 %v2674_v50 }
 0x2d8   :  { %2226 = vmatmul.mubr.msk.f32.vlgmr.msra.gmra.mrb[10].mxu1 %vm411_vm1, %v744_v55 }
 0x2d9   :  { %2229 = vmatpush3.xpose.msk.msra.mxu1 %vm411_vm1, %v824_v57  ;;  %2230 = vmatprep.mubr.msk.f32.mxu1 %vm2675_vm0, %v2674_v50 }
 0x2da   :  { %2233 = vmatprep.subr.mxu1 %v2674_v50 }
 0x2dc   :  { %2231 = vmatmul.mubr.msk.f32.vlgmr.msra.gmra.mrb[12].mxu1 %vm411_vm1, %v822_v56 }
 0x2dd   :  { %2234 = vmatpush3.msra.mxu1 %v929_v58  ;;  %2235 = vmatprep.mubr.msk.f32.mxu1 %vm2675_vm0, %v2674_v50 }
 0x2de   :  { %2238 = vmatprep.subr.mxu1 %v2674_v50 }
 0x3a0   :  { %v2934_v59 = vpop.f32.mrb[6].mxu1 }
 0x3a1   :  { %v2217_v60 = vpop.f32.mrb[7].mxu1 }
 0x3a4   :  { %v2936_v61 = vpop.f32.mrb[8].mxu1 }
 0x3a5   :  { %v2222_v62 = vpop.f32.mrb[9].mxu1 }
 0x3ab   :  { %v817_v63 = vpop.f32.mrb[10].mxu1 }
 0x3ac   :  { %v818_v0 = vadd.f32 %v817_v63, %v2880_v28  ;;  %v2227_v1 = vpop.f32.mrb[11].mxu1 }
 0x3ae   :  { %v899_v4 = vsel %vm564_vm3, %v818_v0, -inf }
 0x3af   :  { %900 = vmax.xlane.f32.xlu1 %v899_v4  ;;  %v895_v5 = vpop.f32.mrb[12].mxu1 }
 0x3b0   :  { %v896_v6 = vadd.f32 %v895_v5, %v2880_v28  ;;  %v2232_v7 = vpop.f32.mrb[13].mxu1 }
 0x3b2   :  { %v902_v9 = vsel %vm564_vm3, %v896_v6, -inf }
 0x3b3   :  { %903 = vmax.xlane.f32.xlu0 %v902_v9 }
 0x3c0   :  { %1087 = vrot.lane.b32.xlu1 %v2848_v2, %s2678_s6 }
 0x3c4   :  { %1085 = vrot.lane.b32.xlu1 %v2850_v3, %s2678_s6 }
 0x3c8   :  { %1165 = vrot.lane.b32.xlu1 %v2857_v8, %s2678_s6 }
 0x3c9   :  { %1005 = vrot.lane.b32.xlu0 %v2891_v39, %s2676_s2 }
 0x3cc   :  { %1163 = vrot.lane.b32.xlu1 %v2865_v12, %s2678_s6 }
 0x43c   :  { %v2952_v10 = vpop.xlane.xlu1 %900 }
 0x43d   :  { %v905_v11 = vmax.f32 %v2952_v10, 0.0 }
 0x43f   :  { %v907_v13 = vsub.f32 %v818_v0, %v905_v11 }
 0x440   :  { %v2957_v14 = vpop.xlane.xlu0 %903  ;;  %v1088_v19 = vpop.permute.xlu1 %1087 }
 0x441   :  { %v909_v15 = vmul.f32 1.442695, %v907_v13  ;;  %v906_v16 = vmax.f32 %v2957_v14, 0.0 }
 0x443   :  { %2479 = vpow2.f32 %v909_v15  ;;  %v908_v17 = vsub.f32 %v896_v6, %v906_v16 }
 0x444   :  { %v1006_v21 = vpop.permute.xlu0 %1005  ;;  %v1086_v22 = vpop.permute.xlu1 %1085 }
 0x445   :  { %v911_v18 = vmul.f32 1.442695, %v908_v17 }
 0x447   :  { %2481 = vpow2.f32 %v911_v18 }
 0x448   :  { %v1166_v24 = vpop.permute.xlu1 %1165 }
 0x44c   :  { %v1164_v27 = vpop.permute.xlu1 %1163 }
 0x44d   :  { %v2962_v20 = vpop.eup %2479 }
 0x44e   :  { %2236 = vmatmul.mubr.msk.f32.vlgmr.msra.gmra.mrb[14].mxu1 %vm564_vm3, %v2962_v20 }
 0x44f   :  { %2239 = vmatpush3.msra.mxu1 %v1006_v21  ;;  %2240 = vmatprep.mubr.msk.f32.mxu1 %vm2675_vm0, %v2674_v50 }
 0x450   :  { %2243 = vmatprep.subr.mxu1 %v2674_v50 }
 0x451   :  { %v2969_v23 = vpop.eup %2481 }
 0x452   :  { %2241 = vmatmul.mubr.msk.f32.vlgmr.msra.gmra.mrb[16].mxu1 %vm564_vm3, %v2969_v23 }
 0x453   :  { %2245 = vmatprep.mubr.msk.f32.mxu1 %vm2675_vm0, %v2674_v50 }
 0x456   :  { %2244 = vmatpush3.xpose.msk.msra.mxu1 %vm411_vm1, %v1088_v19 }
 0x457   :  { %2248 = vmatprep.subr.mxu1 %v2674_v50 }
 0x459   :  { %2246 = vmatmul.mubr.msk.f32.vlgmr.msra.gmra.mrb[18].mxu1 %vm411_vm1, %v1086_v22  ;;  %v913_v22 = vsel %vm564_vm3, %v2962_v20, 0.0 }
 0x45a   :  { %2249 = vmatpush3.xpose.msk.msra.mxu1 %vm411_vm1, %v1166_v24  ;;  %2250 = vmatprep.mubr.msk.f32.mxu1 %vm2675_vm0, %v2674_v50 }
 0x45b   :  { %2253 = vmatprep.subr.mxu1 %v2674_v50 }
 0x45d   :  { %2251 = vmatmul.mubr.msk.f32.vlgmr.msra.gmra.mrb[20].mxu1 %vm411_vm1, %v1164_v27  ;;  %v916_v27 = vsel %vm564_vm3, %v2969_v23, 0.0 }
 0x45e   :  { %2255 = vmatprep.mubr.msk.f32.mxu1 %vm2675_vm0, %v2674_v50 }
 0x521   :  { %v2985_v29 = vpop.f32.mrb[14].mxu1 }
 0x522   :  { %v2237_v30 = vpop.f32.mrb[15].mxu1 }
 0x525   :  { %v2987_v31 = vpop.f32.mrb[16].mxu1 }
 0x526   :  { %v2242_v32 = vpop.f32.mrb[17].mxu1 }
 0x52c   :  { %v1159_v33 = vpop.f32.mrb[18].mxu1 }
 0x52d   :  { %v1160_v34 = vadd.f32 %v1159_v33, %v2880_v28  ;;  %v2247_v35 = vpop.f32.mrb[19].mxu1 }
 0x52f   :  { %v1241_v36 = vsel %vm564_vm3, %v1160_v34, -inf }
 0x530   :  { %1242 = vmax.xlane.f32.xlu1 %v1241_v36  ;;  %v1237_v37 = vpop.f32.mrb[20].mxu1 }
 0x531   :  { %v1238_v38 = vadd.f32 %v1237_v37, %v2880_v28  ;;  %v2252_v40 = vpop.f32.mrb[21].mxu1 }
 0x533   :  { %v1244_v44 = vsel %vm564_vm3, %v1238_v38, -inf }
 0x534   :  { %1245 = vmax.xlane.f32.xlu0 %v1244_v44  ;;  %v579_v44 = vsel %vm564_vm3, %v2909_v53, 0.0 }
 0x541   :  { %1345 = vrot.lane.b32.xlu1 %v2891_v39, %s2678_s6 }
 0x545   :  { %1427 = vrot.lane.b32.xlu1 %v2848_v2, %s2679_s24 }
 0x549   :  { %1505 = vrot.lane.b32.xlu1 %v2857_v8, %s2679_s24 }
 0x54a   :  { %1269 = vrot.lane.b32.xlu0 %v2893_v41, %s2678_s6 }
 0x54e   :  { %1425 = vrot.lane.b32.xlu0 %v2850_v3, %s2679_s24 }
 0x552   :  { %1503 = vrot.lane.b32.xlu0 %v2865_v12, %s2679_s24 }
 0x5bd   :  { %v3005_v46 = vpop.xlane.xlu1 %1242 }
 0x5be   :  { %v1247_v48 = vmax.f32 %v3005_v46, 0.0 }
 0x5c0   :  { %v1249_v51 = vsub.f32 %v1160_v34, %v1247_v48  ;;  %v1261_v53 = vsub.f32 0.0, %v1247_v48 }
 0x5c1   :  { %v3010_v2 = vpop.xlane.xlu0 %1245  ;;  %v1346_v57 = vpop.permute.xlu1 %1345 }
 0x5c2   :  { %v1251_v52 = vmul.f32 1.442695, %v1249_v51  ;;  %v1248_v8 = vmax.f32 %v3010_v2, 0.0 }
 0x5c4   :  { %2483 = vpow2.f32 %v1251_v52  ;;  %v1250_v55 = vsub.f32 %v1238_v38, %v1248_v8  ;;  %v582_v52 = vsel %vm564_vm3, %v2917_v54, 0.0 }
 0x5c5   :  { %v1270_v3 = vpop.permute.xlu0 %1269  ;;  %v1428_v60 = vpop.permute.xlu1 %1427 }
 0x5c6   :  { %v1253_v56 = vmul.f32 1.442695, %v1250_v55  ;;  %2254 = vmatpush3.msra.mxu1 %v1270_v3  ;;  %v919_v55 = vsub.f32 0.0, %v905_v11  ;;  %v920_v3 = vsub.f32 0.0, %v906_v16 }
 0x5c7   :  { %2258 = vmatprep.subr.mxu1 %v2674_v50 }
 0x5c8   :  { %2485 = vpow2.f32 %v1253_v56  ;;  %v921_v56 = vmul.f32 1.442695, %v919_v55 }
 0x5c9   :  { %v1426_v62 = vpop.permute.xlu0 %1425  ;;  %v1506_v63 = vpop.permute.xlu1 %1505 }
 0x5cd   :  { %v1504_v0 = vpop.permute.xlu0 %1503 }
 0x5ce   :  { %v2484_v12 = vpop.eup %2483 }
 0x5cf   :  { %2256 = vmatmul.mubr.msk.f32.vlgmr.msra.gmra.mrb[22].mxu1 %vm564_vm3, %v2484_v12 }
 0x5d0   :  { %2259 = vmatpush3.msra.mxu1 %v1346_v57  ;;  %2260 = vmatprep.mubr.msk.f32.mxu1 %vm2675_vm0, %v2674_v50  ;;  %v923_v57 = vmul.f32 1.442695, %v920_v3  ;;  %v585_v3 = vsub.f32 0.0, %v571_v43 }
 0x5d1   :  { %2263 = vmatprep.subr.mxu1 %v2674_v50 }
 0x5d2   :  { %v2486_v58 = vpop.eup %2485 }
 0x5d3   :  { %2261 = vmatmul.mubr.msk.f32.vlgmr.msra.gmra.mrb[24].mxu1 %vm564_vm3, %v2486_v58  ;;  %v1258_v24 = vsel %vm564_vm3, %v2486_v58, 0.0 }
 0x5d4   :  { %2265 = vmatprep.mubr.msk.f32.mxu1 %vm2675_vm0, %v2674_v50 }
 0x5d7   :  { %2264 = vmatpush3.xpose.msk.msra.mxu1 %vm411_vm1, %v1428_v60  ;;  %v1263_v60 = vmul.f32 1.442695, %v1261_v53 }
 0x5d8   :  { %2268 = vmatprep.subr.mxu1 %v2674_v50 }
 0x5da   :  { %2266 = vmatmul.mubr.msk.f32.vlgmr.msra.gmra.mrb[26].mxu1 %vm411_vm1, %v1426_v62 }
 0x5db   :  { %2269 = vmatpush3.xpose.msk.msra.mxu1 %vm411_vm1, %v1506_v63  ;;  %2270 = vmatprep.mubr.msk.f32.mxu1 %vm2675_vm0, %v2674_v50 }
 0x5dc   :  { %2273 = vmatprep.subr.mxu1 %v2674_v50 }
 0x5de   :  { %2271 = vmatmul.mubr.msk.f32.vlgmr.msra.gmra.mrb[28].mxu1 %vm411_vm1, %v1504_v0 }
 0x5df   :  { %2275 = vmatprep.mubr.msk.f32.mxu1 %vm2675_vm0, %v2674_v50 }
 0x6a2   :  { %v3033_v1 = vpop.f32.mrb[22].mxu1 }
 0x6a3   :  { %v2257_v4 = vpop.f32.mrb[23].mxu1 }
 0x6a6   :  { %v3035_v5 = vpop.f32.mrb[24].mxu1 }
 0x6a7   :  { %v2262_v6 = vpop.f32.mrb[25].mxu1 }
 0x6ad   :  { %v1499_v7 = vpop.f32.mrb[26].mxu1 }
 0x6ae   :  { %v1500_v9 = vadd.f32 %v1499_v7, %v2880_v28  ;;  %v2267_v13 = vpop.f32.mrb[27].mxu1 }
 0x6b0   :  { %v1581_v15 = vsel %vm564_vm3, %v1500_v9, -inf }
 0x6b1   :  { %1582 = vmax.xlane.f32.xlu1 %v1581_v15  ;;  %v1577_v17 = vpop.f32.mrb[28].mxu1 }
 0x6b2   :  { %v1578_v18 = vadd.f32 %v1577_v17, %v2880_v28  ;;  %v2272_v19 = vpop.f32.mrb[29].mxu1  ;;  %v1255_v28 = vsel %vm564_vm3, %v2484_v12, 0.0  ;;  %v1262_v12 = vsub.f32 0.0, %v1248_v8 }
 0x6b4   :  { %v1584_v21 = vsel %vm564_vm3, %v1578_v18, -inf  ;;  %v1265_v58 = vmul.f32 1.442695, %v1262_v12  ;;  %v586_v12 = vsub.f32 0.0, %v572_v47 }
 0x6b5   :  { %1585 = vmax.xlane.f32.xlu0 %v1584_v21 }
 0x6c2   :  { %1685 = vrot.lane.b32.xlu1 %v2891_v39, %s2679_s24 }
 0x6cb   :  { %1609 = vrot.lane.b32.xlu0 %v2893_v41, %s2679_s24 }
 0x6e6   :  { %914 = vadd.xlane.f32.xlu1 %v913_v22  ;;  %v1797_v22 = vld [vmem:[#allocation10] sm:$0xff] }
 0x6ea   :  { %1259 = vadd.xlane.f32.xlu1 %v1258_v24  ;;  %917 = vadd.xlane.f32.xlu0 %v916_v27  ;;  %v1798_v24 = vld [vmem:[#allocation10 + $0x8] sm:$0xff]  ;;  %v1799_v27 = vld [vmem:[#allocation10 + $0x10] sm:$0xff] }
 0x6ee   :  { %1256 = vadd.xlane.f32.xlu0 %v1255_v28  ;;  %v2414_v28 = vpack.c.bf16 %v1798_v24, %v1797_v22 }
 0x6f0   :  { %2415 = vmatprep.subr.bf16.mxu0 %v2414_v28 }
 0x6f1   :  { %2417 = vmatpush3.bf16.msra.mxu0 %v2414_v28 }
 0x73e   :  { %v3051_v30 = vpop.xlane.xlu1 %1582 }
 0x73f   :  { %v1587_v39 = vmax.f32 %v3051_v30, 0.0 }
 0x741   :  { %v1589_v41 = vsub.f32 %v1500_v9, %v1587_v39  ;;  %v1601_v47 = vsub.f32 0.0, %v1587_v39 }
 0x742   :  { %v3056_v32 = vpop.xlane.xlu0 %1585  ;;  %v1686_v37 = vpop.permute.xlu1 %1685 }
 0x743   :  { %v1591_v20 = vmul.f32 1.442695, %v1589_v41  ;;  %v1588_v33 = vmax.f32 %v3056_v32, 0.0 }
 0x745   :  { %2487 = vpow2.f32 %v1591_v20  ;;  %v1590_v23 = vsub.f32 %v1578_v18, %v1588_v33  ;;  %v1801_v20 = vld [vmem:[#allocation10 + $0x20] sm:$0xff] }
 0x746   :  { %v1610_v34 = vpop.permute.xlu0 %1609 }
 0x747   :  { %v1593_v35 = vmul.f32 1.442695, %v1590_v23  ;;  %2274 = vmatpush3.msra.mxu1 %v1610_v34  ;;  %v1802_v23 = vld [vmem:[#allocation10 + $0x28] sm:$0xff]  ;;  %v1804_v34 = vld [vmem:[#allocation10 + $0x38] sm:$0xff] }
 0x748   :  { %2278 = vmatprep.subr.mxu1 %v2674_v50 }
 0x749   :  { %2489 = vpow2.f32 %v1593_v35  ;;  %v1805_v35 = vld [vmem:[#allocation10 + $0x40] sm:$0xff] }
 0x74a   :  { %2491 = vpow2.f32 %v921_v56  ;;  %v587_v56 = vmul.f32 1.442695, %v585_v3 }
 0x74b   :  { %2493 = vpow2.f32 %v923_v57  ;;  %v589_v57 = vmul.f32 1.442695, %v586_v12  ;;  %v1991_v12 = vsel %vm1903_vm6, 1.0, %v2674_v50 }
 0x74c   :  { %2495 = vpow2.f32 %v1265_v58 }
 0x74d   :  { %2497 = vpow2.f32 %v1263_v60 }
 0x74f   :  { %v2488_v36 = vpop.eup %2487 }
 0x750   :  { %2276 = vmatmul.mubr.msk.f32.vlgmr.msra.gmra.mrb[30].mxu1 %vm564_vm3, %v2488_v36  ;;  %v1595_v38 = vsel %vm564_vm3, %v2488_v36, 0.0  ;;  %v1806_v36 = vld [vmem:[#allocation10 + $0x48] sm:$0xff] }
 0x751   :  { %2279 = vmatpush3.msra.mxu1 %v1686_v37  ;;  %1596 = vadd.xlane.f32.xlu0 %v1595_v38  ;;  %v2430_v37 = vpack.c.bf16 %v1806_v36, %v1805_v35  ;;  %v1807_v38 = vld [vmem:[#allocation10 + $0x50] sm:$0xff] }
 0x752   :  { %2280 = vmatprep.mubr.msk.f32.mxu1 %vm2675_vm0, %v2674_v50  ;;  %v1990_v35 = vld [vmem:[%s3135_s8] ss:$0 sm:$0xff] }
 0x753   :  { %v2490_v40 = vpop.eup %2489  ;;  %v1992_v50 = vld [vmem:[%s3136_s9] ss:$0 sm:$0xff] }
 0x754   :  { %2281 = vmatmul.mubr.msk.f32.vlgmr.msra.gmra.mrb[32].mxu1 %vm564_vm3, %v2490_v40  ;;  %v1598_v51 = vsel %vm564_vm3, %v2490_v40, 0.0  ;;  %v2492_v54 = vpop.eup %2491  ;;  %v1808_v40 = vld [vmem:[#allocation10 + $0x58] sm:$0xff] }
 0x755   :  { %580 = vadd.xlane.f32.xlu0 %v579_v44  ;;  %1599 = vadd.xlane.f32.xlu1 %v1598_v51  ;;  %v2494_v62 = vpop.eup %2493  ;;  %v2434_v44 = vpack.c.bf16 %v1808_v40, %v1807_v38  ;;  %v1809_v51 = vld [vmem:[#allocation10 + $0x60] sm:$0xff] }
 0x756   :  { %v2496_v14 = vpop.eup %2495 }
 0x757   :  { %v2498_v0 = vpop.eup %2497 }
 0x759   :  { %583 = vadd.xlane.f32.xlu1 %v582_v52  ;;  %v1810_v52 = vld [vmem:[#allocation10 + $0x68] sm:$0xff] }
 0x75a   :  { %v2438_v55 = vpack.c.bf16 %v1810_v52, %v1809_v51 }
 0x773   :  { %v915_v10 = vpop.xlane.xlu1 %914 }
 0x774   :  { %v925_v11 = vadd.f32 %v2492_v54, %v915_v10 }
 0x776   :  { %2499 = vrcp.f32 %v925_v11 }
 0x777   :  { %v1260_v16 = vpop.xlane.xlu1 %1259  ;;  %v918_v63 = vpop.xlane.xlu0 %917 }
 0x778   :  { %v1268_v2 = vadd.f32 %v2496_v14, %v1260_v16  ;;  %v926_v8 = vadd.f32 %v2494_v62, %v918_v63  ;;  %v1603_v63 = vmul.f32 1.442695, %v1601_v47 }
 0x77a   :  { %2501 = vrcp.f32 %v1268_v2  ;;  %v1602_v2 = vsub.f32 0.0, %v1588_v33 }
 0x77b   :  { %2503 = vrcp.f32 %v926_v8  ;;  %v1257_v46 = vpop.xlane.xlu0 %1256 }
 0x77c   :  { %v1267_v48 = vadd.f32 %v2498_v0, %v1257_v46  ;;  %v1605_v8 = vmul.f32 1.442695, %v1602_v2 }
 0x77e   :  { %2505 = vrcp.f32 %v1267_v48 }
 0x77f   :  { %2507 = vpow2.f32 %v587_v56 }
 0x780   :  { %v2500_v4 = vpop.eup %2499  ;;  %2509 = vpow2.f32 %v589_v57 }
 0x781   :  { %v1082_v6 = vmul.f32 %v2500_v4, %v2985_v29  ;;  %v1800_v29 = vld [vmem:[#allocation10 + $0x18] sm:$0xff] }
 0x782   :  { %v2418_v41 = vpack.c.bf16 %v1800_v29, %v1799_v27 }
 0x784   :  { %v2502_v7 = vpop.eup %2501  ;;  %2419 = vmatprep.subr.bf16.mxu0 %v2418_v41 }
 0x785   :  { %v2504_v9 = vpop.eup %2503  ;;  %v1424_v13 = vmul.f32 %v2502_v7, %v3035_v5  ;;  %v1803_v5 = vld [vmem:[#allocation10 + $0x30] sm:$0xff]  ;;  %2421 = vmatpush3.bf16.msra.mxu0 %v2418_v41 }
 0x786   :  { %v1084_v15 = vmul.f32 %v2504_v9, %v2987_v31  ;;  %v2422_v31 = vpack.c.bf16 %v1802_v23, %v1801_v20 }
 0x788   :  { %v2506_v17 = vpop.eup %2505  ;;  %v2460_v18 = vpack.i.bf16 %v1084_v15, %v1082_v6  ;;  %2423 = vmatprep.subr.bf16.mxu0 %v2422_v31  ;;  %v1812_v6 = vld [vmem:[#allocation10 + $0x78] sm:$0xff] }
 0x789   :  { %v1422_v19 = vmul.f32 %v2506_v17, %v3033_v1  ;;  %v2426_v1 = vpack.c.bf16 %v1804_v34, %v1803_v5  ;;  %2425 = vmatpush3.bf16.msra.mxu0 %v2422_v31  ;;  %v2508_v58 = vpop.eup %2507 }
 0x78a   :  { %2461 = vrot.lane.b32.xlu0 %v2460_v18, %s2679_s24  ;;  %v2510_v11 = vpop.eup %2509 }
 0x78b   :  { %v2465_v21 = vpack.i.bf16 %v1424_v13, %v1422_v19  ;;  %2427 = vmatprep.subr.bf16.mxu0 %v2426_v1 }
 0x78d   :  { %2466 = vrot.lane.b32.xlu1 %v2465_v21, %s2678_s6  ;;  %2429 = vmatpush3.bf16.msra.mxu0 %v2426_v1 }
 0x78e   :  { %2431 = vmatprep.subr.bf16.mxu0 %v2430_v37 }
 0x791   :  { %2433 = vmatpush3.bf16.msra.mxu0 %v2430_v37 }
 0x792   :  { %2435 = vmatprep.subr.bf16.mxu0 %v2434_v44 }
 0x795   :  { %2437 = vmatpush3.bf16.msra.mxu0 %v2434_v44 }
 0x796   :  { %2439 = vmatprep.subr.bf16.mxu0 %v2438_v55 }
 0x799   :  { %2441 = vmatpush3.bf16.msra.mxu0 %v2438_v55 }
 0x7de   :  { %v1597_v53 = vpop.xlane.xlu0 %1596 }
 0x7e2   :  { %v1600_v60 = vpop.xlane.xlu1 %1599  ;;  %v581_v54 = vpop.xlane.xlu0 %580 }
 0x7e3   :  { %v591_v10 = vadd.f32 %v2508_v58, %v581_v54 }
 0x7e5   :  { %2511 = vrcp.f32 %v591_v10 }
 0x7e6   :  { %v584_v62 = vpop.xlane.xlu1 %583 }
 0x7e7   :  { %v592_v14 = vadd.f32 %v2510_v11, %v584_v62 }
 0x7e9   :  { %2513 = vrcp.f32 %v592_v14 }
 0x7ea   :  { %2515 = vpow2.f32 %v1603_v63 }
 0x7eb   :  { %2517 = vpow2.f32 %v1605_v8 }
 0x7ef   :  { %v2512_v16 = vpop.eup %2511 }
 0x7f0   :  { %v740_v42 = vmul.f32 %v2512_v16, %v2934_v59  ;;  %v1811_v59 = vld [vmem:[#allocation10 + $0x70] sm:$0xff] }
 0x7f1   :  { %v2442_v7 = vpack.c.bf16 %v1812_v6, %v1811_v59 }
 0x7f3   :  { %v2514_v43 = vpop.eup %2513  ;;  %2443 = vmatprep.subr.bf16.mxu0 %v2442_v7 }
 0x7f4   :  { %v742_v45 = vmul.f32 %v2514_v43, %v2936_v61  ;;  %v2516_v0 = vpop.eup %2515  ;;  %2445 = vmatpush3.bf16.msra.mxu0 %v2442_v7  ;;  %v1993_v43 = vld [vmem:[%s3137_s10] ss:$0 sm:$0xff] }
 0x7f5   :  { %v1607_v46 = vadd.f32 %v2516_v0, %v1597_v53  ;;  %v2518_v48 = vpop.eup %2517 }
 0x7f6   :  { %v1608_v4 = vadd.f32 %v2518_v48, %v1600_v60 }
 0x7f7   :  { %2519 = vrcp.f32 %v1607_v46 }
 0x7f8   :  { %2521 = vrcp.f32 %v1608_v4 }
 0x7fc   :  { %v2462_v18 = vpop.permute.xlu0 %2461 }
 0x7fd   :  { %v2464_v21 = vunpack.i.h.bf16 %v2462_v18  ;;  %v2463_v22 = vunpack.i.l.bf16 %v2462_v18 }
 0x7ff   :  { %v2467_v19 = vpop.permute.xlu1 %2466  ;;  %v1790_v29 = vsel %vm411_vm1, %v742_v45, %v2464_v21  ;;  %v1789_v23 = vsel %vm411_vm1, %v740_v42, %v2463_v22 }
 0x800   :  { %v2469_v24 = vunpack.i.h.bf16 %v2467_v19  ;;  %v2468_v27 = vunpack.i.l.bf16 %v2467_v19 }
 0x801   :  { %v2520_v61 = vpop.eup %2519 }
 0x802   :  { %v2522_v32 = vpop.eup %2521  ;;  %v1792_v31 = vsel %vm1791_vm4, %v1789_v23, %v2468_v27  ;;  %v1793_v5 = vsel %vm1791_vm4, %v1790_v29, %v2469_v24 }
 0x823   :  { %v1681_v30 = vpop.f32.mrb[30].mxu1 }
 0x824   :  { %v1762_v39 = vmul.f32 %v2520_v61, %v1681_v30  ;;  %v2277_v9 = vpop.f32.mrb[31].mxu1 }
 0x827   :  { %v1757_v33 = vpop.f32.mrb[32].mxu1 }
 0x828   :  { %v1764_v13 = vmul.f32 %v2522_v32, %v1757_v33  ;;  %v2282_v15 = vpop.f32.mrb[33].mxu1 }
 0x82a   :  { %v2470_v17 = vpack.i.bf16 %v1764_v13, %v1762_v39 }
 0x82c   :  { %2471 = vrot.lane.b32.xlu1 %v2470_v17, %s2676_s2 }
 0x89e   :  { %v2472_v28 = vpop.permute.xlu1 %2471 }
 0x89f   :  { %v2474_v41 = vunpack.i.h.bf16 %v2472_v28  ;;  %v2473_v20 = vunpack.i.l.bf16 %v2472_v28 }
 0x8a1   :  { %v1795_v34 = vsel %vm1794_vm5, %v1792_v31, %v2473_v20  ;;  %v1796_v1 = vsel %vm1794_vm5, %v1793_v5, %v2474_v41 }
 0x8a2   :  { %2315 = vmatprep.mubr.f32.mxu0 %v1795_v34 }
 0x8a3   :  { %2316 = vmatmul.mubr.f32.vlgmr.msra.gmra.mrb[4].mxu0 %v1796_v1 }
 0x976   :  { %v2317_v36 = vpop.f32.mrb[4].mxu0 }
 0x977   :  { %v1892_v37 = vadd.f32 %v2317_v36, %v1990_v35  ;;  %v1886_v38 = vpop.f32.mrb[5].mxu0 }
 0x978   :  { %v1887_v40 = vadd.f32 %v1990_v35, %v1886_v38 }
 0x979   :  { %v1896_v44 = vadd.f32 %v1892_v37, %v2834_v49 }
 0x97a   :  { %v1895_v51 = vadd.f32 %v1887_v40, %v2830_v26 }
 0x97b   :  { %1899 = vadd.xlane.f32.xlu1 %v1896_v44 }
 0x97c   :  { %1897 = vadd.xlane.f32.xlu0 %v1895_v51 }
 0xa08   :  { %v1900_v52 = vpop.xlane.xlu1 %1899 }
 0xa09   :  { %v1902_v55 = vmul.f32 0.0625, %v1900_v52  ;;  %v1898_v3 = vpop.xlane.xlu0 %1897 }
 0xa0a   :  { %v1901_v56 = vmul.f32 0.0625, %v1898_v3 }
 0xa0b   :  { %v1907_v57 = vsub.f32 %v1896_v44, %v1902_v55 }
 0xa0c   :  { %v1906_v53 = vsub.f32 %v1895_v51, %v1901_v56 }
 0xa0d   :  { %v1909_v54 = vmul.f32 %v1991_v12, %v1907_v57 }
 0xa0e   :  { %v1908_v58 = vmul.f32 %v1991_v12, %v1906_v53 }
 0xa0f   :  { %v1911_v10 = vmul.f32 %v1909_v54, %v1909_v54 }
 0xa10   :  { %v1910_v60 = vmul.f32 %v1908_v58, %v1908_v58 }
 0xa12   :  { %1912 = vadd.xlane.f32.xlu0 %v1910_v60 }
 0xa16   :  { %1914 = vadd.xlane.f32.xlu0 %v1911_v10 }
 0xa9f   :  { %v1913_v49 = vpop.xlane.xlu0 %1912 }
 0xaa0   :  { %v1916_v26 = vmul.f32 0.0625, %v1913_v49 }
 0xaa2   :  { %v1918_v11 = vadd.f32 1e-05, %v1916_v26 }
 0xaa3   :  { %v1915_v62 = vpop.xlane.xlu0 %1914 }
 0xaa4   :  { %2523 = vrsqrt.f32 %v1918_v11  ;;  %v1917_v14 = vmul.f32 0.0625, %v1915_v62 }
 0xaa6   :  { %v1919_v25 = vadd.f32 1e-05, %v1917_v14 }
 0xaa8   :  { %2525 = vrsqrt.f32 %v1919_v25 }
 0xaae   :  { %v2524_v16 = vpop.eup %2523 }
 0xaaf   :  { %v1922_v42 = vmul.f32 %v2524_v16, %v1906_v53 }
 0xab1   :  { %v1931_v45 = vmul.f32 %v1992_v50, %v1922_v42 }
 0xab2   :  { %v2526_v47 = vpop.eup %2525 }
 0xab3   :  { %v1923_v63 = vmul.f32 %v2526_v47, %v1907_v57  ;;  %v1940_v2 = vadd.f32 %v1993_v43, %v1931_v45 }
 0xab5   :  { %v1932_v8 = vmul.f32 %v1992_v50, %v1923_v63  ;;  %1942 = vst [vmem:[#allocation11] sm:$0xff] %v1940_v2 }
 0xab7   :  { %v1941_v0 = vadd.f32 %v1993_v43, %v1932_v8 }
 0xab9   :  { %1943 = vst [vmem:[#allocation11 + $0x8] sm:$0xff] %v1941_v0 }
 0xaba   :  { %2648 = shalt.err (!%p2645_p2)
}
 0xabb   :  { %s2649_s16 = scalar_lea.hbm %s3138_s11, 256 }
 0xabc   :  { %p2650_p3 = scmp.ne.s32.totalorder %s3138_s11, %s2649_s16  ;;  %p2653_p4 = scmp.lt.u32.totalorder %s2649_s16, %s3138_s11 }
 0xabe   :  { %p2655_p5 = pnand %p2653_p4, %p2650_p3 }
 0xac0   :  { %2658 = shalt.err (!%p2655_p5)
}
 0xac1   :  { %1955 = dma.vmem_to_hbm [thread:$0]  %s1950_s14, 256, %s3138_s11, [#allocation4], %s2669_s29, %s2669_s29, %s2670_s30  }
 0xac2   :  { %2665 = dma.done.wait [#allocation4], 256  }
 0xac3   :  { %2666 = vsyncadd [#allocation4], 4294967040 }
 0xac4   :  { %1959 = vsyncpa [#allocation3], 1 }
 0xac5   :  { %1960 = vsyncpa [#allocation6], 1 }
 0xac6   :  { %1961 = vsyncpa [#allocation9], 1 }
 0xac7   :  { %1962 = vsyncpa [#allocation4], 1 }

// kernel: tpu_custom_call.1
= control target key start
LH: loop header
LB: loop body
LE: loop exit
PB: predicated region body
PF: predicated region fallthrough
CT: control target
= control target key end

     0   :  { %16 = vsyncpa [#allocation3], 0  ;;  %s3127_s0 = inlined_call_operand.hbm [shape: f32[2,8,128], index: 0, kind: input, shape index: {}]   ;;  %s3128_s1 = inlined_call_operand.hbm [shape: f32[128,128], index: 1, kind: input, shape index: {}]   ;;  %s3129_s2 = inlined_call_operand.vmem [shape: f32[1,128], index: 2, kind: input, shape index: {}]   ;;  %s3130_s3 = inlined_call_operand.hbm [shape: f32[128,128], index: 3, kind: input, shape index: {}]   ;;  %s3131_s4 = inlined_call_operand.vmem [shape: f32[1,128], index: 4, kind: input, shape index: {}]   ;;  %s3132_s5 = inlined_call_operand.hbm [shape: f32[128,128], index: 5, kind: input, shape index: {}]   ;;  %s3133_s6 = inlined_call_operand.vmem [shape: f32[1,128], index: 6, kind: input, shape index: {}]   ;;  %s3134_s7 = inlined_call_operand.hbm [shape: f32[128,128], index: 7, kind: input, shape index: {}]   ;;  %s3135_s8 = inlined_call_operand.vmem [shape: f32[1,128], index: 8, kind: input, shape index: {}]   ;;  %s3136_s9 = inlined_call_operand.vmem [shape: f32[1,128], index: 9, kind: input, shape index: {}]   ;;  %s3137_s10 = inlined_call_operand.vmem [shape: f32[1,128], index: 10, kind: input, shape index: {}]   ;;  %s3138_s11 = inlined_call_operand.hbm [shape: f32[2,8,128], index: 11, kind: output, shape index: {}]  }
   0x1   :  { %17 = vsyncpa [#allocation6], 0 }
   0x2   :  { %18 = vsyncpa [#allocation9], 0 }
   0x3   :  { %19 = vsyncpa [#allocation4], 0  ;;  %s2667_s17 = smov [#allocation5]   ;;  %s2668_s19 = smov [#allocation8]  }
   0x4   :  { %s37_s18 = sshll.u32 %s2667_s17, 4  ;;  %s65_s20 = sshll.u32 %s2668_s19, 4  ;;  %s38_s18 = int_to_ptr.vmem [resolvable:$true] %s37_s18  ;;  %s2741_s20 = int_to_ptr.vmem [resolvable:$true] %s65_s20 }
   0x5   :  { %s2527_s23 = scalar_lea.hbm %s3128_s1, 2048 }
   0x6   :  { %p2528_p0 = scmp.ne.s32.totalorder %s3128_s1, %s2527_s23  ;;  %p2531_p1 = scmp.lt.u32.totalorder %s2527_s23, %s3128_s1 }
   0x8   :  { %p2533_p2 = pnand %p2531_p1, %p2528_p0 }
   0xa   :  { %2536 = shalt.err (!%p2533_p2)
}
   0xb   :  { %s2537_s28 = scalar_lea.vmem %s38_s18, 2048  ;;  %p2542_p4 = scmp.lt.s32.totalorder %s38_s18, %s38_s18 }
   0xc   :  { %p2538_p3 = scmp.ne.s32.totalorder %s38_s18, %s2537_s28  ;;  %p2543_p5 = scmp.lt.s32.totalorder %s2537_s28, %s2537_s28 }
   0xe   :  { %p2544_p6 = por %p2543_p5, %p2542_p4 }
  0x10   :  { %p2545_p7 = pnand %p2544_p6, %p2538_p3 }
  0x12   :  { %2548 = shalt.err (!%p2545_p7)
}
  0x13   :  { %s2669_s29 = smov 128   ;;  %s2670_s30 = smov 8  }
  0x14   :  { %43 = dma.hbm_to_vmem [thread:$0]  %s3128_s1, 2048, %s38_s18, [#allocation6], %s2669_s29, %s2669_s29, %s2670_s30  }
  0x15   :  { %s2549_s16 = scalar_lea.hbm %s3132_s5, 2048 }
  0x16   :  { %p2550_p8 = scmp.ne.s32.totalorder %s3132_s5, %s2549_s16  ;;  %p2553_p9 = scmp.lt.u32.totalorder %s2549_s16, %s3132_s5 }
  0x18   :  { %p2555_p10 = pnand %p2553_p9, %p2550_p8 }
  0x1a   :  { %2558 = shalt.err (!%p2555_p10)
}
  0x1b   :  { %s2559_s23 = scalar_lea.vmem %s2741_s20, 2048  ;;  %p2564_p12 = scmp.lt.s32.totalorder %s2741_s20, %s2741_s20 }
  0x1c   :  { %p2560_p11 = scmp.ne.s32.totalorder %s2741_s20, %s2559_s23  ;;  %p2565_p13 = scmp.lt.s32.totalorder %s2559_s23, %s2559_s23 }
  0x1e   :  { %p2566_p0 = por %p2565_p13, %p2564_p12 }
  0x20   :  { %p2567_p1 = pnand %p2566_p0, %p2560_p11 }
  0x22   :  { %2570 = shalt.err (!%p2567_p1)
}
  0x23   :  { %71 = dma.hbm_to_vmem [thread:$0]  %s3132_s5, 2048, %s2741_s20, [#allocation9], %s2669_s29, %s2669_s29, %s2670_s30  }
  0x24   :  { %s2671_s24 = smov [#allocation2]   ;;  %s2672_s26 = smov [#allocation7]  }
  0x25   :  { %s25_s25 = sshll.u32 %s2671_s24, 4  ;;  %s51_s27 = sshll.u32 %s2672_s26, 4  ;;  %s26_s25 = int_to_ptr.vmem [resolvable:$true] %s25_s25  ;;  %s2778_s27 = int_to_ptr.vmem [resolvable:$true] %s51_s27 }
  0x26   :  { %s2571_s13 = scalar_lea.hbm %s3127_s0, 256 }
  0x27   :  { %p2572_p2 = scmp.ne.s32.totalorder %s3127_s0, %s2571_s13  ;;  %p2575_p3 = scmp.lt.u32.totalorder %s2571_s13, %s3127_s0 }
  0x29   :  { %p2577_p4 = pnand %p2575_p3, %p2572_p2 }
  0x2b   :  { %2580 = shalt.err (!%p2577_p4)
}
  0x2c   :  { %s2581_s5 = scalar_lea.vmem %s26_s25, 256  ;;  %p2586_p6 = scmp.lt.s32.totalorder %s26_s25, %s26_s25 }
  0x2d   :  { %p2582_p5 = scmp.ne.s32.totalorder %s26_s25, %s2581_s5  ;;  %p2587_p7 = scmp.lt.s32.totalorder %s2581_s5, %s2581_s5 }
  0x2f   :  { %p2588_p8 = por %p2587_p7, %p2586_p6 }
  0x31   :  { %p2589_p9 = pnand %p2588_p8, %p2582_p5 }
  0x33   :  { %2592 = shalt.err (!%p2589_p9)
}
  0x34   :  { %31 = dma.hbm_to_vmem [thread:$0]  %s3127_s0, 256, %s26_s25, [#allocation3], %s2669_s29, %s2669_s29, %s2670_s30  }
  0x35   :  { %s2593_s23 = scalar_lea.hbm %s3130_s3, 2048 }
  0x36   :  { %p2594_p10 = scmp.ne.s32.totalorder %s3130_s3, %s2593_s23  ;;  %p2597_p11 = scmp.lt.u32.totalorder %s2593_s23, %s3130_s3 }
  0x38   :  { %p2599_p12 = pnand %p2597_p11, %p2594_p10 }
  0x3a   :  { %2602 = shalt.err (!%p2599_p12)
}
  0x3b   :  { %s2603_s28 = scalar_lea.vmem %s2778_s27, 2048  ;;  %p2608_p0 = scmp.lt.s32.totalorder %s2778_s27, %s2778_s27 }
  0x3c   :  { %p2604_p13 = scmp.ne.s32.totalorder %s2778_s27, %s2603_s28  ;;  %p2609_p1 = scmp.lt.s32.totalorder %s2603_s28, %s2603_s28 }
  0x3e   :  { %p2610_p2 = por %p2609_p1, %p2608_p0 }
  0x40   :  { %p2611_p3 = pnand %p2610_p2, %p2604_p13 }
  0x42   :  { %2614 = shalt.err (!%p2611_p3)
}
  0x43   :  { %57 = dma.hbm_to_vmem [thread:$0]  %s3130_s3, 2048, %s2778_s27, [#allocation6], %s2669_s29, %s2669_s29, %s2670_s30  }
  0x44   :  { %s2673_s12 = smov [#allocation10]   ;;  %s2615_s16 = scalar_lea.hbm %s3134_s7, 2048 }
  0x45   :  { %s79_s13 = sshll.u32 %s2673_s12, 4  ;;  %p2616_p4 = scmp.ne.s32.totalorder %s3134_s7, %s2615_s16  ;;  %s80_s13 = int_to_ptr.vmem [resolvable:$true] %s79_s13 }
  0x46   :  { %p2619_p5 = scmp.lt.u32.totalorder %s2615_s16, %s3134_s7 }
  0x48   :  { %p2621_p6 = pnand %p2619_p5, %p2616_p4 }
  0x4a   :  { %2624 = shalt.err (!%p2621_p6)
}
  0x4b   :  { %s2625_s21 = scalar_lea.vmem %s80_s13, 2048  ;;  %p2630_p8 = scmp.lt.s32.totalorder %s80_s13, %s80_s13 }
  0x4c   :  { %p2626_p7 = scmp.ne.s32.totalorder %s80_s13, %s2625_s21  ;;  %p2631_p9 = scmp.lt.s32.totalorder %s2625_s21, %s2625_s21 }
  0x4e   :  { %p2632_p10 = por %p2631_p9, %p2630_p8 }
  0x50   :  { %p2633_p11 = pnand %p2632_p10, %p2626_p7 }
  0x52   :  { %2636 = shalt.err (!%p2633_p11)
}
  0x53   :  { %85 = dma.hbm_to_vmem [thread:$0]  %s3134_s7, 2048, %s80_s13, [#allocation9], %s2669_s29, %s2669_s29, %s2670_s30  }
  0x54   :  { %2659 = dma.done.wait [#allocation3], 256  }
  0x55   :  { %2660 = vsyncadd [#allocation3], 4294967040 }
  0x56   :  { %2661 = dma.done.wait [#allocation6], 4096  }
  0x57   :  { %2662 = vsyncadd [#allocation6], 4294963200 }
  0x58   :  { %2663 = dma.done.wait [#allocation9], 4096  }
  0x59   :  { %2664 = vsyncadd [#allocation9], 4294963200  ;;  %v109_v0 = vld [vmem:[#allocation5] sm:$0xff]  ;;  %v110_v1 = vld [vmem:[#allocation5 + $0x8] sm:$0xff]  ;;  %v2674_v50 = vmov 0.0   ;;  %vm2675_vm0 = vmmov 0  }
  0x5a   :  { %v207_v2 = vld [vmem:[#allocation7] sm:$0xff]  ;;  %v2318_v3 = vpack.c.bf16 %v110_v1, %v109_v0  ;;  %v208_v4 = vld [vmem:[#allocation7 + $0x8] sm:$0xff]  ;;  %v111_v5 = vld [vmem:[#allocation5 + $0x10] sm:$0xff]  ;;  %vm411_vm1 = vcmask 261120   ;;  %vm564_vm3 = vcmask 64512   ;;  %s2679_s24 = smov 32  }
  0x5b   :  { %v112_v6 = vld [vmem:[#allocation5 + $0x18] sm:$0xff]  ;;  %v2350_v7 = vpack.c.bf16 %v208_v4, %v207_v2  ;;  %v209_v9 = vld [vmem:[#allocation7 + $0x10] sm:$0xff]  ;;  %v113_v11 = vld [vmem:[#allocation5 + $0x20] sm:$0xff]  ;;  %vm1791_vm4 = vcmask 523264   ;;  %vm1794_vm5 = vcmask 785408   ;;  %s2680_s13 = smov [#allocation11]  }
  0x5c   :  { %v2322_v8 = vpack.c.bf16 %v112_v6, %v111_v5  ;;  %v210_v10 = vld [vmem:[#allocation7 + $0x18] sm:$0xff]  ;;  %2319 = vmatprep.subr.bf16.mxu0 %v2318_v3  ;;  %v114_v13 = vld [vmem:[#allocation5 + $0x28] sm:$0xff]  ;;  %v211_v14 = vld [vmem:[#allocation7 + $0x20] sm:$0xff]  ;;  %s1949_s14 = sshll.u32 %s2680_s13, 4  ;;  %s1950_s14 = int_to_ptr.vmem [resolvable:$true] %s1949_s14 }
  0x5d   :  { %v2354_v12 = vpack.c.bf16 %v210_v10, %v209_v9  ;;  %v212_v15 = vld [vmem:[#allocation7 + $0x28] sm:$0xff]  ;;  %2351 = vmatprep.subr.bf16.mxu1 %v2350_v7  ;;  %2321 = vmatpush3.bf16.msra.mxu0 %v2318_v3  ;;  %v2326_v16 = vpack.c.bf16 %v114_v13, %v113_v11  ;;  %v115_v18 = vld [vmem:[#allocation5 + $0x30] sm:$0xff]  ;;  %v116_v19 = vld [vmem:[#allocation5 + $0x38] sm:$0xff]  ;;  %s2637_s15 = scalar_lea.vmem %s1950_s14, 256  ;;  %p2642_p13 = scmp.lt.s32.totalorder %s1950_s14, %s1950_s14 }
  0x5e   :  { %2353 = vmatpush3.bf16.msra.mxu1 %v2350_v7  ;;  %2323 = vmatprep.subr.bf16.mxu0 %v2322_v8  ;;  %v2358_v17 = vpack.c.bf16 %v212_v15, %v211_v14  ;;  %v213_v20 = vld [vmem:[#allocation7 + $0x30] sm:$0xff]  ;;  %v214_v21 = vld [vmem:[#allocation7 + $0x38] sm:$0xff]  ;;  %v2330_v22 = vpack.c.bf16 %v116_v19, %v115_v18  ;;  %v117_v24 = vld [vmem:[#allocation5 + $0x40] sm:$0xff]  ;;  %p2638_p12 = scmp.ne.s32.totalorder %s1950_s14, %s2637_s15  ;;  %p2643_p0 = scmp.lt.s32.totalorder %s2637_s15, %s2637_s15 }
  0x5f   :  { %2355 = vmatprep.subr.bf16.mxu1 %v2354_v12  ;;  %v2362_v23 = vpack.c.bf16 %v214_v21, %v213_v20  ;;  %v118_v25 = vld [vmem:[#allocation5 + $0x48] sm:$0xff]  ;;  %v2830_v26 = vld [vmem:[#allocation2] sm:$0xff]  ;;  %v215_v27 = vld [vmem:[#allocation7 + $0x40] sm:$0xff] }
  0x60   :  { %v216_v28 = vld [vmem:[#allocation7 + $0x48] sm:$0xff]  ;;  %2130 = vmatprep.mubr.f32.mxu0 %v2830_v26  ;;  %2165 = vmatprep.mubr.f32.mxu1 %v2830_v26  ;;  %v2334_v29 = vpack.c.bf16 %v118_v25, %v117_v24  ;;  %v119_v31 = vld [vmem:[#allocation5 + $0x50] sm:$0xff]  ;;  %v120_v32 = vld [vmem:[#allocation5 + $0x58] sm:$0xff]  ;;  %p2644_p1 = por %p2643_p0, %p2642_p13 }
  0x61   :  { %2325 = vmatpush3.bf16.msra.mxu0 %v2322_v8  ;;  %v2366_v30 = vpack.c.bf16 %v216_v28, %v215_v27  ;;  %v217_v33 = vld [vmem:[#allocation7 + $0x50] sm:$0xff]  ;;  %v218_v34 = vld [vmem:[#allocation7 + $0x58] sm:$0xff]  ;;  %v2338_v35 = vpack.c.bf16 %v120_v32, %v119_v31  ;;  %v121_v37 = vld [vmem:[#allocation5 + $0x60] sm:$0xff]  ;;  %v2677_v27 = vmov -1e+30  }
  0x62   :  { %2357 = vmatpush3.bf16.msra.mxu1 %v2354_v12  ;;  %2327 = vmatprep.subr.bf16.mxu0 %v2326_v16  ;;  %v2370_v36 = vpack.c.bf16 %v218_v34, %v217_v33  ;;  %v122_v38 = vld [vmem:[#allocation5 + $0x68] sm:$0xff]  ;;  %v219_v39 = vld [vmem:[#allocation7 + $0x60] sm:$0xff]  ;;  %v123_v43 = vld [vmem:[#allocation5 + $0x70] sm:$0xff]  ;;  %p2645_p2 = pnand %p2644_p1, %p2638_p12 }
  0x63   :  { %2359 = vmatprep.subr.bf16.mxu1 %v2358_v17  ;;  %v220_v40 = vld [vmem:[#allocation7 + $0x68] sm:$0xff]  ;;  %v2342_v41 = vpack.c.bf16 %v122_v38, %v121_v37  ;;  %v124_v44 = vld [vmem:[#allocation5 + $0x78] sm:$0xff]  ;;  %v221_v45 = vld [vmem:[#allocation7 + $0x70] sm:$0xff] }
  0x64   :  { %v2374_v42 = vpack.c.bf16 %v220_v40, %v219_v39  ;;  %v222_v46 = vld [vmem:[#allocation7 + $0x78] sm:$0xff]  ;;  %v2346_v47 = vpack.c.bf16 %v124_v44, %v123_v43  ;;  %v1963_v51 = vld [vmem:[%s3129_s2] ss:$0 sm:$0xff]  ;;  %v305_v52 = vld [vmem:[#allocation8] sm:$0xff]  ;;  %s2676_s2 = smov 96  }
  0x65   :  { %2329 = vmatpush3.bf16.msra.mxu0 %v2326_v16  ;;  %v2378_v48 = vpack.c.bf16 %v222_v46, %v221_v45  ;;  %v2834_v49 = vld [vmem:[#allocation2 + $0x8] sm:$0xff]  ;;  %v306_v53 = vld [vmem:[#allocation8 + $0x8] sm:$0xff]  ;;  %v307_v54 = vld [vmem:[#allocation8 + $0x10] sm:$0xff] }
  0x66   :  { %2361 = vmatpush3.bf16.msra.mxu1 %v2358_v17  ;;  %2331 = vmatprep.subr.bf16.mxu0 %v2330_v22  ;;  %v1964_v56 = vld [vmem:[%s3131_s4] ss:$0 sm:$0xff]  ;;  %v2382_v57 = vpack.c.bf16 %v306_v53, %v305_v52  ;;  %v308_v58 = vld [vmem:[#allocation8 + $0x18] sm:$0xff]  ;;  %v309_v62 = vld [vmem:[#allocation8 + $0x20] sm:$0xff] }
  0x67   :  { %2363 = vmatprep.subr.bf16.mxu1 %v2362_v23  ;;  %v2386_v61 = vpack.c.bf16 %v308_v58, %v307_v54  ;;  %v310_v63 = vld [vmem:[#allocation8 + $0x28] sm:$0xff]  ;;  %v311_v5 = vld [vmem:[#allocation8 + $0x30] sm:$0xff]  ;;  %v312_v6 = vld [vmem:[#allocation8 + $0x38] sm:$0xff] }
  0x68   :  { %v2390_v4 = vpack.c.bf16 %v310_v63, %v309_v62  ;;  %v2394_v9 = vpack.c.bf16 %v312_v6, %v311_v5  ;;  %v313_v10 = vld [vmem:[#allocation8 + $0x40] sm:$0xff]  ;;  %v314_v11 = vld [vmem:[#allocation8 + $0x48] sm:$0xff]  ;;  %v315_v14 = vld [vmem:[#allocation8 + $0x50] sm:$0xff] }
  0x69   :  { %2333 = vmatpush3.bf16.msra.mxu0 %v2330_v22  ;;  %v2398_v13 = vpack.c.bf16 %v314_v11, %v313_v10  ;;  %v316_v15 = vld [vmem:[#allocation8 + $0x58] sm:$0xff]  ;;  %v317_v17 = vld [vmem:[#allocation8 + $0x60] sm:$0xff]  ;;  %v318_v18 = vld [vmem:[#allocation8 + $0x68] sm:$0xff] }
  0x6a   :  { %2365 = vmatpush3.bf16.msra.mxu1 %v2362_v23  ;;  %2335 = vmatprep.subr.bf16.mxu0 %v2334_v29  ;;  %v2402_v16 = vpack.c.bf16 %v316_v15, %v315_v14  ;;  %v2406_v19 = vpack.c.bf16 %v318_v18, %v317_v17  ;;  %v319_v20 = vld [vmem:[#allocation8 + $0x70] sm:$0xff]  ;;  %v320_v21 = vld [vmem:[#allocation8 + $0x78] sm:$0xff]  ;;  %v405_v23 = vlaneseq }
  0x6b   :  { %2367 = vmatprep.subr.bf16.mxu1 %v2366_v30  ;;  %v2410_v22 = vpack.c.bf16 %v320_v21, %v319_v20  ;;  %v1965_v38 = vld [vmem:[%s3133_s6] ss:$0 sm:$0xff]  ;;  %s2678_s6 = smov 64  }
  0x6c   :  { %v406_v24 = vshrl.u32 %v405_v23, 7  ;;  %v2877_v25 = vand.u32 127, %v405_v23 }
  0x6d   :  { %2337 = vmatpush3.bf16.msra.mxu0 %v2334_v29 }
  0x6e   :  { %2369 = vmatpush3.bf16.msra.mxu1 %v2366_v30  ;;  %2339 = vmatprep.subr.bf16.mxu0 %v2338_v35  ;;  %vm409_vm2 = vcmp.lt.s32.totalorder %v2877_v25, %v406_v24  ;;  %vm1903_vm6 = vcmp.lt.s32.totalorder %v2877_v25, 16 }
  0x6f   :  { %2371 = vmatprep.subr.bf16.mxu1 %v2370_v36  ;;  %v2880_v28 = vsel %vm409_vm2, 0.0, %v2677_v27 }
  0x71   :  { %2341 = vmatpush3.bf16.msra.mxu0 %v2338_v35 }
  0x72   :  { %2373 = vmatpush3.bf16.msra.mxu1 %v2370_v36  ;;  %2343 = vmatprep.subr.bf16.mxu0 %v2342_v41 }
  0x73   :  { %2375 = vmatprep.subr.bf16.mxu1 %v2374_v42 }
  0x75   :  { %2345 = vmatpush3.bf16.msra.mxu0 %v2342_v41 }
  0x76   :  { %2377 = vmatpush3.bf16.msra.mxu1 %v2374_v42  ;;  %2347 = vmatprep.subr.bf16.mxu0 %v2346_v47 }
  0x77   :  { %2379 = vmatprep.subr.bf16.mxu1 %v2378_v48 }
  0x79   :  { %2349 = vmatpush3.bf16.msra.mxu0 %v2346_v47 }
  0x7a   :  { %2381 = vmatpush3.bf16.msra.mxu1 %v2378_v48  ;;  %2383 = vmatprep.subr.bf16.mxu0 %v2382_v57 }
  0x7b   :  { %2203 = vmatprep.subr.mxu1 %v2674_v50 }
  0x7c   :  { %2131 = vmatmul.mubr.f32.vlgmr.msra.gmra.mrb[0].mxu0 %v2834_v49 }
  0x7d   :  { %2166 = vmatmul.mubr.f32.vlgmr.msra.gmra.mrb[0].mxu1 %v2834_v49  ;;  %2200 = vmatprep.mubr.f32.mxu0 %v2830_v26 }
  0x7e   :  { %2205 = vmatprep.mubr.msk.f32.mxu1 %vm2675_vm0, %v2674_v50  ;;  %2385 = vmatpush3.bf16.msra.mxu0 %v2382_v57 }
  0x7f   :  { %2387 = vmatprep.subr.bf16.mxu0 %v2386_v61 }
  0x82   :  { %2389 = vmatpush3.bf16.msra.mxu0 %v2386_v61 }
  0x83   :  { %2391 = vmatprep.subr.bf16.mxu0 %v2390_v4 }
  0x86   :  { %2393 = vmatpush3.bf16.msra.mxu0 %v2390_v4 }
  0x87   :  { %2395 = vmatprep.subr.bf16.mxu0 %v2394_v9 }
  0x8a   :  { %2397 = vmatpush3.bf16.msra.mxu0 %v2394_v9 }
  0x8b   :  { %2399 = vmatprep.subr.bf16.mxu0 %v2398_v13 }
  0x8e   :  { %2401 = vmatpush3.bf16.msra.mxu0 %v2398_v13 }
  0x8f   :  { %2403 = vmatprep.subr.bf16.mxu0 %v2402_v16 }
  0x92   :  { %2405 = vmatpush3.bf16.msra.mxu0 %v2402_v16 }
  0x93   :  { %2407 = vmatprep.subr.bf16.mxu0 %v2406_v19 }
  0x96   :  { %2409 = vmatpush3.bf16.msra.mxu0 %v2406_v19 }
  0x97   :  { %2411 = vmatprep.subr.bf16.mxu0 %v2410_v22 }
  0x9a   :  { %2413 = vmatpush3.bf16.msra.mxu0 %v2410_v22 }
  0x9d   :  { %2201 = vmatmul.mubr.f32.vlgmr.msra.gmra.mrb[2].mxu0 %v2834_v49 }
 0x14f   :  { %v2132_v55 = vpop.f32.mrb[0].mxu0 }
 0x150   :  { %v2167_v59 = vpop.f32.mrb[0].mxu1  ;;  %v198_v60 = vpop.f32.mrb[1].mxu0  ;;  %v204_v7 = vadd.f32 %v2132_v55, %v1963_v51 }
 0x151   :  { %v199_v0 = vadd.f32 %v1963_v51, %v198_v60  ;;  %v296_v1 = vpop.f32.mrb[1].mxu1  ;;  %v2857_v8 = vadd.f32 %v2167_v59, %v1964_v56 }
 0x152   :  { %v2848_v2 = vadd.f32 %v1964_v56, %v296_v1  ;;  %v2865_v12 = vmul.f32 0.35355338, %v204_v7 }
 0x153   :  { %v2850_v3 = vmul.f32 0.35355338, %v199_v0 }
 0x154   :  { %745 = vrot.lane.b32.xlu1 %v2848_v2, %s2676_s2  ;;  %2204 = vmatpush3.xpose.msk.msra.mxu1 %vm411_vm1, %v2848_v2 }
 0x155   :  { %2208 = vmatprep.subr.mxu1 %v2674_v50 }
 0x157   :  { %2206 = vmatmul.mubr.msk.f32.vlgmr.msra.gmra.mrb[2].mxu1 %vm411_vm1, %v2850_v3 }
 0x158   :  { %743 = vrot.lane.b32.xlu1 %v2850_v3, %s2676_s2  ;;  %2209 = vmatpush3.xpose.msk.msra.mxu1 %vm411_vm1, %v2857_v8 }
 0x159   :  { %2210 = vmatprep.mubr.msk.f32.mxu1 %vm2675_vm0, %v2674_v50  ;;  %2213 = vmatprep.subr.mxu1 %v2674_v50 }
 0x15b   :  { %2211 = vmatmul.mubr.msk.f32.vlgmr.msra.gmra.mrb[4].mxu1 %vm411_vm1, %v2865_v12 }
 0x15c   :  { %821 = vrot.lane.b32.xlu1 %v2865_v12, %s2676_s2  ;;  %2215 = vmatprep.mubr.msk.f32.mxu1 %vm2675_vm0, %v2674_v50 }
 0x170   :  { %v2202_v37 = vpop.f32.mrb[2].mxu0 }
 0x171   :  { %v2891_v39 = vadd.f32 %v2202_v37, %v1965_v38  ;;  %v394_v40 = vpop.f32.mrb[3].mxu0 }
 0x172   :  { %v2893_v41 = vadd.f32 %v1965_v38, %v394_v40 }
 0x174   :  { %928 = vrot.lane.b32.xlu1 %v2893_v41, %s2676_s2  ;;  %2214 = vmatpush3.msra.mxu1 %v2893_v41 }
 0x175   :  { %2218 = vmatprep.subr.mxu1 %v2674_v50 }
 0x1c6   :  { %v746_v52 = vpop.permute.xlu1 %745 }
 0x1ca   :  { %v744_v55 = vpop.permute.xlu1 %743 }
 0x1ce   :  { %v822_v56 = vpop.permute.xlu1 %821 }
 0x1e6   :  { %v929_v58 = vpop.permute.xlu1 %928 }
 0x22a   :  { %v484_v29 = vpop.f32.mrb[2].mxu1 }
 0x22b   :  { %v485_v30 = vadd.f32 %v484_v29, %v2880_v28  ;;  %v2207_v31 = vpop.f32.mrb[3].mxu1 }
 0x22d   :  { %v565_v32 = vsel %vm564_vm3, %v485_v30, -inf }
 0x22e   :  { %566 = vmax.xlane.f32.xlu0 %v565_v32  ;;  %v560_v33 = vpop.f32.mrb[4].mxu1 }
 0x22f   :  { %v561_v34 = vadd.f32 %v560_v33, %v2880_v28  ;;  %v2212_v35 = vpop.f32.mrb[5].mxu1 }
 0x231   :  { %v568_v36 = vsel %vm564_vm3, %v561_v34, -inf }
 0x232   :  { %569 = vmax.xlane.f32.xlu0 %v568_v36 }
 0x248   :  { %823 = vrot.lane.b32.xlu0 %v2857_v8, %s2676_s2 }
 0x2bb   :  { %v2899_v42 = vpop.xlane.xlu0 %566 }
 0x2bc   :  { %v571_v43 = vmax.f32 %v2899_v42, 0.0 }
 0x2be   :  { %v573_v44 = vsub.f32 %v485_v30, %v571_v43 }
 0x2bf   :  { %v2904_v45 = vpop.xlane.xlu0 %569 }
 0x2c0   :  { %v575_v46 = vmul.f32 1.442695, %v573_v44  ;;  %v572_v47 = vmax.f32 %v2904_v45, 0.0 }
 0x2c2   :  { %2475 = vpow2.f32 %v575_v46  ;;  %v574_v48 = vsub.f32 %v561_v34, %v572_v47 }
 0x2c3   :  { %v824_v57 = vpop.permute.xlu0 %823 }
 0x2c4   :  { %v577_v51 = vmul.f32 1.442695, %v574_v48 }
 0x2c6   :  { %2477 = vpow2.f32 %v577_v51 }
 0x2cc   :  { %v2909_v53 = vpop.eup %2475 }
 0x2cd   :  { %2216 = vmatmul.mubr.msk.f32.vlgmr.msra.gmra.mrb[6].mxu1 %vm564_vm3, %v2909_v53 }
 0x2ce   :  { %2219 = vmatpush3.msra.mxu1 %v2891_v39  ;;  %2220 = vmatprep.mubr.msk.f32.mxu1 %vm2675_vm0, %v2674_v50 }
 0x2cf   :  { %2223 = vmatprep.subr.mxu1 %v2674_v50 }
 0x2d0   :  { %v2917_v54 = vpop.eup %2477 }
 0x2d1   :  { %2221 = vmatmul.mubr.msk.f32.vlgmr.msra.gmra.mrb[8].mxu1 %vm564_vm3, %v2917_v54 }
 0x2d2   :  { %2225 = vmatprep.mubr.msk.f32.mxu1 %vm2675_vm0, %v2674_v50 }
 0x2d5   :  { %2224 = vmatpush3.xpose.msk.msra.mxu1 %vm411_vm1, %v746_v52 }
 0x2d6   :  { %2228 = vmatprep.subr.mxu1 %v2674_v50 }
 0x2d8   :  { %2226 = vmatmul.mubr.msk.f32.vlgmr.msra.gmra.mrb[10].mxu1 %vm411_vm1, %v744_v55 }
 0x2d9   :  { %2229 = vmatpush3.xpose.msk.msra.mxu1 %vm411_vm1, %v824_v57  ;;  %2230 = vmatprep.mubr.msk.f32.mxu1 %vm2675_vm0, %v2674_v50 }
 0x2da   :  { %2233 = vmatprep.subr.mxu1 %v2674_v50 }
 0x2dc   :  { %2231 = vmatmul.mubr.msk.f32.vlgmr.msra.gmra.mrb[12].mxu1 %vm411_vm1, %v822_v56 }
 0x2dd   :  { %2234 = vmatpush3.msra.mxu1 %v929_v58  ;;  %2235 = vmatprep.mubr.msk.f32.mxu1 %vm2675_vm0, %v2674_v50 }
 0x2de   :  { %2238 = vmatprep.subr.mxu1 %v2674_v50 }
 0x3a0   :  { %v2934_v59 = vpop.f32.mrb[6].mxu1 }
 0x3a1   :  { %v2217_v60 = vpop.f32.mrb[7].mxu1 }
 0x3a4   :  { %v2936_v61 = vpop.f32.mrb[8].mxu1 }
 0x3a5   :  { %v2222_v62 = vpop.f32.mrb[9].mxu1 }
 0x3ab   :  { %v817_v63 = vpop.f32.mrb[10].mxu1 }
 0x3ac   :  { %v818_v0 = vadd.f32 %v817_v63, %v2880_v28  ;;  %v2227_v1 = vpop.f32.mrb[11].mxu1 }
 0x3ae   :  { %v899_v4 = vsel %vm564_vm3, %v818_v0, -inf }
 0x3af   :  { %900 = vmax.xlane.f32.xlu1 %v899_v4  ;;  %v895_v5 = vpop.f32.mrb[12].mxu1 }
 0x3b0   :  { %v896_v6 = vadd.f32 %v895_v5, %v2880_v28  ;;  %v2232_v7 = vpop.f32.mrb[13].mxu1 }
 0x3b2   :  { %v902_v9 = vsel %vm564_vm3, %v896_v6, -inf }
 0x3b3   :  { %903 = vmax.xlane.f32.xlu0 %v902_v9 }
 0x3c0   :  { %1087 = vrot.lane.b32.xlu1 %v2848_v2, %s2678_s6 }
 0x3c4   :  { %1085 = vrot.lane.b32.xlu1 %v2850_v3, %s2678_s6 }
 0x3c8   :  { %1165 = vrot.lane.b32.xlu1 %v2857_v8, %s2678_s6 }
 0x3c9   :  { %1005 = vrot.lane.b32.xlu0 %v2891_v39, %s2676_s2 }
 0x3cc   :  { %1163 = vrot.lane.b32.xlu1 %v2865_v12, %s2678_s6 }
 0x43c   :  { %v2952_v10 = vpop.xlane.xlu1 %900 }
 0x43d   :  { %v905_v11 = vmax.f32 %v2952_v10, 0.0 }
 0x43f   :  { %v907_v13 = vsub.f32 %v818_v0, %v905_v11 }
 0x440   :  { %v2957_v14 = vpop.xlane.xlu0 %903  ;;  %v1088_v19 = vpop.permute.xlu1 %1087 }
 0x441   :  { %v909_v15 = vmul.f32 1.442695, %v907_v13  ;;  %v906_v16 = vmax.f32 %v2957_v14, 0.0 }
 0x443   :  { %2479 = vpow2.f32 %v909_v15  ;;  %v908_v17 = vsub.f32 %v896_v6, %v906_v16 }
 0x444   :  { %v1006_v21 = vpop.permute.xlu0 %1005  ;;  %v1086_v22 = vpop.permute.xlu1 %1085 }
 0x445   :  { %v911_v18 = vmul.f32 1.442695, %v908_v17 }
 0x447   :  { %2481 = vpow2.f32 %v911_v18 }
 0x448   :  { %v1166_v24 = vpop.permute.xlu1 %1165 }
 0x44c   :  { %v1164_v27 = vpop.permute.xlu1 %1163 }
 0x44d   :  { %v2962_v20 = vpop.eup %2479 }
 0x44e   :  { %2236 = vmatmul.mubr.msk.f32.vlgmr.msra.gmra.mrb[14].mxu1 %vm564_vm3, %v2962_v20 }
 0x44f   :  { %2239 = vmatpush3.msra.mxu1 %v1006_v21  ;;  %2240 = vmatprep.mubr.msk.f32.mxu1 %vm2675_vm0, %v2674_v50 }
 0x450   :  { %2243 = vmatprep.subr.mxu1 %v2674_v50 }
 0x451   :  { %v2969_v23 = vpop.eup %2481 }
 0x452   :  { %2241 = vmatmul.mubr.msk.f32.vlgmr.msra.gmra.mrb[16].mxu1 %vm564_vm3, %v2969_v23 }
 0x453   :  { %2245 = vmatprep.mubr.msk.f32.mxu1 %vm2675_vm0, %v2674_v50 }
 0x456   :  { %2244 = vmatpush3.xpose.msk.msra.mxu1 %vm411_vm1, %v1088_v19 }
 0x457   :  { %2248 = vmatprep.subr.mxu1 %v2674_v50 }
 0x459   :  { %2246 = vmatmul.mubr.msk.f32.vlgmr.msra.gmra.mrb[18].mxu1 %vm411_vm1, %v1086_v22  ;;  %v913_v22 = vsel %vm564_vm3, %v2962_v20, 0.0 }
 0x45a   :  { %2249 = vmatpush3.xpose.msk.msra.mxu1 %vm411_vm1, %v1166_v24  ;;  %2250 = vmatprep.mubr.msk.f32.mxu1 %vm2675_vm0, %v2674_v50 }
 0x45b   :  { %2253 = vmatprep.subr.mxu1 %v2674_v50 }
 0x45d   :  { %2251 = vmatmul.mubr.msk.f32.vlgmr.msra.gmra.mrb[20].mxu1 %vm411_vm1, %v1164_v27  ;;  %v916_v27 = vsel %vm564_vm3, %v2969_v23, 0.0 }
 0x45e   :  { %2255 = vmatprep.mubr.msk.f32.mxu1 %vm2675_vm0, %v2674_v50 }
 0x521   :  { %v2985_v29 = vpop.f32.mrb[14].mxu1 }
 0x522   :  { %v2237_v30 = vpop.f32.mrb[15].mxu1 }
 0x525   :  { %v2987_v31 = vpop.f32.mrb[16].mxu1 }
 0x526   :  { %v2242_v32 = vpop.f32.mrb[17].mxu1 }
 0x52c   :  { %v1159_v33 = vpop.f32.mrb[18].mxu1 }
 0x52d   :  { %v1160_v34 = vadd.f32 %v1159_v33, %v2880_v28  ;;  %v2247_v35 = vpop.f32.mrb[19].mxu1 }
 0x52f   :  { %v1241_v36 = vsel %vm564_vm3, %v1160_v34, -inf }
 0x530   :  { %1242 = vmax.xlane.f32.xlu1 %v1241_v36  ;;  %v1237_v37 = vpop.f32.mrb[20].mxu1 }
 0x531   :  { %v1238_v38 = vadd.f32 %v1237_v37, %v2880_v28  ;;  %v2252_v40 = vpop.f32.mrb[21].mxu1 }
 0x533   :  { %v1244_v44 = vsel %vm564_vm3, %v1238_v38, -inf }
 0x534   :  { %1245 = vmax.xlane.f32.xlu0 %v1244_v44  ;;  %v579_v44 = vsel %vm564_vm3, %v2909_v53, 0.0 }
 0x541   :  { %1345 = vrot.lane.b32.xlu1 %v2891_v39, %s2678_s6 }
 0x545   :  { %1427 = vrot.lane.b32.xlu1 %v2848_v2, %s2679_s24 }
 0x549   :  { %1505 = vrot.lane.b32.xlu1 %v2857_v8, %s2679_s24 }
 0x54a   :  { %1269 = vrot.lane.b32.xlu0 %v2893_v41, %s2678_s6 }
 0x54e   :  { %1425 = vrot.lane.b32.xlu0 %v2850_v3, %s2679_s24 }
 0x552   :  { %1503 = vrot.lane.b32.xlu0 %v2865_v12, %s2679_s24 }
 0x5bd   :  { %v3005_v46 = vpop.xlane.xlu1 %1242 }
 0x5be   :  { %v1247_v48 = vmax.f32 %v3005_v46, 0.0 }
 0x5c0   :  { %v1249_v51 = vsub.f32 %v1160_v34, %v1247_v48  ;;  %v1261_v53 = vsub.f32 0.0, %v1247_v48 }
 0x5c1   :  { %v3010_v2 = vpop.xlane.xlu0 %1245  ;;  %v1346_v57 = vpop.permute.xlu1 %1345 }
 0x5c2   :  { %v1251_v52 = vmul.f32 1.442695, %v1249_v51  ;;  %v1248_v8 = vmax.f32 %v3010_v2, 0.0 }
 0x5c4   :  { %2483 = vpow2.f32 %v1251_v52  ;;  %v1250_v55 = vsub.f32 %v1238_v38, %v1248_v8  ;;  %v582_v52 = vsel %vm564_vm3, %v2917_v54, 0.0 }
 0x5c5   :  { %v1270_v3 = vpop.permute.xlu0 %1269  ;;  %v1428_v60 = vpop.permute.xlu1 %1427 }
 0x5c6   :  { %v1253_v56 = vmul.f32 1.442695, %v1250_v55  ;;  %2254 = vmatpush3.msra.mxu1 %v1270_v3  ;;  %v919_v55 = vsub.f32 0.0, %v905_v11  ;;  %v920_v3 = vsub.f32 0.0, %v906_v16 }
 0x5c7   :  { %2258 = vmatprep.subr.mxu1 %v2674_v50 }
 0x5c8   :  { %2485 = vpow2.f32 %v1253_v56  ;;  %v921_v56 = vmul.f32 1.442695, %v919_v55 }
 0x5c9   :  { %v1426_v62 = vpop.permute.xlu0 %1425  ;;  %v1506_v63 = vpop.permute.xlu1 %1505 }
 0x5cd   :  { %v1504_v0 = vpop.permute.xlu0 %1503 }
 0x5ce   :  { %v2484_v12 = vpop.eup %2483 }
 0x5cf   :  { %2256 = vmatmul.mubr.msk.f32.vlgmr.msra.gmra.mrb[22].mxu1 %vm564_vm3, %v2484_v12 }
 0x5d0   :  { %2259 = vmatpush3.msra.mxu1 %v1346_v57  ;;  %2260 = vmatprep.mubr.msk.f32.mxu1 %vm2675_vm0, %v2674_v50  ;;  %v923_v57 = vmul.f32 1.442695, %v920_v3  ;;  %v585_v3 = vsub.f32 0.0, %v571_v43 }
 0x5d1   :  { %2263 = vmatprep.subr.mxu1 %v2674_v50 }
 0x5d2   :  { %v2486_v58 = vpop.eup %2485 }
 0x5d3   :  { %2261 = vmatmul.mubr.msk.f32.vlgmr.msra.gmra.mrb[24].mxu1 %vm564_vm3, %v2486_v58  ;;  %v1258_v24 = vsel %vm564_vm3, %v2486_v58, 0.0 }
 0x5d4   :  { %2265 = vmatprep.mubr.msk.f32.mxu1 %vm2675_vm0, %v2674_v50 }
 0x5d7   :  { %2264 = vmatpush3.xpose.msk.msra.mxu1 %vm411_vm1, %v1428_v60  ;;  %v1263_v60 = vmul.f32 1.442695, %v1261_v53 }
 0x5d8   :  { %2268 = vmatprep.subr.mxu1 %v2674_v50 }
 0x5da   :  { %2266 = vmatmul.mubr.msk.f32.vlgmr.msra.gmra.mrb[26].mxu1 %vm411_vm1, %v1426_v62 }
 0x5db   :  { %2269 = vmatpush3.xpose.msk.msra.mxu1 %vm411_vm1, %v1506_v63  ;;  %2270 = vmatprep.mubr.msk.f32.mxu1 %vm2675_vm0, %v2674_v50 }
 0x5dc   :  { %2273 = vmatprep.subr.mxu1 %v2674_v50 }
 0x5de   :  { %2271 = vmatmul.mubr.msk.f32.vlgmr.msra.gmra.mrb[28].mxu1 %vm411_vm1, %v1504_v0 }
 0x5df   :  { %2275 = vmatprep.mubr.msk.f32.mxu1 %vm2675_vm0, %v2674_v50 }
 0x6a2   :  { %v3033_v1 = vpop.f32.mrb[22].mxu1 }
 0x6a3   :  { %v2257_v4 = vpop.f32.mrb[23].mxu1 }
 0x6a6   :  { %v3035_v5 = vpop.f32.mrb[24].mxu1 }
 0x6a7   :  { %v2262_v6 = vpop.f32.mrb[25].mxu1 }
 0x6ad   :  { %v1499_v7 = vpop.f32.mrb[26].mxu1 }
 0x6ae   :  { %v1500_v9 = vadd.f32 %v1499_v7, %v2880_v28  ;;  %v2267_v13 = vpop.f32.mrb[27].mxu1 }
 0x6b0   :  { %v1581_v15 = vsel %vm564_vm3, %v1500_v9, -inf }
 0x6b1   :  { %1582 = vmax.xlane.f32.xlu1 %v1581_v15  ;;  %v1577_v17 = vpop.f32.mrb[28].mxu1 }
 0x6b2   :  { %v1578_v18 = vadd.f32 %v1577_v17, %v2880_v28  ;;  %v2272_v19 = vpop.f32.mrb[29].mxu1  ;;  %v1255_v28 = vsel %vm564_vm3, %v2484_v12, 0.0  ;;  %v1262_v12 = vsub.f32 0.0, %v1248_v8 }
 0x6b4   :  { %v1584_v21 = vsel %vm564_vm3, %v1578_v18, -inf  ;;  %v1265_v58 = vmul.f32 1.442695, %v1262_v12  ;;  %v586_v12 = vsub.f32 0.0, %v572_v47 }
 0x6b5   :  { %1585 = vmax.xlane.f32.xlu0 %v1584_v21 }
 0x6c2   :  { %1685 = vrot.lane.b32.xlu1 %v2891_v39, %s2679_s24 }
 0x6cb   :  { %1609 = vrot.lane.b32.xlu0 %v2893_v41, %s2679_s24 }
 0x6e6   :  { %914 = vadd.xlane.f32.xlu1 %v913_v22  ;;  %v1797_v22 = vld [vmem:[#allocation10] sm:$0xff] }
 0x6ea   :  { %1259 = vadd.xlane.f32.xlu1 %v1258_v24  ;;  %917 = vadd.xlane.f32.xlu0 %v916_v27  ;;  %v1798_v24 = vld [vmem:[#allocation10 + $0x8] sm:$0xff]  ;;  %v1799_v27 = vld [vmem:[#allocation10 + $0x10] sm:$0xff] }
 0x6ee   :  { %1256 = vadd.xlane.f32.xlu0 %v1255_v28  ;;  %v2414_v28 = vpack.c.bf16 %v1798_v24, %v1797_v22 }
 0x6f0   :  { %2415 = vmatprep.subr.bf16.mxu0 %v2414_v28 }
 0x6f1   :  { %2417 = vmatpush3.bf16.msra.mxu0 %v2414_v28 }
 0x73e   :  { %v3051_v30 = vpop.xlane.xlu1 %1582 }
 0x73f   :  { %v1587_v39 = vmax.f32 %v3051_v30, 0.0 }
 0x741   :  { %v1589_v41 = vsub.f32 %v1500_v9, %v1587_v39  ;;  %v1601_v47 = vsub.f32 0.0, %v1587_v39 }
 0x742   :  { %v3056_v32 = vpop.xlane.xlu0 %1585  ;;  %v1686_v37 = vpop.permute.xlu1 %1685 }
 0x743   :  { %v1591_v20 = vmul.f32 1.442695, %v1589_v41  ;;  %v1588_v33 = vmax.f32 %v3056_v32, 0.0 }
 0x745   :  { %2487 = vpow2.f32 %v1591_v20  ;;  %v1590_v23 = vsub.f32 %v1578_v18, %v1588_v33  ;;  %v1801_v20 = vld [vmem:[#allocation10 + $0x20] sm:$0xff] }
 0x746   :  { %v1610_v34 = vpop.permute.xlu0 %1609 }
 0x747   :  { %v1593_v35 = vmul.f32 1.442695, %v1590_v23  ;;  %2274 = vmatpush3.msra.mxu1 %v1610_v34  ;;  %v1802_v23 = vld [vmem:[#allocation10 + $0x28] sm:$0xff]  ;;  %v1804_v34 = vld [vmem:[#allocation10 + $0x38] sm:$0xff] }
 0x748   :  { %2278 = vmatprep.subr.mxu1 %v2674_v50 }
 0x749   :  { %2489 = vpow2.f32 %v1593_v35  ;;  %v1805_v35 = vld [vmem:[#allocation10 + $0x40] sm:$0xff] }
 0x74a   :  { %2491 = vpow2.f32 %v921_v56  ;;  %v587_v56 = vmul.f32 1.442695, %v585_v3 }
 0x74b   :  { %2493 = vpow2.f32 %v923_v57  ;;  %v589_v57 = vmul.f32 1.442695, %v586_v12  ;;  %v1991_v12 = vsel %vm1903_vm6, 1.0, %v2674_v50 }
 0x74c   :  { %2495 = vpow2.f32 %v1265_v58 }
 0x74d   :  { %2497 = vpow2.f32 %v1263_v60 }
 0x74f   :  { %v2488_v36 = vpop.eup %2487 }
 0x750   :  { %2276 = vmatmul.mubr.msk.f32.vlgmr.msra.gmra.mrb[30].mxu1 %vm564_vm3, %v2488_v36  ;;  %v1595_v38 = vsel %vm564_vm3, %v2488_v36, 0.0  ;;  %v1806_v36 = vld [vmem:[#allocation10 + $0x48] sm:$0xff] }
 0x751   :  { %2279 = vmatpush3.msra.mxu1 %v1686_v37  ;;  %1596 = vadd.xlane.f32.xlu0 %v1595_v38  ;;  %v2430_v37 = vpack.c.bf16 %v1806_v36, %v1805_v35  ;;  %v1807_v38 = vld [vmem:[#allocation10 + $0x50] sm:$0xff] }
 0x752   :  { %2280 = vmatprep.mubr.msk.f32.mxu1 %vm2675_vm0, %v2674_v50  ;;  %v1990_v35 = vld [vmem:[%s3135_s8] ss:$0 sm:$0xff] }
 0x753   :  { %v2490_v40 = vpop.eup %2489  ;;  %v1992_v50 = vld [vmem:[%s3136_s9] ss:$0 sm:$0xff] }
 0x754   :  { %2281 = vmatmul.mubr.msk.f32.vlgmr.msra.gmra.mrb[32].mxu1 %vm564_vm3, %v2490_v40  ;;  %v1598_v51 = vsel %vm564_vm3, %v2490_v40, 0.0  ;;  %v2492_v54 = vpop.eup %2491  ;;  %v1808_v40 = vld [vmem:[#allocation10 + $0x58] sm:$0xff] }
 0x755   :  { %580 = vadd.xlane.f32.xlu0 %v579_v44  ;;  %1599 = vadd.xlane.f32.xlu1 %v1598_v51  ;;  %v2494_v62 = vpop.eup %2493  ;;  %v2434_v44 = vpack.c.bf16 %v1808_v40, %v1807_v38  ;;  %v1809_v51 = vld [vmem:[#allocation10 + $0x60] sm:$0xff] }
 0x756   :  { %v2496_v14 = vpop.eup %2495 }
 0x757   :  { %v2498_v0 = vpop.eup %2497 }
 0x759   :  { %583 = vadd.xlane.f32.xlu1 %v582_v52  ;;  %v1810_v52 = vld [vmem:[#allocation10 + $0x68] sm:$0xff] }
 0x75a   :  { %v2438_v55 = vpack.c.bf16 %v1810_v52, %v1809_v51 }
 0x773   :  { %v915_v10 = vpop.xlane.xlu1 %914 }
 0x774   :  { %v925_v11 = vadd.f32 %v2492_v54, %v915_v10 }
 0x776   :  { %2499 = vrcp.f32 %v925_v11 }
 0x777   :  { %v1260_v16 = vpop.xlane.xlu1 %1259  ;;  %v918_v63 = vpop.xlane.xlu0 %917 }
 0x778   :  { %v1268_v2 = vadd.f32 %v2496_v14, %v1260_v16  ;;  %v926_v8 = vadd.f32 %v2494_v62, %v918_v63  ;;  %v1603_v63 = vmul.f32 1.442695, %v1601_v47 }
 0x77a   :  { %2501 = vrcp.f32 %v1268_v2  ;;  %v1602_v2 = vsub.f32 0.0, %v1588_v33 }
 0x77b   :  { %2503 = vrcp.f32 %v926_v8  ;;  %v1257_v46 = vpop.xlane.xlu0 %1256 }
 0x77c   :  { %v1267_v48 = vadd.f32 %v2498_v0, %v1257_v46  ;;  %v1605_v8 = vmul.f32 1.442695, %v1602_v2 }
 0x77e   :  { %2505 = vrcp.f32 %v1267_v48 }
 0x77f   :  { %2507 = vpow2.f32 %v587_v56 }
 0x780   :  { %v2500_v4 = vpop.eup %2499  ;;  %2509 = vpow2.f32 %v589_v57 }
 0x781   :  { %v1082_v6 = vmul.f32 %v2500_v4, %v2985_v29  ;;  %v1800_v29 = vld [vmem:[#allocation10 + $0x18] sm:$0xff] }
 0x782   :  { %v2418_v41 = vpack.c.bf16 %v1800_v29, %v1799_v27 }
 0x784   :  { %v2502_v7 = vpop.eup %2501  ;;  %2419 = vmatprep.subr.bf16.mxu0 %v2418_v41 }
 0x785   :  { %v2504_v9 = vpop.eup %2503  ;;  %v1424_v13 = vmul.f32 %v2502_v7, %v3035_v5  ;;  %v1803_v5 = vld [vmem:[#allocation10 + $0x30] sm:$0xff]  ;;  %2421 = vmatpush3.bf16.msra.mxu0 %v2418_v41 }
 0x786   :  { %v1084_v15 = vmul.f32 %v2504_v9, %v2987_v31  ;;  %v2422_v31 = vpack.c.bf16 %v1802_v23, %v1801_v20 }
 0x788   :  { %v2506_v17 = vpop.eup %2505  ;;  %v2460_v18 = vpack.i.bf16 %v1084_v15, %v1082_v6  ;;  %2423 = vmatprep.subr.bf16.mxu0 %v2422_v31  ;;  %v1812_v6 = vld [vmem:[#allocation10 + $0x78] sm:$0xff] }
 0x789   :  { %v1422_v19 = vmul.f32 %v2506_v17, %v3033_v1  ;;  %v2426_v1 = vpack.c.bf16 %v1804_v34, %v1803_v5  ;;  %2425 = vmatpush3.bf16.msra.mxu0 %v2422_v31  ;;  %v2508_v58 = vpop.eup %2507 }
 0x78a   :  { %2461 = vrot.lane.b32.xlu0 %v2460_v18, %s2679_s24  ;;  %v2510_v11 = vpop.eup %2509 }
 0x78b   :  { %v2465_v21 = vpack.i.bf16 %v1424_v13, %v1422_v19  ;;  %2427 = vmatprep.subr.bf16.mxu0 %v2426_v1 }
 0x78d   :  { %2466 = vrot.lane.b32.xlu1 %v2465_v21, %s2678_s6  ;;  %2429 = vmatpush3.bf16.msra.mxu0 %v2426_v1 }
 0x78e   :  { %2431 = vmatprep.subr.bf16.mxu0 %v2430_v37 }
 0x791   :  { %2433 = vmatpush3.bf16.msra.mxu0 %v2430_v37 }
 0x792   :  { %2435 = vmatprep.subr.bf16.mxu0 %v2434_v44 }
 0x795   :  { %2437 = vmatpush3.bf16.msra.mxu0 %v2434_v44 }
 0x796   :  { %2439 = vmatprep.subr.bf16.mxu0 %v2438_v55 }
 0x799   :  { %2441 = vmatpush3.bf16.msra.mxu0 %v2438_v55 }
 0x7de   :  { %v1597_v53 = vpop.xlane.xlu0 %1596 }
 0x7e2   :  { %v1600_v60 = vpop.xlane.xlu1 %1599  ;;  %v581_v54 = vpop.xlane.xlu0 %580 }
 0x7e3   :  { %v591_v10 = vadd.f32 %v2508_v58, %v581_v54 }
 0x7e5   :  { %2511 = vrcp.f32 %v591_v10 }
 0x7e6   :  { %v584_v62 = vpop.xlane.xlu1 %583 }
 0x7e7   :  { %v592_v14 = vadd.f32 %v2510_v11, %v584_v62 }
 0x7e9   :  { %2513 = vrcp.f32 %v592_v14 }
 0x7ea   :  { %2515 = vpow2.f32 %v1603_v63 }
 0x7eb   :  { %2517 = vpow2.f32 %v1605_v8 }
 0x7ef   :  { %v2512_v16 = vpop.eup %2511 }
 0x7f0   :  { %v740_v42 = vmul.f32 %v2512_v16, %v2934_v59  ;;  %v1811_v59 = vld [vmem:[#allocation10 + $0x70] sm:$0xff] }
 0x7f1   :  { %v2442_v7 = vpack.c.bf16 %v1812_v6, %v1811_v59 }
 0x7f3   :  { %v2514_v43 = vpop.eup %2513  ;;  %2443 = vmatprep.subr.bf16.mxu0 %v2442_v7 }
 0x7f4   :  { %v742_v45 = vmul.f32 %v2514_v43, %v2936_v61  ;;  %v2516_v0 = vpop.eup %2515  ;;  %2445 = vmatpush3.bf16.msra.mxu0 %v2442_v7  ;;  %v1993_v43 = vld [vmem:[%s3137_s10] ss:$0 sm:$0xff] }
 0x7f5   :  { %v1607_v46 = vadd.f32 %v2516_v0, %v1597_v53  ;;  %v2518_v48 = vpop.eup %2517 }
 0x7f6   :  { %v1608_v4 = vadd.f32 %v2518_v48, %v1600_v60 }
 0x7f7   :  { %2519 = vrcp.f32 %v1607_v46 }
 0x7f8   :  { %2521 = vrcp.f32 %v1608_v4 }
 0x7fc   :  { %v2462_v18 = vpop.permute.xlu0 %2461 }
 0x7fd   :  { %v2464_v21 = vunpack.i.h.bf16 %v2462_v18  ;;  %v2463_v22 = vunpack.i.l.bf16 %v2462_v18 }
 0x7ff   :  { %v2467_v19 = vpop.permute.xlu1 %2466  ;;  %v1790_v29 = vsel %vm411_vm1, %v742_v45, %v2464_v21  ;;  %v1789_v23 = vsel %vm411_vm1, %v740_v42, %v2463_v22 }
 0x800   :  { %v2469_v24 = vunpack.i.h.bf16 %v2467_v19  ;;  %v2468_v27 = vunpack.i.l.bf16 %v2467_v19 }
 0x801   :  { %v2520_v61 = vpop.eup %2519 }
 0x802   :  { %v2522_v32 = vpop.eup %2521  ;;  %v1792_v31 = vsel %vm1791_vm4, %v1789_v23, %v2468_v27  ;;  %v1793_v5 = vsel %vm1791_vm4, %v1790_v29, %v2469_v24 }
 0x823   :  { %v1681_v30 = vpop.f32.mrb[30].mxu1 }
 0x824   :  { %v1762_v39 = vmul.f32 %v2520_v61, %v1681_v30  ;;  %v2277_v9 = vpop.f32.mrb[31].mxu1 }
 0x827   :  { %v1757_v33 = vpop.f32.mrb[32].mxu1 }
 0x828   :  { %v1764_v13 = vmul.f32 %v2522_v32, %v1757_v33  ;;  %v2282_v15 = vpop.f32.mrb[33].mxu1 }
 0x82a   :  { %v2470_v17 = vpack.i.bf16 %v1764_v13, %v1762_v39 }
 0x82c   :  { %2471 = vrot.lane.b32.xlu1 %v2470_v17, %s2676_s2 }
 0x89e   :  { %v2472_v28 = vpop.permute.xlu1 %2471 }
 0x89f   :  { %v2474_v41 = vunpack.i.h.bf16 %v2472_v28  ;;  %v2473_v20 = vunpack.i.l.bf16 %v2472_v28 }
 0x8a1   :  { %v1795_v34 = vsel %vm1794_vm5, %v1792_v31, %v2473_v20  ;;  %v1796_v1 = vsel %vm1794_vm5, %v1793_v5, %v2474_v41 }
 0x8a2   :  { %2315 = vmatprep.mubr.f32.mxu0 %v1795_v34 }
 0x8a3   :  { %2316 = vmatmul.mubr.f32.vlgmr.msra.gmra.mrb[4].mxu0 %v1796_v1 }
 0x976   :  { %v2317_v36 = vpop.f32.mrb[4].mxu0 }
 0x977   :  { %v1892_v37 = vadd.f32 %v2317_v36, %v1990_v35  ;;  %v1886_v38 = vpop.f32.mrb[5].mxu0 }
 0x978   :  { %v1887_v40 = vadd.f32 %v1990_v35, %v1886_v38 }
 0x979   :  { %v1896_v44 = vadd.f32 %v1892_v37, %v2834_v49 }
 0x97a   :  { %v1895_v51 = vadd.f32 %v1887_v40, %v2830_v26 }
 0x97b   :  { %1899 = vadd.xlane.f32.xlu1 %v1896_v44 }
 0x97c   :  { %1897 = vadd.xlane.f32.xlu0 %v1895_v51 }
 0xa08   :  { %v1900_v52 = vpop.xlane.xlu1 %1899 }
 0xa09   :  { %v1902_v55 = vmul.f32 0.0625, %v1900_v52  ;;  %v1898_v3 = vpop.xlane.xlu0 %1897 }
 0xa0a   :  { %v1901_v56 = vmul.f32 0.0625, %v1898_v3 }
 0xa0b   :  { %v1907_v57 = vsub.f32 %v1896_v44, %v1902_v55 }
 0xa0c   :  { %v1906_v53 = vsub.f32 %v1895_v51, %v1901_v56 }
 0xa0d   :  { %v1909_v54 = vmul.f32 %v1991_v12, %v1907_v57 }
 0xa0e   :  { %v1908_v58 = vmul.f32 %v1991_v12, %v1906_v53 }
 0xa0f   :  { %v1911_v10 = vmul.f32 %v1909_v54, %v1909_v54 }
 0xa10   :  { %v1910_v60 = vmul.f32 %v1908_v58, %v1908_v58 }
 0xa12   :  { %1912 = vadd.xlane.f32.xlu0 %v1910_v60 }
 0xa16   :  { %1914 = vadd.xlane.f32.xlu0 %v1911_v10 }
 0xa9f   :  { %v1913_v49 = vpop.xlane.xlu0 %1912 }
 0xaa0   :  { %v1916_v26 = vmul.f32 0.0625, %v1913_v49 }
 0xaa2   :  { %v1918_v11 = vadd.f32 1e-05, %v1916_v26 }
 0xaa3   :  { %v1915_v62 = vpop.xlane.xlu0 %1914 }
 0xaa4   :  { %2523 = vrsqrt.f32 %v1918_v11  ;;  %v1917_v14 = vmul.f32 0.0625, %v1915_v62 }
 0xaa6   :  { %v1919_v25 = vadd.f32 1e-05, %v1917_v14 }
 0xaa8   :  { %2525 = vrsqrt.f32 %v1919_v25 }
 0xaae   :  { %v2524_v16 = vpop.eup %2523 }
 0xaaf   :  { %v1922_v42 = vmul.f32 %v2524_v16, %v1906_v53 }
 0xab1   :  { %v1931_v45 = vmul.f32 %v1992_v50, %v1922_v42 }
 0xab2   :  { %v2526_v47 = vpop.eup %2525 }
 0xab3   :  { %v1923_v63 = vmul.f32 %v2526_v47, %v1907_v57  ;;  %v1940_v2 = vadd.f32 %v1993_v43, %v1931_v45 }
 0xab5   :  { %v1932_v8 = vmul.f32 %v1992_v50, %v1923_v63  ;;  %1942 = vst [vmem:[#allocation11] sm:$0xff] %v1940_v2 }
 0xab7   :  { %v1941_v0 = vadd.f32 %v1993_v43, %v1932_v8 }
 0xab9   :  { %1943 = vst [vmem:[#allocation11 + $0x8] sm:$0xff] %v1941_v0 }
 0xaba   :  { %2648 = shalt.err (!%p2645_p2)
}
 0xabb   :  { %s2649_s16 = scalar_lea.hbm %s3138_s11, 256 }
 0xabc   :  { %p2650_p3 = scmp.ne.s32.totalorder %s3138_s11, %s2649_s16  ;;  %p2653_p4 = scmp.lt.u32.totalorder %s2649_s16, %s3138_s11 }
 0xabe   :  { %p2655_p5 = pnand %p2653_p4, %p2650_p3 }
 0xac0   :  { %2658 = shalt.err (!%p2655_p5)
}
 0xac1   :  { %1955 = dma.vmem_to_hbm [thread:$0]  %s1950_s14, 256, %s3138_s11, [#allocation4], %s2669_s29, %s2669_s29, %s2670_s30  }
 0xac2   :  { %2665 = dma.done.wait [#allocation4], 256  }
 0xac3   :  { %2666 = vsyncadd [#allocation4], 4294967040 }
 0xac4   :  { %1959 = vsyncpa [#allocation3], 1 }
 0xac5   :  { %1960 = vsyncpa [#allocation6], 1 }
 0xac6   :  { %1961 = vsyncpa [#allocation9], 1 }
 0xac7   :  { %1962 = vsyncpa [#allocation4], 1 }

</bundles_post_ra>
